<compile_context>
chip_gen: v7x
topology: tpu7x:2x2x1
jax: 0.10.0
libtpu: 0.0.40
codegen_flags: <defaults>
</compile_context>

<pallas_src>
import functools

import numpy as np
import jax
import jax.numpy as jnp
from jax import lax
from jax.experimental import pallas as pl
from jax.experimental.pallas import tpu as pltpu

NEG_SLOPE = 0.01   # nn.LeakyReLU() default
BN_EPS = 1e-5      # nn.BatchNorm2d default


def _leaky(x):
    return jnp.where(x > 0, x, NEG_SLOPE * x)


def _salsa_kernel(x_ref, hidx_ref, widx_ref,
                  w1_ref, b1_ref, w5_ref, b5_ref,
                  gamma_ref, beta_ref, w3_ref, b3_ref,
                  out_ref, slab5_ref, slab3_ref, *, n, h, w):
    """Single-block kernel, everything lane-dense and VMEM-resident.

    x_ref     : (Cin, M)       input, channels on sublanes, M=N*H*W on lanes
    hidx_ref  : (1, M) int32   image-row index of each output column
    widx_ref  : (1, M) int32   image-col index of each output column
    w1_ref    : (Cout, Cin)         1x1 conv weight
    w5_ref    : (Cout, 25*Cin)      5x5 conv weight, columns ordered (kh, kw, cin)
    w3_ref    : (Cout, 9*Cout)      3x3 dilation-3 conv weight, columns (kh, kw, cout)
    b*/gamma/beta : (Cout, 1)
    out_ref   : (Cout, M)
    slab5_ref : (25*Cin, M) VMEM scratch  (im2col slab for the 5x5 conv)
    slab3_ref : (9*Cout, M) VMEM scratch  (im2col slab for the dilated 3x3 conv)
    """
    cin, m = x_ref.shape
    cout = out_ref.shape[0]

    hi = hidx_ref[...]
    wi = widx_ref[...]

    def shifted(src, dh, dw):
        # Value at output column c is src[:, c + dh*W + dw]; taps landing outside
        # the image are zeroed -> implements the conv zero-padding without any
        # materialized halo buffer.  The cyclic-wrap positions of the roll are
        # exactly the masked-out ones, so the wrap is harmless.
        off = dh * w + dw
        rolled = src if off == 0 else pltpu.roll(src, (-off) % m, 1)
        ok = ((hi + dh >= 0) & (hi + dh < h) &
              (wi + dw >= 0) & (wi + dw < w))
        return jnp.where(ok, rolled, 0.0)

    x = x_ref[...]

    # ---- skip path: 1x1 conv + LeakyReLU (one matmul) ----
    shortcut = _leaky(
        jnp.dot(w1_ref[...], x, preferred_element_type=jnp.float32) + b1_ref[...])

    # ---- main path: 5x5 conv (padding=2) as ONE deep-K matmul over an im2col slab
    for kh in range(5):
        for kw in range(5):
            t = kh * 5 + kw
            slab5_ref[t * cin:(t + 1) * cin, :] = shifted(x, kh - 2, kw - 2)
    act5 = _leaky(
        jnp.dot(w5_ref[...], slab5_ref[...],
                preferred_element_type=jnp.float32) + b5_ref[...])

    # ---- BatchNorm2d (training mode): fused sum / sum-of-squares reduction ----
    inv_m = 1.0 / float(m)
    mean = jnp.sum(act5, axis=1, keepdims=True) * inv_m
    var = jnp.sum(act5 * act5, axis=1, keepdims=True) * inv_m - mean * mean
    bn = (act5 - mean) * lax.rsqrt(var + BN_EPS) * gamma_ref[...] + beta_ref[...]

    # ---- 3x3 conv, dilation=3, padding=3 as ONE deep-K matmul over an im2col slab
    for kh in range(3):
        for kw in range(3):
            t = kh * 3 + kw
            slab3_ref[t * cout:(t + 1) * cout, :] = shifted(
                bn, (kh - 1) * 3, (kw - 1) * 3)
    res = jnp.dot(w3_ref[...], slab3_ref[...],
                  preferred_element_type=jnp.float32) + b3_ref[...]

    # ---- residual add + LeakyReLU, lane-dense store ----
    out_ref[...] = _leaky(shortcut + res)


def salsa_res_context_block(x_nchw, params):
    """NCHW in / NCHW out wrapper around the lane-dense Pallas kernel."""
    n, cin, h, w = x_nchw.shape
    cout = params["w1"].shape[0]
    m = n * h * w

    # ---- glue: one relayout + tiny weight repacks (cheap XLA ops) ----
    # channels -> sublanes, flattened (N, H, W) -> lanes
    x_flat = jnp.transpose(x_nchw.astype(jnp.float32), (1, 0, 2, 3)).reshape(cin, m)

    # static per-column spatial coordinates (for the in-kernel padding masks)
    pos = np.arange(m, dtype=np.int64)
    hidx = jnp.asarray(((pos // w) % h).astype(np.int32).reshape(1, m))
    widx = jnp.asarray((pos % w).astype(np.int32).reshape(1, m))

    # weights packed so each conv is one (Cout, K) @ (K, M) matmul
    w1 = params["w1"].reshape(cout, cin)
    w5 = jnp.transpose(params["w5"], (0, 2, 3, 1)).reshape(cout, 25 * cin)
    w3 = jnp.transpose(params["w3"], (0, 2, 3, 1)).reshape(cout, 9 * cout)
    b1 = params["b1"].reshape(cout, 1)
    b5 = params["b5"].reshape(cout, 1)
    b3 = params["b3"].reshape(cout, 1)
    gamma = params["gamma"].reshape(cout, 1)
    beta = params["beta"].reshape(cout, 1)

    vmem = pl.BlockSpec(memory_space=pltpu.MemorySpace.VMEM)
    kernel = functools.partial(_salsa_kernel, n=n, h=h, w=w)

    # TODO(synk): at full SalsaNext resolution (e.g. 64x2048) M no longer fits one
    # VMEM-resident block; tile M over a grid with a two-pass BN (stats pass
    # accumulating sum/sumsq, apply+dilated-conv pass with a 3-pixel halo) and
    # mark the tile axis "parallel" for megacore/pipelining.
    out_flat = pl.pallas_call(
        kernel,
        out_shape=jax.ShapeDtypeStruct((cout, m), jnp.float32),
        in_specs=[vmem] * 11,
        out_specs=vmem,
        scratch_shapes=[pltpu.VMEM((25 * cin, m), jnp.float32),
                        pltpu.VMEM((9 * cout, m), jnp.float32)],
    )(x_flat, hidx, widx, w1, b1, w5, b5, gamma, beta, w3, b3)

    return jnp.transpose(out_flat.reshape(cout, n, h, w), (1, 0, 2, 3))


# -------------------- pure-JAX reference (PyTorch semantics) --------------------
def _ref_forward(x, p):
    dn = ("NCHW", "OIHW", "NCHW")
    prec = lax.Precision.HIGHEST
    sc = lax.conv_general_dilated(x, p["w1"], (1, 1), "VALID",
                                  dimension_numbers=dn, precision=prec)
    sc = _leaky(sc + p["b1"][None, :, None, None])

    r = lax.conv_general_dilated(x, p["w5"], (1, 1), [(2, 2), (2, 2)],
                                 dimension_numbers=dn, precision=prec)
    r = _leaky(r + p["b5"][None, :, None, None])

    mean = r.mean(axis=(0, 2, 3), keepdims=True)
    var = ((r - mean) ** 2).mean(axis=(0, 2, 3), keepdims=True)
    r = (r - mean) / jnp.sqrt(var + BN_EPS)
    r = r * p["gamma"][None, :, None, None] + p["beta"][None, :, None, None]

    r = lax.conv_general_dilated(r, p["w3"], (1, 1), [(3, 3), (3, 3)],
                                 rhs_dilation=(3, 3), dimension_numbers=dn,
                                 precision=prec)
    r = r + p["b3"][None, :, None, None]
    return _leaky(sc + r)


if __name__ == "__main__":
    key = jax.random.PRNGKey(0)
    N, Cin, Cout, H, W = 2, 4, 8, 16, 16

    ks = jax.random.split(key, 10)
    params = {
        "w1": 0.2 * jax.random.normal(ks[0], (Cout, Cin, 1, 1), jnp.float32),
        "b1": 0.1 * jax.random.normal(ks[1], (Cout,), jnp.float32),
        "w5": 0.1 * jax.random.normal(ks[2], (Cout, Cin, 5, 5), jnp.float32),
        "b5": 0.1 * jax.random.normal(ks[3], (Cout,), jnp.float32),
        "gamma": 1.0 + 0.1 * jax.random.normal(ks[4], (Cout,), jnp.float32),
        "beta": 0.1 * jax.random.normal(ks[5], (Cout,), jnp.float32),
        "w3": 0.1 * jax.random.normal(ks[6], (Cout, Cout, 3, 3), jnp.float32),
        "b3": 0.1 * jax.random.normal(ks[7], (Cout,), jnp.float32),
    }
    x = jax.random.normal(ks[8], (N, Cin, H, W), jnp.float32)

    out = jax.block_until_ready(salsa_res_context_block(x, params))
    ref = jax.block_until_ready(_ref_forward(x, params))

    assert out.shape == (N, Cout, H, W), out.shape
    assert jnp.allclose(out, ref, atol=1e-4, rtol=1e-4), float(jnp.abs(out - ref).max())
    print("KERNEL_OK")
</pallas_src>

<mosaic_0001>
module attributes {stable_mosaic.version = 11 : i64} {
  func.func @_salsa_kernel(%arg0: memref<4x512xf32, #tpu.memory_space<vmem>>, %arg1: memref<1x512xi32, #tpu.memory_space<vmem>>, %arg2: memref<1x512xi32, #tpu.memory_space<vmem>>, %arg3: memref<8x4xf32, #tpu.memory_space<vmem>>, %arg4: memref<8x1xf32, #tpu.memory_space<vmem>>, %arg5: memref<8x100xf32, #tpu.memory_space<vmem>>, %arg6: memref<8x1xf32, #tpu.memory_space<vmem>>, %arg7: memref<8x1xf32, #tpu.memory_space<vmem>>, %arg8: memref<8x1xf32, #tpu.memory_space<vmem>>, %arg9: memref<8x72xf32, #tpu.memory_space<vmem>>, %arg10: memref<8x1xf32, #tpu.memory_space<vmem>>, %arg11: memref<8x512xf32, #tpu.memory_space<vmem>>, %arg12: memref<100x512xf32, #tpu.memory_space<vmem>>, %arg13: memref<72x512xf32, #tpu.memory_space<vmem>>) attributes {dimension_semantics = [], scalar_prefetch = 0 : i64, scratch_operands = 2 : i64, tpu.core_type = #tpu.core_type<tc>} {
    %c0 = arith.constant 0 : index
    %c0_0 = arith.constant 0 : index
    %0 = vector.load %arg1[%c0, %c0_0] : memref<1x512xi32, #tpu.memory_space<vmem>>, vector<1x512xi32>
    %c0_1 = arith.constant 0 : index
    %c0_2 = arith.constant 0 : index
    %1 = vector.load %arg2[%c0_1, %c0_2] : memref<1x512xi32, #tpu.memory_space<vmem>>, vector<1x512xi32>
    %c0_3 = arith.constant 0 : index
    %c0_4 = arith.constant 0 : index
    %2 = vector.load %arg0[%c0_3, %c0_4] : memref<4x512xf32, #tpu.memory_space<vmem>>, vector<4x512xf32>
    %c0_5 = arith.constant 0 : index
    %c0_6 = arith.constant 0 : index
    %3 = vector.load %arg3[%c0_5, %c0_6] : memref<8x4xf32, #tpu.memory_space<vmem>>, vector<8x4xf32>
    %cst = arith.constant dense<0.000000e+00> : vector<8x512xf32>
    %4 = tpu.matmul %3, %2, %cst {dimension_numbers = #tpu.dot_dimension_numbers<[1], [0], [0], [1], [0, 0, 1, 1], [], []>} : vector<8x4xf32>, vector<4x512xf32>, vector<8x512xf32> -> vector<8x512xf32>
    %c0_7 = arith.constant 0 : index
    %c0_8 = arith.constant 0 : index
    %5 = vector.load %arg4[%c0_7, %c0_8] : memref<8x1xf32, #tpu.memory_space<vmem>>, vector<8x1xf32>
    %6 = vector.broadcast %5 : vector<8x1xf32> to vector<8x512xf32>
    %7 = arith.addf %4, %6 : vector<8x512xf32>
    %cst_9 = arith.constant 0.000000e+00 : f32
    %8 = vector.broadcast %cst_9 : f32 to vector<8x512xf32>
    %9 = arith.cmpf ogt, %7, %8 : vector<8x512xf32>
    %cst_10 = arith.constant 0.00999999977 : f32
    %10 = vector.broadcast %cst_10 : f32 to vector<8x512xf32>
    %11 = arith.mulf %10, %7 : vector<8x512xf32>
    %12 = arith.select %9, %7, %11 : vector<8x512xi1>, vector<8x512xf32>
    %c34_i32 = arith.constant 34 : i32
    %13 = tpu.dynamic_rotate %2 by %c34_i32 dim 1 : vector<4x512xf32>, i32 -> vector<4x512xf32>
    %c-2_i32 = arith.constant -2 : i32
    %14 = vector.broadcast %c-2_i32 : i32 to vector<1x512xi32>
    %15 = arith.addi %0, %14 : vector<1x512xi32>
    %c0_i32 = arith.constant 0 : i32
    %16 = vector.broadcast %c0_i32 : i32 to vector<1x512xi32>
    %17 = arith.cmpi sge, %15, %16 : vector<1x512xi32>
    %c-2_i32_11 = arith.constant -2 : i32
    %18 = vector.broadcast %c-2_i32_11 : i32 to vector<1x512xi32>
    %19 = arith.addi %0, %18 : vector<1x512xi32>
    %c16_i32 = arith.constant 16 : i32
    %20 = vector.broadcast %c16_i32 : i32 to vector<1x512xi32>
    %21 = arith.cmpi slt, %19, %20 : vector<1x512xi32>
    %22 = arith.andi %17, %21 : vector<1x512xi1>
    %c-2_i32_12 = arith.constant -2 : i32
    %23 = vector.broadcast %c-2_i32_12 : i32 to vector<1x512xi32>
    %24 = arith.addi %1, %23 : vector<1x512xi32>
    %c0_i32_13 = arith.constant 0 : i32
    %25 = vector.broadcast %c0_i32_13 : i32 to vector<1x512xi32>
    %26 = arith.cmpi sge, %24, %25 : vector<1x512xi32>
    %27 = arith.andi %22, %26 : vector<1x512xi1>
    %c-2_i32_14 = arith.constant -2 : i32
    %28 = vector.broadcast %c-2_i32_14 : i32 to vector<1x512xi32>
    %29 = arith.addi %1, %28 : vector<1x512xi32>
    %c16_i32_15 = arith.constant 16 : i32
    %30 = vector.broadcast %c16_i32_15 : i32 to vector<1x512xi32>
    %31 = arith.cmpi slt, %29, %30 : vector<1x512xi32>
    %32 = arith.andi %27, %31 : vector<1x512xi1>
    %cst_16 = arith.constant 0.000000e+00 : f32
    %33 = vector.shape_cast %32 : vector<1x512xi1> to vector<1x512xi1>
    %34 = vector.broadcast %33 : vector<1x512xi1> to vector<4x512xi1>
    %35 = vector.broadcast %cst_16 : f32 to vector<4x512xf32>
    %36 = arith.select %34, %13, %35 : vector<4x512xi1>, vector<4x512xf32>
    %c0_17 = arith.constant 0 : index
    %c0_18 = arith.constant 0 : index
    %37 = vector.load %arg12[%c0_17, %c0_18] : memref<100x512xf32, #tpu.memory_space<vmem>>, vector<4x512xf32>
    tpu.vector_store %arg12[%c0_17, %c0_18], %36 {strides = array<i32>} : memref<100x512xf32, #tpu.memory_space<vmem>>, vector<4x512xf32>,
    %c33_i32 = arith.constant 33 : i32
    %38 = tpu.dynamic_rotate %2 by %c33_i32 dim 1 : vector<4x512xf32>, i32 -> vector<4x512xf32>
    %c-2_i32_19 = arith.constant -2 : i32
    %39 = vector.broadcast %c-2_i32_19 : i32 to vector<1x512xi32>
    %40 = arith.addi %0, %39 : vector<1x512xi32>
    %c0_i32_20 = arith.constant 0 : i32
    %41 = vector.broadcast %c0_i32_20 : i32 to vector<1x512xi32>
    %42 = arith.cmpi sge, %40, %41 : vector<1x512xi32>
    %c-2_i32_21 = arith.constant -2 : i32
    %43 = vector.broadcast %c-2_i32_21 : i32 to vector<1x512xi32>
    %44 = arith.addi %0, %43 : vector<1x512xi32>
    %c16_i32_22 = arith.constant 16 : i32
    %45 = vector.broadcast %c16_i32_22 : i32 to vector<1x512xi32>
    %46 = arith.cmpi slt, %44, %45 : vector<1x512xi32>
    %47 = arith.andi %42, %46 : vector<1x512xi1>
    %c-1_i32 = arith.constant -1 : i32
    %48 = vector.broadcast %c-1_i32 : i32 to vector<1x512xi32>
    %49 = arith.addi %1, %48 : vector<1x512xi32>
    %c0_i32_23 = arith.constant 0 : i32
    %50 = vector.broadcast %c0_i32_23 : i32 to vector<1x512xi32>
    %51 = arith.cmpi sge, %49, %50 : vector<1x512xi32>
    %52 = arith.andi %47, %51 : vector<1x512xi1>
    %c-1_i32_24 = arith.constant -1 : i32
    %53 = vector.broadcast %c-1_i32_24 : i32 to vector<1x512xi32>
    %54 = arith.addi %1, %53 : vector<1x512xi32>
    %c16_i32_25 = arith.constant 16 : i32
    %55 = vector.broadcast %c16_i32_25 : i32 to vector<1x512xi32>
    %56 = arith.cmpi slt, %54, %55 : vector<1x512xi32>
    %57 = arith.andi %52, %56 : vector<1x512xi1>
    %cst_26 = arith.constant 0.000000e+00 : f32
    %58 = vector.shape_cast %57 : vector<1x512xi1> to vector<1x512xi1>
    %59 = vector.broadcast %58 : vector<1x512xi1> to vector<4x512xi1>
    %60 = vector.broadcast %cst_26 : f32 to vector<4x512xf32>
    %61 = arith.select %59, %38, %60 : vector<4x512xi1>, vector<4x512xf32>
    %c4 = arith.constant 4 : index
    %c0_27 = arith.constant 0 : index
    %62 = vector.load %arg12[%c4, %c0_27] : memref<100x512xf32, #tpu.memory_space<vmem>>, vector<4x512xf32>
    tpu.vector_store %arg12[%c4, %c0_27], %61 {strides = array<i32>} : memref<100x512xf32, #tpu.memory_space<vmem>>, vector<4x512xf32>,
    %c32_i32 = arith.constant 32 : i32
    %63 = tpu.dynamic_rotate %2 by %c32_i32 dim 1 : vector<4x512xf32>, i32 -> vector<4x512xf32>
    %c-2_i32_28 = arith.constant -2 : i32
    %64 = vector.broadcast %c-2_i32_28 : i32 to vector<1x512xi32>
    %65 = arith.addi %0, %64 : vector<1x512xi32>
    %c0_i32_29 = arith.constant 0 : i32
    %66 = vector.broadcast %c0_i32_29 : i32 to vector<1x512xi32>
    %67 = arith.cmpi sge, %65, %66 : vector<1x512xi32>
    %c-2_i32_30 = arith.constant -2 : i32
    %68 = vector.broadcast %c-2_i32_30 : i32 to vector<1x512xi32>
    %69 = arith.addi %0, %68 : vector<1x512xi32>
    %c16_i32_31 = arith.constant 16 : i32
    %70 = vector.broadcast %c16_i32_31 : i32 to vector<1x512xi32>
    %71 = arith.cmpi slt, %69, %70 : vector<1x512xi32>
    %72 = arith.andi %67, %71 : vector<1x512xi1>
    %c0_i32_32 = arith.constant 0 : i32
    %73 = vector.broadcast %c0_i32_32 : i32 to vector<1x512xi32>
    %74 = arith.addi %1, %73 : vector<1x512xi32>
    %c0_i32_33 = arith.constant 0 : i32
    %75 = vector.broadcast %c0_i32_33 : i32 to vector<1x512xi32>
    %76 = arith.cmpi sge, %74, %75 : vector<1x512xi32>
    %77 = arith.andi %72, %76 : vector<1x512xi1>
    %c0_i32_34 = arith.constant 0 : i32
    %78 = vector.broadcast %c0_i32_34 : i32 to vector<1x512xi32>
    %79 = arith.addi %1, %78 : vector<1x512xi32>
    %c16_i32_35 = arith.constant 16 : i32
    %80 = vector.broadcast %c16_i32_35 : i32 to vector<1x512xi32>
    %81 = arith.cmpi slt, %79, %80 : vector<1x512xi32>
    %82 = arith.andi %77, %81 : vector<1x512xi1>
    %cst_36 = arith.constant 0.000000e+00 : f32
    %83 = vector.shape_cast %82 : vector<1x512xi1> to vector<1x512xi1>
    %84 = vector.broadcast %83 : vector<1x512xi1> to vector<4x512xi1>
    %85 = vector.broadcast %cst_36 : f32 to vector<4x512xf32>
    %86 = arith.select %84, %63, %85 : vector<4x512xi1>, vector<4x512xf32>
    %c8 = arith.constant 8 : index
    %c0_37 = arith.constant 0 : index
    %87 = vector.load %arg12[%c8, %c0_37] : memref<100x512xf32, #tpu.memory_space<vmem>>, vector<4x512xf32>
    tpu.vector_store %arg12[%c8, %c0_37], %86 {strides = array<i32>} : memref<100x512xf32, #tpu.memory_space<vmem>>, vector<4x512xf32>,
    %c31_i32 = arith.constant 31 : i32
    %88 = tpu.dynamic_rotate %2 by %c31_i32 dim 1 : vector<4x512xf32>, i32 -> vector<4x512xf32>
    %c-2_i32_38 = arith.constant -2 : i32
    %89 = vector.broadcast %c-2_i32_38 : i32 to vector<1x512xi32>
    %90 = arith.addi %0, %89 : vector<1x512xi32>
    %c0_i32_39 = arith.constant 0 : i32
    %91 = vector.broadcast %c0_i32_39 : i32 to vector<1x512xi32>
    %92 = arith.cmpi sge, %90, %91 : vector<1x512xi32>
    %c-2_i32_40 = arith.constant -2 : i32
    %93 = vector.broadcast %c-2_i32_40 : i32 to vector<1x512xi32>
    %94 = arith.addi %0, %93 : vector<1x512xi32>
    %c16_i32_41 = arith.constant 16 : i32
    %95 = vector.broadcast %c16_i32_41 : i32 to vector<1x512xi32>
    %96 = arith.cmpi slt, %94, %95 : vector<1x512xi32>
    %97 = arith.andi %92, %96 : vector<1x512xi1>
    %c1_i32 = arith.constant 1 : i32
    %98 = vector.broadcast %c1_i32 : i32 to vector<1x512xi32>
    %99 = arith.addi %1, %98 : vector<1x512xi32>
    %c0_i32_42 = arith.constant 0 : i32
    %100 = vector.broadcast %c0_i32_42 : i32 to vector<1x512xi32>
    %101 = arith.cmpi sge, %99, %100 : vector<1x512xi32>
    %102 = arith.andi %97, %101 : vector<1x512xi1>
    %c1_i32_43 = arith.constant 1 : i32
    %103 = vector.broadcast %c1_i32_43 : i32 to vector<1x512xi32>
    %104 = arith.addi %1, %103 : vector<1x512xi32>
    %c16_i32_44 = arith.constant 16 : i32
    %105 = vector.broadcast %c16_i32_44 : i32 to vector<1x512xi32>
    %106 = arith.cmpi slt, %104, %105 : vector<1x512xi32>
    %107 = arith.andi %102, %106 : vector<1x512xi1>
    %cst_45 = arith.constant 0.000000e+00 : f32
    %108 = vector.shape_cast %107 : vector<1x512xi1> to vector<1x512xi1>
    %109 = vector.broadcast %108 : vector<1x512xi1> to vector<4x512xi1>
    %110 = vector.broadcast %cst_45 : f32 to vector<4x512xf32>
    %111 = arith.select %109, %88, %110 : vector<4x512xi1>, vector<4x512xf32>
    %c12 = arith.constant 12 : index
    %c0_46 = arith.constant 0 : index
    %112 = vector.load %arg12[%c12, %c0_46] : memref<100x512xf32, #tpu.memory_space<vmem>>, vector<4x512xf32>
    tpu.vector_store %arg12[%c12, %c0_46], %111 {strides = array<i32>} : memref<100x512xf32, #tpu.memory_space<vmem>>, vector<4x512xf32>,
    %c30_i32 = arith.constant 30 : i32
    %113 = tpu.dynamic_rotate %2 by %c30_i32 dim 1 : vector<4x512xf32>, i32 -> vector<4x512xf32>
    %c-2_i32_47 = arith.constant -2 : i32
    %114 = vector.broadcast %c-2_i32_47 : i32 to vector<1x512xi32>
    %115 = arith.addi %0, %114 : vector<1x512xi32>
    %c0_i32_48 = arith.constant 0 : i32
    %116 = vector.broadcast %c0_i32_48 : i32 to vector<1x512xi32>
    %117 = arith.cmpi sge, %115, %116 : vector<1x512xi32>
    %c-2_i32_49 = arith.constant -2 : i32
    %118 = vector.broadcast %c-2_i32_49 : i32 to vector<1x512xi32>
    %119 = arith.addi %0, %118 : vector<1x512xi32>
    %c16_i32_50 = arith.constant 16 : i32
    %120 = vector.broadcast %c16_i32_50 : i32 to vector<1x512xi32>
    %121 = arith.cmpi slt, %119, %120 : vector<1x512xi32>
    %122 = arith.andi %117, %121 : vector<1x512xi1>
    %c2_i32 = arith.constant 2 : i32
    %123 = vector.broadcast %c2_i32 : i32 to vector<1x512xi32>
    %124 = arith.addi %1, %123 : vector<1x512xi32>
    %c0_i32_51 = arith.constant 0 : i32
    %125 = vector.broadcast %c0_i32_51 : i32 to vector<1x512xi32>
    %126 = arith.cmpi sge, %124, %125 : vector<1x512xi32>
    %127 = arith.andi %122, %126 : vector<1x512xi1>
    %c2_i32_52 = arith.constant 2 : i32
    %128 = vector.broadcast %c2_i32_52 : i32 to vector<1x512xi32>
    %129 = arith.addi %1, %128 : vector<1x512xi32>
    %c16_i32_53 = arith.constant 16 : i32
    %130 = vector.broadcast %c16_i32_53 : i32 to vector<1x512xi32>
    %131 = arith.cmpi slt, %129, %130 : vector<1x512xi32>
    %132 = arith.andi %127, %131 : vector<1x512xi1>
    %cst_54 = arith.constant 0.000000e+00 : f32
    %133 = vector.shape_cast %132 : vector<1x512xi1> to vector<1x512xi1>
    %134 = vector.broadcast %133 : vector<1x512xi1> to vector<4x512xi1>
    %135 = vector.broadcast %cst_54 : f32 to vector<4x512xf32>
    %136 = arith.select %134, %113, %135 : vector<4x512xi1>, vector<4x512xf32>
    %c16 = arith.constant 16 : index
    %c0_55 = arith.constant 0 : index
    %137 = vector.load %arg12[%c16, %c0_55] : memref<100x512xf32, #tpu.memory_space<vmem>>, vector<4x512xf32>
    tpu.vector_store %arg12[%c16, %c0_55], %136 {strides = array<i32>} : memref<100x512xf32, #tpu.memory_space<vmem>>, vector<4x512xf32>,
    %c18_i32 = arith.constant 18 : i32
    %138 = tpu.dynamic_rotate %2 by %c18_i32 dim 1 : vector<4x512xf32>, i32 -> vector<4x512xf32>
    %c-1_i32_56 = arith.constant -1 : i32
    %139 = vector.broadcast %c-1_i32_56 : i32 to vector<1x512xi32>
    %140 = arith.addi %0, %139 : vector<1x512xi32>
    %c0_i32_57 = arith.constant 0 : i32
    %141 = vector.broadcast %c0_i32_57 : i32 to vector<1x512xi32>
    %142 = arith.cmpi sge, %140, %141 : vector<1x512xi32>
    %c-1_i32_58 = arith.constant -1 : i32
    %143 = vector.broadcast %c-1_i32_58 : i32 to vector<1x512xi32>
    %144 = arith.addi %0, %143 : vector<1x512xi32>
    %c16_i32_59 = arith.constant 16 : i32
    %145 = vector.broadcast %c16_i32_59 : i32 to vector<1x512xi32>
    %146 = arith.cmpi slt, %144, %145 : vector<1x512xi32>
    %147 = arith.andi %142, %146 : vector<1x512xi1>
    %c-2_i32_60 = arith.constant -2 : i32
    %148 = vector.broadcast %c-2_i32_60 : i32 to vector<1x512xi32>
    %149 = arith.addi %1, %148 : vector<1x512xi32>
    %c0_i32_61 = arith.constant 0 : i32
    %150 = vector.broadcast %c0_i32_61 : i32 to vector<1x512xi32>
    %151 = arith.cmpi sge, %149, %150 : vector<1x512xi32>
    %152 = arith.andi %147, %151 : vector<1x512xi1>
    %c-2_i32_62 = arith.constant -2 : i32
    %153 = vector.broadcast %c-2_i32_62 : i32 to vector<1x512xi32>
    %154 = arith.addi %1, %153 : vector<1x512xi32>
    %c16_i32_63 = arith.constant 16 : i32
    %155 = vector.broadcast %c16_i32_63 : i32 to vector<1x512xi32>
    %156 = arith.cmpi slt, %154, %155 : vector<1x512xi32>
    %157 = arith.andi %152, %156 : vector<1x512xi1>
    %cst_64 = arith.constant 0.000000e+00 : f32
    %158 = vector.shape_cast %157 : vector<1x512xi1> to vector<1x512xi1>
    %159 = vector.broadcast %158 : vector<1x512xi1> to vector<4x512xi1>
    %160 = vector.broadcast %cst_64 : f32 to vector<4x512xf32>
    %161 = arith.select %159, %138, %160 : vector<4x512xi1>, vector<4x512xf32>
    %c20 = arith.constant 20 : index
    %c0_65 = arith.constant 0 : index
    %162 = vector.load %arg12[%c20, %c0_65] : memref<100x512xf32, #tpu.memory_space<vmem>>, vector<4x512xf32>
    tpu.vector_store %arg12[%c20, %c0_65], %161 {strides = array<i32>} : memref<100x512xf32, #tpu.memory_space<vmem>>, vector<4x512xf32>,
    %c17_i32 = arith.constant 17 : i32
    %163 = tpu.dynamic_rotate %2 by %c17_i32 dim 1 : vector<4x512xf32>, i32 -> vector<4x512xf32>
    %c-1_i32_66 = arith.constant -1 : i32
    %164 = vector.broadcast %c-1_i32_66 : i32 to vector<1x512xi32>
    %165 = arith.addi %0, %164 : vector<1x512xi32>
    %c0_i32_67 = arith.constant 0 : i32
    %166 = vector.broadcast %c0_i32_67 : i32 to vector<1x512xi32>
    %167 = arith.cmpi sge, %165, %166 : vector<1x512xi32>
    %c-1_i32_68 = arith.constant -1 : i32
    %168 = vector.broadcast %c-1_i32_68 : i32 to vector<1x512xi32>
    %169 = arith.addi %0, %168 : vector<1x512xi32>
    %c16_i32_69 = arith.constant 16 : i32
    %170 = vector.broadcast %c16_i32_69 : i32 to vector<1x512xi32>
    %171 = arith.cmpi slt, %169, %170 : vector<1x512xi32>
    %172 = arith.andi %167, %171 : vector<1x512xi1>
    %c-1_i32_70 = arith.constant -1 : i32
    %173 = vector.broadcast %c-1_i32_70 : i32 to vector<1x512xi32>
    %174 = arith.addi %1, %173 : vector<1x512xi32>
    %c0_i32_71 = arith.constant 0 : i32
    %175 = vector.broadcast %c0_i32_71 : i32 to vector<1x512xi32>
    %176 = arith.cmpi sge, %174, %175 : vector<1x512xi32>
    %177 = arith.andi %172, %176 : vector<1x512xi1>
    %c-1_i32_72 = arith.constant -1 : i32
    %178 = vector.broadcast %c-1_i32_72 : i32 to vector<1x512xi32>
    %179 = arith.addi %1, %178 : vector<1x512xi32>
    %c16_i32_73 = arith.constant 16 : i32
    %180 = vector.broadcast %c16_i32_73 : i32 to vector<1x512xi32>
    %181 = arith.cmpi slt, %179, %180 : vector<1x512xi32>
    %182 = arith.andi %177, %181 : vector<1x512xi1>
    %cst_74 = arith.constant 0.000000e+00 : f32
    %183 = vector.shape_cast %182 : vector<1x512xi1> to vector<1x512xi1>
    %184 = vector.broadcast %183 : vector<1x512xi1> to vector<4x512xi1>
    %185 = vector.broadcast %cst_74 : f32 to vector<4x512xf32>
    %186 = arith.select %184, %163, %185 : vector<4x512xi1>, vector<4x512xf32>
    %c24 = arith.constant 24 : index
    %c0_75 = arith.constant 0 : index
    %187 = vector.load %arg12[%c24, %c0_75] : memref<100x512xf32, #tpu.memory_space<vmem>>, vector<4x512xf32>
    tpu.vector_store %arg12[%c24, %c0_75], %186 {strides = array<i32>} : memref<100x512xf32, #tpu.memory_space<vmem>>, vector<4x512xf32>,
    %c16_i32_76 = arith.constant 16 : i32
    %188 = tpu.dynamic_rotate %2 by %c16_i32_76 dim 1 : vector<4x512xf32>, i32 -> vector<4x512xf32>
    %c-1_i32_77 = arith.constant -1 : i32
    %189 = vector.broadcast %c-1_i32_77 : i32 to vector<1x512xi32>
    %190 = arith.addi %0, %189 : vector<1x512xi32>
    %c0_i32_78 = arith.constant 0 : i32
    %191 = vector.broadcast %c0_i32_78 : i32 to vector<1x512xi32>
    %192 = arith.cmpi sge, %190, %191 : vector<1x512xi32>
    %c-1_i32_79 = arith.constant -1 : i32
    %193 = vector.broadcast %c-1_i32_79 : i32 to vector<1x512xi32>
    %194 = arith.addi %0, %193 : vector<1x512xi32>
    %c16_i32_80 = arith.constant 16 : i32
    %195 = vector.broadcast %c16_i32_80 : i32 to vector<1x512xi32>
    %196 = arith.cmpi slt, %194, %195 : vector<1x512xi32>
    %197 = arith.andi %192, %196 : vector<1x512xi1>
    %c0_i32_81 = arith.constant 0 : i32
    %198 = vector.broadcast %c0_i32_81 : i32 to vector<1x512xi32>
    %199 = arith.addi %1, %198 : vector<1x512xi32>
    %c0_i32_82 = arith.constant 0 : i32
    %200 = vector.broadcast %c0_i32_82 : i32 to vector<1x512xi32>
    %201 = arith.cmpi sge, %199, %200 : vector<1x512xi32>
    %202 = arith.andi %197, %201 : vector<1x512xi1>
    %c0_i32_83 = arith.constant 0 : i32
    %203 = vector.broadcast %c0_i32_83 : i32 to vector<1x512xi32>
    %204 = arith.addi %1, %203 : vector<1x512xi32>
    %c16_i32_84 = arith.constant 16 : i32
    %205 = vector.broadcast %c16_i32_84 : i32 to vector<1x512xi32>
    %206 = arith.cmpi slt, %204, %205 : vector<1x512xi32>
    %207 = arith.andi %202, %206 : vector<1x512xi1>
    %cst_85 = arith.constant 0.000000e+00 : f32
    %208 = vector.shape_cast %207 : vector<1x512xi1> to vector<1x512xi1>
    %209 = vector.broadcast %208 : vector<1x512xi1> to vector<4x512xi1>
    %210 = vector.broadcast %cst_85 : f32 to vector<4x512xf32>
    %211 = arith.select %209, %188, %210 : vector<4x512xi1>, vector<4x512xf32>
    %c28 = arith.constant 28 : index
    %c0_86 = arith.constant 0 : index
    %212 = vector.load %arg12[%c28, %c0_86] : memref<100x512xf32, #tpu.memory_space<vmem>>, vector<4x512xf32>
    tpu.vector_store %arg12[%c28, %c0_86], %211 {strides = array<i32>} : memref<100x512xf32, #tpu.memory_space<vmem>>, vector<4x512xf32>,
    %c15_i32 = arith.constant 15 : i32
    %213 = tpu.dynamic_rotate %2 by %c15_i32 dim 1 : vector<4x512xf32>, i32 -> vector<4x512xf32>
    %c-1_i32_87 = arith.constant -1 : i32
    %214 = vector.broadcast %c-1_i32_87 : i32 to vector<1x512xi32>
    %215 = arith.addi %0, %214 : vector<1x512xi32>
    %c0_i32_88 = arith.constant 0 : i32
    %216 = vector.broadcast %c0_i32_88 : i32 to vector<1x512xi32>
    %217 = arith.cmpi sge, %215, %216 : vector<1x512xi32>
    %c-1_i32_89 = arith.constant -1 : i32
    %218 = vector.broadcast %c-1_i32_89 : i32 to vector<1x512xi32>
    %219 = arith.addi %0, %218 : vector<1x512xi32>
    %c16_i32_90 = arith.constant 16 : i32
    %220 = vector.broadcast %c16_i32_90 : i32 to vector<1x512xi32>
    %221 = arith.cmpi slt, %219, %220 : vector<1x512xi32>
    %222 = arith.andi %217, %221 : vector<1x512xi1>
    %c1_i32_91 = arith.constant 1 : i32
    %223 = vector.broadcast %c1_i32_91 : i32 to vector<1x512xi32>
    %224 = arith.addi %1, %223 : vector<1x512xi32>
    %c0_i32_92 = arith.constant 0 : i32
    %225 = vector.broadcast %c0_i32_92 : i32 to vector<1x512xi32>
    %226 = arith.cmpi sge, %224, %225 : vector<1x512xi32>
    %227 = arith.andi %222, %226 : vector<1x512xi1>
    %c1_i32_93 = arith.constant 1 : i32
    %228 = vector.broadcast %c1_i32_93 : i32 to vector<1x512xi32>
    %229 = arith.addi %1, %228 : vector<1x512xi32>
    %c16_i32_94 = arith.constant 16 : i32
    %230 = vector.broadcast %c16_i32_94 : i32 to vector<1x512xi32>
    %231 = arith.cmpi slt, %229, %230 : vector<1x512xi32>
    %232 = arith.andi %227, %231 : vector<1x512xi1>
    %cst_95 = arith.constant 0.000000e+00 : f32
    %233 = vector.shape_cast %232 : vector<1x512xi1> to vector<1x512xi1>
    %234 = vector.broadcast %233 : vector<1x512xi1> to vector<4x512xi1>
    %235 = vector.broadcast %cst_95 : f32 to vector<4x512xf32>
    %236 = arith.select %234, %213, %235 : vector<4x512xi1>, vector<4x512xf32>
    %c32 = arith.constant 32 : index
    %c0_96 = arith.constant 0 : index
    %237 = vector.load %arg12[%c32, %c0_96] : memref<100x512xf32, #tpu.memory_space<vmem>>, vector<4x512xf32>
    tpu.vector_store %arg12[%c32, %c0_96], %236 {strides = array<i32>} : memref<100x512xf32, #tpu.memory_space<vmem>>, vector<4x512xf32>,
    %c14_i32 = arith.constant 14 : i32
    %238 = tpu.dynamic_rotate %2 by %c14_i32 dim 1 : vector<4x512xf32>, i32 -> vector<4x512xf32>
    %c-1_i32_97 = arith.constant -1 : i32
    %239 = vector.broadcast %c-1_i32_97 : i32 to vector<1x512xi32>
    %240 = arith.addi %0, %239 : vector<1x512xi32>
    %c0_i32_98 = arith.constant 0 : i32
    %241 = vector.broadcast %c0_i32_98 : i32 to vector<1x512xi32>
    %242 = arith.cmpi sge, %240, %241 : vector<1x512xi32>
    %c-1_i32_99 = arith.constant -1 : i32
    %243 = vector.broadcast %c-1_i32_99 : i32 to vector<1x512xi32>
    %244 = arith.addi %0, %243 : vector<1x512xi32>
    %c16_i32_100 = arith.constant 16 : i32
    %245 = vector.broadcast %c16_i32_100 : i32 to vector<1x512xi32>
    %246 = arith.cmpi slt, %244, %245 : vector<1x512xi32>
    %247 = arith.andi %242, %246 : vector<1x512xi1>
    %c2_i32_101 = arith.constant 2 : i32
    %248 = vector.broadcast %c2_i32_101 : i32 to vector<1x512xi32>
    %249 = arith.addi %1, %248 : vector<1x512xi32>
    %c0_i32_102 = arith.constant 0 : i32
    %250 = vector.broadcast %c0_i32_102 : i32 to vector<1x512xi32>
    %251 = arith.cmpi sge, %249, %250 : vector<1x512xi32>
    %252 = arith.andi %247, %251 : vector<1x512xi1>
    %c2_i32_103 = arith.constant 2 : i32
    %253 = vector.broadcast %c2_i32_103 : i32 to vector<1x512xi32>
    %254 = arith.addi %1, %253 : vector<1x512xi32>
    %c16_i32_104 = arith.constant 16 : i32
    %255 = vector.broadcast %c16_i32_104 : i32 to vector<1x512xi32>
    %256 = arith.cmpi slt, %254, %255 : vector<1x512xi32>
    %257 = arith.andi %252, %256 : vector<1x512xi1>
    %cst_105 = arith.constant 0.000000e+00 : f32
    %258 = vector.shape_cast %257 : vector<1x512xi1> to vector<1x512xi1>
    %259 = vector.broadcast %258 : vector<1x512xi1> to vector<4x512xi1>
    %260 = vector.broadcast %cst_105 : f32 to vector<4x512xf32>
    %261 = arith.select %259, %238, %260 : vector<4x512xi1>, vector<4x512xf32>
    %c36 = arith.constant 36 : index
    %c0_106 = arith.constant 0 : index
    %262 = vector.load %arg12[%c36, %c0_106] : memref<100x512xf32, #tpu.memory_space<vmem>>, vector<4x512xf32>
    tpu.vector_store %arg12[%c36, %c0_106], %261 {strides = array<i32>} : memref<100x512xf32, #tpu.memory_space<vmem>>, vector<4x512xf32>,
    %c2_i32_107 = arith.constant 2 : i32
    %263 = tpu.dynamic_rotate %2 by %c2_i32_107 dim 1 : vector<4x512xf32>, i32 -> vector<4x512xf32>
    %c0_i32_108 = arith.constant 0 : i32
    %264 = vector.broadcast %c0_i32_108 : i32 to vector<1x512xi32>
    %265 = arith.addi %0, %264 : vector<1x512xi32>
    %c0_i32_109 = arith.constant 0 : i32
    %266 = vector.broadcast %c0_i32_109 : i32 to vector<1x512xi32>
    %267 = arith.cmpi sge, %265, %266 : vector<1x512xi32>
    %c0_i32_110 = arith.constant 0 : i32
    %268 = vector.broadcast %c0_i32_110 : i32 to vector<1x512xi32>
    %269 = arith.addi %0, %268 : vector<1x512xi32>
    %c16_i32_111 = arith.constant 16 : i32
    %270 = vector.broadcast %c16_i32_111 : i32 to vector<1x512xi32>
    %271 = arith.cmpi slt, %269, %270 : vector<1x512xi32>
    %272 = arith.andi %267, %271 : vector<1x512xi1>
    %c-2_i32_112 = arith.constant -2 : i32
    %273 = vector.broadcast %c-2_i32_112 : i32 to vector<1x512xi32>
    %274 = arith.addi %1, %273 : vector<1x512xi32>
    %c0_i32_113 = arith.constant 0 : i32
    %275 = vector.broadcast %c0_i32_113 : i32 to vector<1x512xi32>
    %276 = arith.cmpi sge, %274, %275 : vector<1x512xi32>
    %277 = arith.andi %272, %276 : vector<1x512xi1>
    %c-2_i32_114 = arith.constant -2 : i32
    %278 = vector.broadcast %c-2_i32_114 : i32 to vector<1x512xi32>
    %279 = arith.addi %1, %278 : vector<1x512xi32>
    %c16_i32_115 = arith.constant 16 : i32
    %280 = vector.broadcast %c16_i32_115 : i32 to vector<1x512xi32>
    %281 = arith.cmpi slt, %279, %280 : vector<1x512xi32>
    %282 = arith.andi %277, %281 : vector<1x512xi1>
    %cst_116 = arith.constant 0.000000e+00 : f32
    %283 = vector.shape_cast %282 : vector<1x512xi1> to vector<1x512xi1>
    %284 = vector.broadcast %283 : vector<1x512xi1> to vector<4x512xi1>
    %285 = vector.broadcast %cst_116 : f32 to vector<4x512xf32>
    %286 = arith.select %284, %263, %285 : vector<4x512xi1>, vector<4x512xf32>
    %c40 = arith.constant 40 : index
    %c0_117 = arith.constant 0 : index
    %287 = vector.load %arg12[%c40, %c0_117] : memref<100x512xf32, #tpu.memory_space<vmem>>, vector<4x512xf32>
    tpu.vector_store %arg12[%c40, %c0_117], %286 {strides = array<i32>} : memref<100x512xf32, #tpu.memory_space<vmem>>, vector<4x512xf32>,
    %c1_i32_118 = arith.constant 1 : i32
    %288 = tpu.dynamic_rotate %2 by %c1_i32_118 dim 1 : vector<4x512xf32>, i32 -> vector<4x512xf32>
    %c0_i32_119 = arith.constant 0 : i32
    %289 = vector.broadcast %c0_i32_119 : i32 to vector<1x512xi32>
    %290 = arith.addi %0, %289 : vector<1x512xi32>
    %c0_i32_120 = arith.constant 0 : i32
    %291 = vector.broadcast %c0_i32_120 : i32 to vector<1x512xi32>
    %292 = arith.cmpi sge, %290, %291 : vector<1x512xi32>
    %c0_i32_121 = arith.constant 0 : i32
    %293 = vector.broadcast %c0_i32_121 : i32 to vector<1x512xi32>
    %294 = arith.addi %0, %293 : vector<1x512xi32>
    %c16_i32_122 = arith.constant 16 : i32
    %295 = vector.broadcast %c16_i32_122 : i32 to vector<1x512xi32>
    %296 = arith.cmpi slt, %294, %295 : vector<1x512xi32>
    %297 = arith.andi %292, %296 : vector<1x512xi1>
    %c-1_i32_123 = arith.constant -1 : i32
    %298 = vector.broadcast %c-1_i32_123 : i32 to vector<1x512xi32>
    %299 = arith.addi %1, %298 : vector<1x512xi32>
    %c0_i32_124 = arith.constant 0 : i32
    %300 = vector.broadcast %c0_i32_124 : i32 to vector<1x512xi32>
    %301 = arith.cmpi sge, %299, %300 : vector<1x512xi32>
    %302 = arith.andi %297, %301 : vector<1x512xi1>
    %c-1_i32_125 = arith.constant -1 : i32
    %303 = vector.broadcast %c-1_i32_125 : i32 to vector<1x512xi32>
    %304 = arith.addi %1, %303 : vector<1x512xi32>
    %c16_i32_126 = arith.constant 16 : i32
    %305 = vector.broadcast %c16_i32_126 : i32 to vector<1x512xi32>
    %306 = arith.cmpi slt, %304, %305 : vector<1x512xi32>
    %307 = arith.andi %302, %306 : vector<1x512xi1>
    %cst_127 = arith.constant 0.000000e+00 : f32
    %308 = vector.shape_cast %307 : vector<1x512xi1> to vector<1x512xi1>
    %309 = vector.broadcast %308 : vector<1x512xi1> to vector<4x512xi1>
    %310 = vector.broadcast %cst_127 : f32 to vector<4x512xf32>
    %311 = arith.select %309, %288, %310 : vector<4x512xi1>, vector<4x512xf32>
    %c44 = arith.constant 44 : index
    %c0_128 = arith.constant 0 : index
    %312 = vector.load %arg12[%c44, %c0_128] : memref<100x512xf32, #tpu.memory_space<vmem>>, vector<4x512xf32>
    tpu.vector_store %arg12[%c44, %c0_128], %311 {strides = array<i32>} : memref<100x512xf32, #tpu.memory_space<vmem>>, vector<4x512xf32>,
    %c0_i32_129 = arith.constant 0 : i32
    %313 = vector.broadcast %c0_i32_129 : i32 to vector<1x512xi32>
    %314 = arith.addi %0, %313 : vector<1x512xi32>
    %c0_i32_130 = arith.constant 0 : i32
    %315 = vector.broadcast %c0_i32_130 : i32 to vector<1x512xi32>
    %316 = arith.cmpi sge, %314, %315 : vector<1x512xi32>
    %c0_i32_131 = arith.constant 0 : i32
    %317 = vector.broadcast %c0_i32_131 : i32 to vector<1x512xi32>
    %318 = arith.addi %0, %317 : vector<1x512xi32>
    %c16_i32_132 = arith.constant 16 : i32
    %319 = vector.broadcast %c16_i32_132 : i32 to vector<1x512xi32>
    %320 = arith.cmpi slt, %318, %319 : vector<1x512xi32>
    %321 = arith.andi %316, %320 : vector<1x512xi1>
    %c0_i32_133 = arith.constant 0 : i32
    %322 = vector.broadcast %c0_i32_133 : i32 to vector<1x512xi32>
    %323 = arith.addi %1, %322 : vector<1x512xi32>
    %c0_i32_134 = arith.constant 0 : i32
    %324 = vector.broadcast %c0_i32_134 : i32 to vector<1x512xi32>
    %325 = arith.cmpi sge, %323, %324 : vector<1x512xi32>
    %326 = arith.andi %321, %325 : vector<1x512xi1>
    %c0_i32_135 = arith.constant 0 : i32
    %327 = vector.broadcast %c0_i32_135 : i32 to vector<1x512xi32>
    %328 = arith.addi %1, %327 : vector<1x512xi32>
    %c16_i32_136 = arith.constant 16 : i32
    %329 = vector.broadcast %c16_i32_136 : i32 to vector<1x512xi32>
    %330 = arith.cmpi slt, %328, %329 : vector<1x512xi32>
    %331 = arith.andi %326, %330 : vector<1x512xi1>
    %cst_137 = arith.constant 0.000000e+00 : f32
    %332 = vector.shape_cast %331 : vector<1x512xi1> to vector<1x512xi1>
    %333 = vector.broadcast %332 : vector<1x512xi1> to vector<4x512xi1>
    %334 = vector.broadcast %cst_137 : f32 to vector<4x512xf32>
    %335 = arith.select %333, %2, %334 : vector<4x512xi1>, vector<4x512xf32>
    %c48 = arith.constant 48 : index
    %c0_138 = arith.constant 0 : index
    %336 = vector.load %arg12[%c48, %c0_138] : memref<100x512xf32, #tpu.memory_space<vmem>>, vector<4x512xf32>
    tpu.vector_store %arg12[%c48, %c0_138], %335 {strides = array<i32>} : memref<100x512xf32, #tpu.memory_space<vmem>>, vector<4x512xf32>,
    %c511_i32 = arith.constant 511 : i32
    %337 = tpu.dynamic_rotate %2 by %c511_i32 dim 1 : vector<4x512xf32>, i32 -> vector<4x512xf32>
    %c0_i32_139 = arith.constant 0 : i32
    %338 = vector.broadcast %c0_i32_139 : i32 to vector<1x512xi32>
    %339 = arith.addi %0, %338 : vector<1x512xi32>
    %c0_i32_140 = arith.constant 0 : i32
    %340 = vector.broadcast %c0_i32_140 : i32 to vector<1x512xi32>
    %341 = arith.cmpi sge, %339, %340 : vector<1x512xi32>
    %c0_i32_141 = arith.constant 0 : i32
    %342 = vector.broadcast %c0_i32_141 : i32 to vector<1x512xi32>
    %343 = arith.addi %0, %342 : vector<1x512xi32>
    %c16_i32_142 = arith.constant 16 : i32
    %344 = vector.broadcast %c16_i32_142 : i32 to vector<1x512xi32>
    %345 = arith.cmpi slt, %343, %344 : vector<1x512xi32>
    %346 = arith.andi %341, %345 : vector<1x512xi1>
    %c1_i32_143 = arith.constant 1 : i32
    %347 = vector.broadcast %c1_i32_143 : i32 to vector<1x512xi32>
    %348 = arith.addi %1, %347 : vector<1x512xi32>
    %c0_i32_144 = arith.constant 0 : i32
    %349 = vector.broadcast %c0_i32_144 : i32 to vector<1x512xi32>
    %350 = arith.cmpi sge, %348, %349 : vector<1x512xi32>
    %351 = arith.andi %346, %350 : vector<1x512xi1>
    %c1_i32_145 = arith.constant 1 : i32
    %352 = vector.broadcast %c1_i32_145 : i32 to vector<1x512xi32>
    %353 = arith.addi %1, %352 : vector<1x512xi32>
    %c16_i32_146 = arith.constant 16 : i32
    %354 = vector.broadcast %c16_i32_146 : i32 to vector<1x512xi32>
    %355 = arith.cmpi slt, %353, %354 : vector<1x512xi32>
    %356 = arith.andi %351, %355 : vector<1x512xi1>
    %cst_147 = arith.constant 0.000000e+00 : f32
    %357 = vector.shape_cast %356 : vector<1x512xi1> to vector<1x512xi1>
    %358 = vector.broadcast %357 : vector<1x512xi1> to vector<4x512xi1>
    %359 = vector.broadcast %cst_147 : f32 to vector<4x512xf32>
    %360 = arith.select %358, %337, %359 : vector<4x512xi1>, vector<4x512xf32>
    %c52 = arith.constant 52 : index
    %c0_148 = arith.constant 0 : index
    %361 = vector.load %arg12[%c52, %c0_148] : memref<100x512xf32, #tpu.memory_space<vmem>>, vector<4x512xf32>
    tpu.vector_store %arg12[%c52, %c0_148], %360 {strides = array<i32>} : memref<100x512xf32, #tpu.memory_space<vmem>>, vector<4x512xf32>,
    %c510_i32 = arith.constant 510 : i32
    %362 = tpu.dynamic_rotate %2 by %c510_i32 dim 1 : vector<4x512xf32>, i32 -> vector<4x512xf32>
    %c0_i32_149 = arith.constant 0 : i32
    %363 = vector.broadcast %c0_i32_149 : i32 to vector<1x512xi32>
    %364 = arith.addi %0, %363 : vector<1x512xi32>
    %c0_i32_150 = arith.constant 0 : i32
    %365 = vector.broadcast %c0_i32_150 : i32 to vector<1x512xi32>
    %366 = arith.cmpi sge, %364, %365 : vector<1x512xi32>
    %c0_i32_151 = arith.constant 0 : i32
    %367 = vector.broadcast %c0_i32_151 : i32 to vector<1x512xi32>
    %368 = arith.addi %0, %367 : vector<1x512xi32>
    %c16_i32_152 = arith.constant 16 : i32
    %369 = vector.broadcast %c16_i32_152 : i32 to vector<1x512xi32>
    %370 = arith.cmpi slt, %368, %369 : vector<1x512xi32>
    %371 = arith.andi %366, %370 : vector<1x512xi1>
    %c2_i32_153 = arith.constant 2 : i32
    %372 = vector.broadcast %c2_i32_153 : i32 to vector<1x512xi32>
    %373 = arith.addi %1, %372 : vector<1x512xi32>
    %c0_i32_154 = arith.constant 0 : i32
    %374 = vector.broadcast %c0_i32_154 : i32 to vector<1x512xi32>
    %375 = arith.cmpi sge, %373, %374 : vector<1x512xi32>
    %376 = arith.andi %371, %375 : vector<1x512xi1>
    %c2_i32_155 = arith.constant 2 : i32
    %377 = vector.broadcast %c2_i32_155 : i32 to vector<1x512xi32>
    %378 = arith.addi %1, %377 : vector<1x512xi32>
    %c16_i32_156 = arith.constant 16 : i32
    %379 = vector.broadcast %c16_i32_156 : i32 to vector<1x512xi32>
    %380 = arith.cmpi slt, %378, %379 : vector<1x512xi32>
    %381 = arith.andi %376, %380 : vector<1x512xi1>
    %cst_157 = arith.constant 0.000000e+00 : f32
    %382 = vector.shape_cast %381 : vector<1x512xi1> to vector<1x512xi1>
    %383 = vector.broadcast %382 : vector<1x512xi1> to vector<4x512xi1>
    %384 = vector.broadcast %cst_157 : f32 to vector<4x512xf32>
    %385 = arith.select %383, %362, %384 : vector<4x512xi1>, vector<4x512xf32>
    %c56 = arith.constant 56 : index
    %c0_158 = arith.constant 0 : index
    %386 = vector.load %arg12[%c56, %c0_158] : memref<100x512xf32, #tpu.memory_space<vmem>>, vector<4x512xf32>
    tpu.vector_store %arg12[%c56, %c0_158], %385 {strides = array<i32>} : memref<100x512xf32, #tpu.memory_space<vmem>>, vector<4x512xf32>,
    %c498_i32 = arith.constant 498 : i32
    %387 = tpu.dynamic_rotate %2 by %c498_i32 dim 1 : vector<4x512xf32>, i32 -> vector<4x512xf32>
    %c1_i32_159 = arith.constant 1 : i32
    %388 = vector.broadcast %c1_i32_159 : i32 to vector<1x512xi32>
    %389 = arith.addi %0, %388 : vector<1x512xi32>
    %c0_i32_160 = arith.constant 0 : i32
    %390 = vector.broadcast %c0_i32_160 : i32 to vector<1x512xi32>
    %391 = arith.cmpi sge, %389, %390 : vector<1x512xi32>
    %c1_i32_161 = arith.constant 1 : i32
    %392 = vector.broadcast %c1_i32_161 : i32 to vector<1x512xi32>
    %393 = arith.addi %0, %392 : vector<1x512xi32>
    %c16_i32_162 = arith.constant 16 : i32
    %394 = vector.broadcast %c16_i32_162 : i32 to vector<1x512xi32>
    %395 = arith.cmpi slt, %393, %394 : vector<1x512xi32>
    %396 = arith.andi %391, %395 : vector<1x512xi1>
    %c-2_i32_163 = arith.constant -2 : i32
    %397 = vector.broadcast %c-2_i32_163 : i32 to vector<1x512xi32>
    %398 = arith.addi %1, %397 : vector<1x512xi32>
    %c0_i32_164 = arith.constant 0 : i32
    %399 = vector.broadcast %c0_i32_164 : i32 to vector<1x512xi32>
    %400 = arith.cmpi sge, %398, %399 : vector<1x512xi32>
    %401 = arith.andi %396, %400 : vector<1x512xi1>
    %c-2_i32_165 = arith.constant -2 : i32
    %402 = vector.broadcast %c-2_i32_165 : i32 to vector<1x512xi32>
    %403 = arith.addi %1, %402 : vector<1x512xi32>
    %c16_i32_166 = arith.constant 16 : i32
    %404 = vector.broadcast %c16_i32_166 : i32 to vector<1x512xi32>
    %405 = arith.cmpi slt, %403, %404 : vector<1x512xi32>
    %406 = arith.andi %401, %405 : vector<1x512xi1>
    %cst_167 = arith.constant 0.000000e+00 : f32
    %407 = vector.shape_cast %406 : vector<1x512xi1> to vector<1x512xi1>
    %408 = vector.broadcast %407 : vector<1x512xi1> to vector<4x512xi1>
    %409 = vector.broadcast %cst_167 : f32 to vector<4x512xf32>
    %410 = arith.select %408, %387, %409 : vector<4x512xi1>, vector<4x512xf32>
    %c60 = arith.constant 60 : index
    %c0_168 = arith.constant 0 : index
    %411 = vector.load %arg12[%c60, %c0_168] : memref<100x512xf32, #tpu.memory_space<vmem>>, vector<4x512xf32>
    tpu.vector_store %arg12[%c60, %c0_168], %410 {strides = array<i32>} : memref<100x512xf32, #tpu.memory_space<vmem>>, vector<4x512xf32>,
    %c497_i32 = arith.constant 497 : i32
    %412 = tpu.dynamic_rotate %2 by %c497_i32 dim 1 : vector<4x512xf32>, i32 -> vector<4x512xf32>
    %c1_i32_169 = arith.constant 1 : i32
    %413 = vector.broadcast %c1_i32_169 : i32 to vector<1x512xi32>
    %414 = arith.addi %0, %413 : vector<1x512xi32>
    %c0_i32_170 = arith.constant 0 : i32
    %415 = vector.broadcast %c0_i32_170 : i32 to vector<1x512xi32>
    %416 = arith.cmpi sge, %414, %415 : vector<1x512xi32>
    %c1_i32_171 = arith.constant 1 : i32
    %417 = vector.broadcast %c1_i32_171 : i32 to vector<1x512xi32>
    %418 = arith.addi %0, %417 : vector<1x512xi32>
    %c16_i32_172 = arith.constant 16 : i32
    %419 = vector.broadcast %c16_i32_172 : i32 to vector<1x512xi32>
    %420 = arith.cmpi slt, %418, %419 : vector<1x512xi32>
    %421 = arith.andi %416, %420 : vector<1x512xi1>
    %c-1_i32_173 = arith.constant -1 : i32
    %422 = vector.broadcast %c-1_i32_173 : i32 to vector<1x512xi32>
    %423 = arith.addi %1, %422 : vector<1x512xi32>
    %c0_i32_174 = arith.constant 0 : i32
    %424 = vector.broadcast %c0_i32_174 : i32 to vector<1x512xi32>
    %425 = arith.cmpi sge, %423, %424 : vector<1x512xi32>
    %426 = arith.andi %421, %425 : vector<1x512xi1>
    %c-1_i32_175 = arith.constant -1 : i32
    %427 = vector.broadcast %c-1_i32_175 : i32 to vector<1x512xi32>
    %428 = arith.addi %1, %427 : vector<1x512xi32>
    %c16_i32_176 = arith.constant 16 : i32
    %429 = vector.broadcast %c16_i32_176 : i32 to vector<1x512xi32>
    %430 = arith.cmpi slt, %428, %429 : vector<1x512xi32>
    %431 = arith.andi %426, %430 : vector<1x512xi1>
    %cst_177 = arith.constant 0.000000e+00 : f32
    %432 = vector.shape_cast %431 : vector<1x512xi1> to vector<1x512xi1>
    %433 = vector.broadcast %432 : vector<1x512xi1> to vector<4x512xi1>
    %434 = vector.broadcast %cst_177 : f32 to vector<4x512xf32>
    %435 = arith.select %433, %412, %434 : vector<4x512xi1>, vector<4x512xf32>
    %c64 = arith.constant 64 : index
    %c0_178 = arith.constant 0 : index
    %436 = vector.load %arg12[%c64, %c0_178] : memref<100x512xf32, #tpu.memory_space<vmem>>, vector<4x512xf32>
    tpu.vector_store %arg12[%c64, %c0_178], %435 {strides = array<i32>} : memref<100x512xf32, #tpu.memory_space<vmem>>, vector<4x512xf32>,
    %c496_i32 = arith.constant 496 : i32
    %437 = tpu.dynamic_rotate %2 by %c496_i32 dim 1 : vector<4x512xf32>, i32 -> vector<4x512xf32>
    %c1_i32_179 = arith.constant 1 : i32
    %438 = vector.broadcast %c1_i32_179 : i32 to vector<1x512xi32>
    %439 = arith.addi %0, %438 : vector<1x512xi32>
    %c0_i32_180 = arith.constant 0 : i32
    %440 = vector.broadcast %c0_i32_180 : i32 to vector<1x512xi32>
    %441 = arith.cmpi sge, %439, %440 : vector<1x512xi32>
    %c1_i32_181 = arith.constant 1 : i32
    %442 = vector.broadcast %c1_i32_181 : i32 to vector<1x512xi32>
    %443 = arith.addi %0, %442 : vector<1x512xi32>
    %c16_i32_182 = arith.constant 16 : i32
    %444 = vector.broadcast %c16_i32_182 : i32 to vector<1x512xi32>
    %445 = arith.cmpi slt, %443, %444 : vector<1x512xi32>
    %446 = arith.andi %441, %445 : vector<1x512xi1>
    %c0_i32_183 = arith.constant 0 : i32
    %447 = vector.broadcast %c0_i32_183 : i32 to vector<1x512xi32>
    %448 = arith.addi %1, %447 : vector<1x512xi32>
    %c0_i32_184 = arith.constant 0 : i32
    %449 = vector.broadcast %c0_i32_184 : i32 to vector<1x512xi32>
    %450 = arith.cmpi sge, %448, %449 : vector<1x512xi32>
    %451 = arith.andi %446, %450 : vector<1x512xi1>
    %c0_i32_185 = arith.constant 0 : i32
    %452 = vector.broadcast %c0_i32_185 : i32 to vector<1x512xi32>
    %453 = arith.addi %1, %452 : vector<1x512xi32>
    %c16_i32_186 = arith.constant 16 : i32
    %454 = vector.broadcast %c16_i32_186 : i32 to vector<1x512xi32>
    %455 = arith.cmpi slt, %453, %454 : vector<1x512xi32>
    %456 = arith.andi %451, %455 : vector<1x512xi1>
    %cst_187 = arith.constant 0.000000e+00 : f32
    %457 = vector.shape_cast %456 : vector<1x512xi1> to vector<1x512xi1>
    %458 = vector.broadcast %457 : vector<1x512xi1> to vector<4x512xi1>
    %459 = vector.broadcast %cst_187 : f32 to vector<4x512xf32>
    %460 = arith.select %458, %437, %459 : vector<4x512xi1>, vector<4x512xf32>
    %c68 = arith.constant 68 : index
    %c0_188 = arith.constant 0 : index
    %461 = vector.load %arg12[%c68, %c0_188] : memref<100x512xf32, #tpu.memory_space<vmem>>, vector<4x512xf32>
    tpu.vector_store %arg12[%c68, %c0_188], %460 {strides = array<i32>} : memref<100x512xf32, #tpu.memory_space<vmem>>, vector<4x512xf32>,
    %c495_i32 = arith.constant 495 : i32
    %462 = tpu.dynamic_rotate %2 by %c495_i32 dim 1 : vector<4x512xf32>, i32 -> vector<4x512xf32>
    %c1_i32_189 = arith.constant 1 : i32
    %463 = vector.broadcast %c1_i32_189 : i32 to vector<1x512xi32>
    %464 = arith.addi %0, %463 : vector<1x512xi32>
    %c0_i32_190 = arith.constant 0 : i32
    %465 = vector.broadcast %c0_i32_190 : i32 to vector<1x512xi32>
    %466 = arith.cmpi sge, %464, %465 : vector<1x512xi32>
    %c1_i32_191 = arith.constant 1 : i32
    %467 = vector.broadcast %c1_i32_191 : i32 to vector<1x512xi32>
    %468 = arith.addi %0, %467 : vector<1x512xi32>
    %c16_i32_192 = arith.constant 16 : i32
    %469 = vector.broadcast %c16_i32_192 : i32 to vector<1x512xi32>
    %470 = arith.cmpi slt, %468, %469 : vector<1x512xi32>
    %471 = arith.andi %466, %470 : vector<1x512xi1>
    %c1_i32_193 = arith.constant 1 : i32
    %472 = vector.broadcast %c1_i32_193 : i32 to vector<1x512xi32>
    %473 = arith.addi %1, %472 : vector<1x512xi32>
    %c0_i32_194 = arith.constant 0 : i32
    %474 = vector.broadcast %c0_i32_194 : i32 to vector<1x512xi32>
    %475 = arith.cmpi sge, %473, %474 : vector<1x512xi32>
    %476 = arith.andi %471, %475 : vector<1x512xi1>
    %c1_i32_195 = arith.constant 1 : i32
    %477 = vector.broadcast %c1_i32_195 : i32 to vector<1x512xi32>
    %478 = arith.addi %1, %477 : vector<1x512xi32>
    %c16_i32_196 = arith.constant 16 : i32
    %479 = vector.broadcast %c16_i32_196 : i32 to vector<1x512xi32>
    %480 = arith.cmpi slt, %478, %479 : vector<1x512xi32>
    %481 = arith.andi %476, %480 : vector<1x512xi1>
    %cst_197 = arith.constant 0.000000e+00 : f32
    %482 = vector.shape_cast %481 : vector<1x512xi1> to vector<1x512xi1>
    %483 = vector.broadcast %482 : vector<1x512xi1> to vector<4x512xi1>
    %484 = vector.broadcast %cst_197 : f32 to vector<4x512xf32>
    %485 = arith.select %483, %462, %484 : vector<4x512xi1>, vector<4x512xf32>
    %c72 = arith.constant 72 : index
    %c0_198 = arith.constant 0 : index
    %486 = vector.load %arg12[%c72, %c0_198] : memref<100x512xf32, #tpu.memory_space<vmem>>, vector<4x512xf32>
    tpu.vector_store %arg12[%c72, %c0_198], %485 {strides = array<i32>} : memref<100x512xf32, #tpu.memory_space<vmem>>, vector<4x512xf32>,
    %c494_i32 = arith.constant 494 : i32
    %487 = tpu.dynamic_rotate %2 by %c494_i32 dim 1 : vector<4x512xf32>, i32 -> vector<4x512xf32>
    %c1_i32_199 = arith.constant 1 : i32
    %488 = vector.broadcast %c1_i32_199 : i32 to vector<1x512xi32>
    %489 = arith.addi %0, %488 : vector<1x512xi32>
    %c0_i32_200 = arith.constant 0 : i32
    %490 = vector.broadcast %c0_i32_200 : i32 to vector<1x512xi32>
    %491 = arith.cmpi sge, %489, %490 : vector<1x512xi32>
    %c1_i32_201 = arith.constant 1 : i32
    %492 = vector.broadcast %c1_i32_201 : i32 to vector<1x512xi32>
    %493 = arith.addi %0, %492 : vector<1x512xi32>
    %c16_i32_202 = arith.constant 16 : i32
    %494 = vector.broadcast %c16_i32_202 : i32 to vector<1x512xi32>
    %495 = arith.cmpi slt, %493, %494 : vector<1x512xi32>
    %496 = arith.andi %491, %495 : vector<1x512xi1>
    %c2_i32_203 = arith.constant 2 : i32
    %497 = vector.broadcast %c2_i32_203 : i32 to vector<1x512xi32>
    %498 = arith.addi %1, %497 : vector<1x512xi32>
    %c0_i32_204 = arith.constant 0 : i32
    %499 = vector.broadcast %c0_i32_204 : i32 to vector<1x512xi32>
    %500 = arith.cmpi sge, %498, %499 : vector<1x512xi32>
    %501 = arith.andi %496, %500 : vector<1x512xi1>
    %c2_i32_205 = arith.constant 2 : i32
    %502 = vector.broadcast %c2_i32_205 : i32 to vector<1x512xi32>
    %503 = arith.addi %1, %502 : vector<1x512xi32>
    %c16_i32_206 = arith.constant 16 : i32
    %504 = vector.broadcast %c16_i32_206 : i32 to vector<1x512xi32>
    %505 = arith.cmpi slt, %503, %504 : vector<1x512xi32>
    %506 = arith.andi %501, %505 : vector<1x512xi1>
    %cst_207 = arith.constant 0.000000e+00 : f32
    %507 = vector.shape_cast %506 : vector<1x512xi1> to vector<1x512xi1>
    %508 = vector.broadcast %507 : vector<1x512xi1> to vector<4x512xi1>
    %509 = vector.broadcast %cst_207 : f32 to vector<4x512xf32>
    %510 = arith.select %508, %487, %509 : vector<4x512xi1>, vector<4x512xf32>
    %c76 = arith.constant 76 : index
    %c0_208 = arith.constant 0 : index
    %511 = vector.load %arg12[%c76, %c0_208] : memref<100x512xf32, #tpu.memory_space<vmem>>, vector<4x512xf32>
    tpu.vector_store %arg12[%c76, %c0_208], %510 {strides = array<i32>} : memref<100x512xf32, #tpu.memory_space<vmem>>, vector<4x512xf32>,
    %c482_i32 = arith.constant 482 : i32
    %512 = tpu.dynamic_rotate %2 by %c482_i32 dim 1 : vector<4x512xf32>, i32 -> vector<4x512xf32>
    %c2_i32_209 = arith.constant 2 : i32
    %513 = vector.broadcast %c2_i32_209 : i32 to vector<1x512xi32>
    %514 = arith.addi %0, %513 : vector<1x512xi32>
    %c0_i32_210 = arith.constant 0 : i32
    %515 = vector.broadcast %c0_i32_210 : i32 to vector<1x512xi32>
    %516 = arith.cmpi sge, %514, %515 : vector<1x512xi32>
    %c2_i32_211 = arith.constant 2 : i32
    %517 = vector.broadcast %c2_i32_211 : i32 to vector<1x512xi32>
    %518 = arith.addi %0, %517 : vector<1x512xi32>
    %c16_i32_212 = arith.constant 16 : i32
    %519 = vector.broadcast %c16_i32_212 : i32 to vector<1x512xi32>
    %520 = arith.cmpi slt, %518, %519 : vector<1x512xi32>
    %521 = arith.andi %516, %520 : vector<1x512xi1>
    %c-2_i32_213 = arith.constant -2 : i32
    %522 = vector.broadcast %c-2_i32_213 : i32 to vector<1x512xi32>
    %523 = arith.addi %1, %522 : vector<1x512xi32>
    %c0_i32_214 = arith.constant 0 : i32
    %524 = vector.broadcast %c0_i32_214 : i32 to vector<1x512xi32>
    %525 = arith.cmpi sge, %523, %524 : vector<1x512xi32>
    %526 = arith.andi %521, %525 : vector<1x512xi1>
    %c-2_i32_215 = arith.constant -2 : i32
    %527 = vector.broadcast %c-2_i32_215 : i32 to vector<1x512xi32>
    %528 = arith.addi %1, %527 : vector<1x512xi32>
    %c16_i32_216 = arith.constant 16 : i32
    %529 = vector.broadcast %c16_i32_216 : i32 to vector<1x512xi32>
    %530 = arith.cmpi slt, %528, %529 : vector<1x512xi32>
    %531 = arith.andi %526, %530 : vector<1x512xi1>
    %cst_217 = arith.constant 0.000000e+00 : f32
    %532 = vector.shape_cast %531 : vector<1x512xi1> to vector<1x512xi1>
    %533 = vector.broadcast %532 : vector<1x512xi1> to vector<4x512xi1>
    %534 = vector.broadcast %cst_217 : f32 to vector<4x512xf32>
    %535 = arith.select %533, %512, %534 : vector<4x512xi1>, vector<4x512xf32>
    %c80 = arith.constant 80 : index
    %c0_218 = arith.constant 0 : index
    %536 = vector.load %arg12[%c80, %c0_218] : memref<100x512xf32, #tpu.memory_space<vmem>>, vector<4x512xf32>
    tpu.vector_store %arg12[%c80, %c0_218], %535 {strides = array<i32>} : memref<100x512xf32, #tpu.memory_space<vmem>>, vector<4x512xf32>,
    %c481_i32 = arith.constant 481 : i32
    %537 = tpu.dynamic_rotate %2 by %c481_i32 dim 1 : vector<4x512xf32>, i32 -> vector<4x512xf32>
    %c2_i32_219 = arith.constant 2 : i32
    %538 = vector.broadcast %c2_i32_219 : i32 to vector<1x512xi32>
    %539 = arith.addi %0, %538 : vector<1x512xi32>
    %c0_i32_220 = arith.constant 0 : i32
    %540 = vector.broadcast %c0_i32_220 : i32 to vector<1x512xi32>
    %541 = arith.cmpi sge, %539, %540 : vector<1x512xi32>
    %c2_i32_221 = arith.constant 2 : i32
    %542 = vector.broadcast %c2_i32_221 : i32 to vector<1x512xi32>
    %543 = arith.addi %0, %542 : vector<1x512xi32>
    %c16_i32_222 = arith.constant 16 : i32
    %544 = vector.broadcast %c16_i32_222 : i32 to vector<1x512xi32>
    %545 = arith.cmpi slt, %543, %544 : vector<1x512xi32>
    %546 = arith.andi %541, %545 : vector<1x512xi1>
    %c-1_i32_223 = arith.constant -1 : i32
    %547 = vector.broadcast %c-1_i32_223 : i32 to vector<1x512xi32>
    %548 = arith.addi %1, %547 : vector<1x512xi32>
    %c0_i32_224 = arith.constant 0 : i32
    %549 = vector.broadcast %c0_i32_224 : i32 to vector<1x512xi32>
    %550 = arith.cmpi sge, %548, %549 : vector<1x512xi32>
    %551 = arith.andi %546, %550 : vector<1x512xi1>
    %c-1_i32_225 = arith.constant -1 : i32
    %552 = vector.broadcast %c-1_i32_225 : i32 to vector<1x512xi32>
    %553 = arith.addi %1, %552 : vector<1x512xi32>
    %c16_i32_226 = arith.constant 16 : i32
    %554 = vector.broadcast %c16_i32_226 : i32 to vector<1x512xi32>
    %555 = arith.cmpi slt, %553, %554 : vector<1x512xi32>
    %556 = arith.andi %551, %555 : vector<1x512xi1>
    %cst_227 = arith.constant 0.000000e+00 : f32
    %557 = vector.shape_cast %556 : vector<1x512xi1> to vector<1x512xi1>
    %558 = vector.broadcast %557 : vector<1x512xi1> to vector<4x512xi1>
    %559 = vector.broadcast %cst_227 : f32 to vector<4x512xf32>
    %560 = arith.select %558, %537, %559 : vector<4x512xi1>, vector<4x512xf32>
    %c84 = arith.constant 84 : index
    %c0_228 = arith.constant 0 : index
    %561 = vector.load %arg12[%c84, %c0_228] : memref<100x512xf32, #tpu.memory_space<vmem>>, vector<4x512xf32>
    tpu.vector_store %arg12[%c84, %c0_228], %560 {strides = array<i32>} : memref<100x512xf32, #tpu.memory_space<vmem>>, vector<4x512xf32>,
    %c480_i32 = arith.constant 480 : i32
    %562 = tpu.dynamic_rotate %2 by %c480_i32 dim 1 : vector<4x512xf32>, i32 -> vector<4x512xf32>
    %c2_i32_229 = arith.constant 2 : i32
    %563 = vector.broadcast %c2_i32_229 : i32 to vector<1x512xi32>
    %564 = arith.addi %0, %563 : vector<1x512xi32>
    %c0_i32_230 = arith.constant 0 : i32
    %565 = vector.broadcast %c0_i32_230 : i32 to vector<1x512xi32>
    %566 = arith.cmpi sge, %564, %565 : vector<1x512xi32>
    %c2_i32_231 = arith.constant 2 : i32
    %567 = vector.broadcast %c2_i32_231 : i32 to vector<1x512xi32>
    %568 = arith.addi %0, %567 : vector<1x512xi32>
    %c16_i32_232 = arith.constant 16 : i32
    %569 = vector.broadcast %c16_i32_232 : i32 to vector<1x512xi32>
    %570 = arith.cmpi slt, %568, %569 : vector<1x512xi32>
    %571 = arith.andi %566, %570 : vector<1x512xi1>
    %c0_i32_233 = arith.constant 0 : i32
    %572 = vector.broadcast %c0_i32_233 : i32 to vector<1x512xi32>
    %573 = arith.addi %1, %572 : vector<1x512xi32>
    %c0_i32_234 = arith.constant 0 : i32
    %574 = vector.broadcast %c0_i32_234 : i32 to vector<1x512xi32>
    %575 = arith.cmpi sge, %573, %574 : vector<1x512xi32>
    %576 = arith.andi %571, %575 : vector<1x512xi1>
    %c0_i32_235 = arith.constant 0 : i32
    %577 = vector.broadcast %c0_i32_235 : i32 to vector<1x512xi32>
    %578 = arith.addi %1, %577 : vector<1x512xi32>
    %c16_i32_236 = arith.constant 16 : i32
    %579 = vector.broadcast %c16_i32_236 : i32 to vector<1x512xi32>
    %580 = arith.cmpi slt, %578, %579 : vector<1x512xi32>
    %581 = arith.andi %576, %580 : vector<1x512xi1>
    %cst_237 = arith.constant 0.000000e+00 : f32
    %582 = vector.shape_cast %581 : vector<1x512xi1> to vector<1x512xi1>
    %583 = vector.broadcast %582 : vector<1x512xi1> to vector<4x512xi1>
    %584 = vector.broadcast %cst_237 : f32 to vector<4x512xf32>
    %585 = arith.select %583, %562, %584 : vector<4x512xi1>, vector<4x512xf32>
    %c88 = arith.constant 88 : index
    %c0_238 = arith.constant 0 : index
    %586 = vector.load %arg12[%c88, %c0_238] : memref<100x512xf32, #tpu.memory_space<vmem>>, vector<4x512xf32>
    tpu.vector_store %arg12[%c88, %c0_238], %585 {strides = array<i32>} : memref<100x512xf32, #tpu.memory_space<vmem>>, vector<4x512xf32>,
    %c479_i32 = arith.constant 479 : i32
    %587 = tpu.dynamic_rotate %2 by %c479_i32 dim 1 : vector<4x512xf32>, i32 -> vector<4x512xf32>
    %c2_i32_239 = arith.constant 2 : i32
    %588 = vector.broadcast %c2_i32_239 : i32 to vector<1x512xi32>
    %589 = arith.addi %0, %588 : vector<1x512xi32>
    %c0_i32_240 = arith.constant 0 : i32
    %590 = vector.broadcast %c0_i32_240 : i32 to vector<1x512xi32>
    %591 = arith.cmpi sge, %589, %590 : vector<1x512xi32>
    %c2_i32_241 = arith.constant 2 : i32
    %592 = vector.broadcast %c2_i32_241 : i32 to vector<1x512xi32>
    %593 = arith.addi %0, %592 : vector<1x512xi32>
    %c16_i32_242 = arith.constant 16 : i32
    %594 = vector.broadcast %c16_i32_242 : i32 to vector<1x512xi32>
    %595 = arith.cmpi slt, %593, %594 : vector<1x512xi32>
    %596 = arith.andi %591, %595 : vector<1x512xi1>
    %c1_i32_243 = arith.constant 1 : i32
    %597 = vector.broadcast %c1_i32_243 : i32 to vector<1x512xi32>
    %598 = arith.addi %1, %597 : vector<1x512xi32>
    %c0_i32_244 = arith.constant 0 : i32
    %599 = vector.broadcast %c0_i32_244 : i32 to vector<1x512xi32>
    %600 = arith.cmpi sge, %598, %599 : vector<1x512xi32>
    %601 = arith.andi %596, %600 : vector<1x512xi1>
    %c1_i32_245 = arith.constant 1 : i32
    %602 = vector.broadcast %c1_i32_245 : i32 to vector<1x512xi32>
    %603 = arith.addi %1, %602 : vector<1x512xi32>
    %c16_i32_246 = arith.constant 16 : i32
    %604 = vector.broadcast %c16_i32_246 : i32 to vector<1x512xi32>
    %605 = arith.cmpi slt, %603, %604 : vector<1x512xi32>
    %606 = arith.andi %601, %605 : vector<1x512xi1>
    %cst_247 = arith.constant 0.000000e+00 : f32
    %607 = vector.shape_cast %606 : vector<1x512xi1> to vector<1x512xi1>
    %608 = vector.broadcast %607 : vector<1x512xi1> to vector<4x512xi1>
    %609 = vector.broadcast %cst_247 : f32 to vector<4x512xf32>
    %610 = arith.select %608, %587, %609 : vector<4x512xi1>, vector<4x512xf32>
    %c92 = arith.constant 92 : index
    %c0_248 = arith.constant 0 : index
    %611 = vector.load %arg12[%c92, %c0_248] : memref<100x512xf32, #tpu.memory_space<vmem>>, vector<4x512xf32>
    tpu.vector_store %arg12[%c92, %c0_248], %610 {strides = array<i32>} : memref<100x512xf32, #tpu.memory_space<vmem>>, vector<4x512xf32>,
    %c478_i32 = arith.constant 478 : i32
    %612 = tpu.dynamic_rotate %2 by %c478_i32 dim 1 : vector<4x512xf32>, i32 -> vector<4x512xf32>
    %c2_i32_249 = arith.constant 2 : i32
    %613 = vector.broadcast %c2_i32_249 : i32 to vector<1x512xi32>
    %614 = arith.addi %0, %613 : vector<1x512xi32>
    %c0_i32_250 = arith.constant 0 : i32
    %615 = vector.broadcast %c0_i32_250 : i32 to vector<1x512xi32>
    %616 = arith.cmpi sge, %614, %615 : vector<1x512xi32>
    %c2_i32_251 = arith.constant 2 : i32
    %617 = vector.broadcast %c2_i32_251 : i32 to vector<1x512xi32>
    %618 = arith.addi %0, %617 : vector<1x512xi32>
    %c16_i32_252 = arith.constant 16 : i32
    %619 = vector.broadcast %c16_i32_252 : i32 to vector<1x512xi32>
    %620 = arith.cmpi slt, %618, %619 : vector<1x512xi32>
    %621 = arith.andi %616, %620 : vector<1x512xi1>
    %c2_i32_253 = arith.constant 2 : i32
    %622 = vector.broadcast %c2_i32_253 : i32 to vector<1x512xi32>
    %623 = arith.addi %1, %622 : vector<1x512xi32>
    %c0_i32_254 = arith.constant 0 : i32
    %624 = vector.broadcast %c0_i32_254 : i32 to vector<1x512xi32>
    %625 = arith.cmpi sge, %623, %624 : vector<1x512xi32>
    %626 = arith.andi %621, %625 : vector<1x512xi1>
    %c2_i32_255 = arith.constant 2 : i32
    %627 = vector.broadcast %c2_i32_255 : i32 to vector<1x512xi32>
    %628 = arith.addi %1, %627 : vector<1x512xi32>
    %c16_i32_256 = arith.constant 16 : i32
    %629 = vector.broadcast %c16_i32_256 : i32 to vector<1x512xi32>
    %630 = arith.cmpi slt, %628, %629 : vector<1x512xi32>
    %631 = arith.andi %626, %630 : vector<1x512xi1>
    %cst_257 = arith.constant 0.000000e+00 : f32
    %632 = vector.shape_cast %631 : vector<1x512xi1> to vector<1x512xi1>
    %633 = vector.broadcast %632 : vector<1x512xi1> to vector<4x512xi1>
    %634 = vector.broadcast %cst_257 : f32 to vector<4x512xf32>
    %635 = arith.select %633, %612, %634 : vector<4x512xi1>, vector<4x512xf32>
    %c96 = arith.constant 96 : index
    %c0_258 = arith.constant 0 : index
    %636 = vector.load %arg12[%c96, %c0_258] : memref<100x512xf32, #tpu.memory_space<vmem>>, vector<4x512xf32>
    tpu.vector_store %arg12[%c96, %c0_258], %635 {strides = array<i32>} : memref<100x512xf32, #tpu.memory_space<vmem>>, vector<4x512xf32>,
    %c0_259 = arith.constant 0 : index
    %c0_260 = arith.constant 0 : index
    %637 = vector.load %arg5[%c0_259, %c0_260] : memref<8x100xf32, #tpu.memory_space<vmem>>, vector<8x100xf32>
    %c0_261 = arith.constant 0 : index
    %c0_262 = arith.constant 0 : index
    %638 = vector.load %arg12[%c0_261, %c0_262] : memref<100x512xf32, #tpu.memory_space<vmem>>, vector<100x512xf32>
    %cst_263 = arith.constant dense<0.000000e+00> : vector<8x512xf32>
    %639 = tpu.matmul %637, %638, %cst_263 {dimension_numbers = #tpu.dot_dimension_numbers<[1], [0], [0], [1], [0, 0, 1, 1], [], []>} : vector<8x100xf32>, vector<100x512xf32>, vector<8x512xf32> -> vector<8x512xf32>
    %c0_264 = arith.constant 0 : index
    %c0_265 = arith.constant 0 : index
    %640 = vector.load %arg6[%c0_264, %c0_265] : memref<8x1xf32, #tpu.memory_space<vmem>>, vector<8x1xf32>
    %641 = vector.broadcast %640 : vector<8x1xf32> to vector<8x512xf32>
    %642 = arith.addf %639, %641 : vector<8x512xf32>
    %cst_266 = arith.constant 0.000000e+00 : f32
    %643 = vector.broadcast %cst_266 : f32 to vector<8x512xf32>
    %644 = arith.cmpf ogt, %642, %643 : vector<8x512xf32>
    %cst_267 = arith.constant 0.00999999977 : f32
    %645 = vector.broadcast %cst_267 : f32 to vector<8x512xf32>
    %646 = arith.mulf %645, %642 : vector<8x512xf32>
    %647 = arith.select %644, %642, %646 : vector<8x512xi1>, vector<8x512xf32>
    %cst_268 = arith.constant dense<0.000000e+00> : vector<8xf32>
    %648 = vector.multi_reduction <add>, %647, %cst_268 [1] : vector<8x512xf32> to vector<8xf32>
    %649 = vector.shape_cast %648 : vector<8xf32> to vector<8x1xf32>
    %cst_269 = arith.constant 0.001953125 : f32
    %650 = vector.broadcast %cst_269 : f32 to vector<8x1xf32>
    %651 = arith.mulf %649, %650 : vector<8x1xf32>
    %652 = arith.mulf %647, %647 : vector<8x512xf32>
    %cst_270 = arith.constant dense<0.000000e+00> : vector<8xf32>
    %653 = vector.multi_reduction <add>, %652, %cst_270 [1] : vector<8x512xf32> to vector<8xf32>
    %654 = vector.shape_cast %653 : vector<8xf32> to vector<8x1xf32>
    %cst_271 = arith.constant 0.001953125 : f32
    %655 = vector.broadcast %cst_271 : f32 to vector<8x1xf32>
    %656 = arith.mulf %654, %655 : vector<8x1xf32>
    %657 = arith.mulf %651, %651 : vector<8x1xf32>
    %658 = arith.subf %656, %657 : vector<8x1xf32>
    %659 = vector.broadcast %651 : vector<8x1xf32> to vector<8x512xf32>
    %660 = arith.subf %647, %659 : vector<8x512xf32>
    %cst_272 = arith.constant 9.99999974E-6 : f32
    %661 = vector.broadcast %cst_272 : f32 to vector<8x1xf32>
    %662 = arith.addf %658, %661 : vector<8x1xf32>
    %663 = math.rsqrt %662 : vector<8x1xf32>
    %664 = vector.broadcast %663 : vector<8x1xf32> to vector<8x512xf32>
    %665 = arith.mulf %660, %664 : vector<8x512xf32>
    %c0_273 = arith.constant 0 : index
    %c0_274 = arith.constant 0 : index
    %666 = vector.load %arg7[%c0_273, %c0_274] : memref<8x1xf32, #tpu.memory_space<vmem>>, vector<8x1xf32>
    %667 = vector.broadcast %666 : vector<8x1xf32> to vector<8x512xf32>
    %668 = arith.mulf %665, %667 : vector<8x512xf32>
    %c0_275 = arith.constant 0 : index
    %c0_276 = arith.constant 0 : index
    %669 = vector.load %arg8[%c0_275, %c0_276] : memref<8x1xf32, #tpu.memory_space<vmem>>, vector<8x1xf32>
    %670 = vector.broadcast %669 : vector<8x1xf32> to vector<8x512xf32>
    %671 = arith.addf %668, %670 : vector<8x512xf32>
    %c51_i32 = arith.constant 51 : i32
    %672 = tpu.dynamic_rotate %671 by %c51_i32 dim 1 : vector<8x512xf32>, i32 -> vector<8x512xf32>
    %c-3_i32 = arith.constant -3 : i32
    %673 = vector.broadcast %c-3_i32 : i32 to vector<1x512xi32>
    %674 = arith.addi %0, %673 : vector<1x512xi32>
    %c0_i32_277 = arith.constant 0 : i32
    %675 = vector.broadcast %c0_i32_277 : i32 to vector<1x512xi32>
    %676 = arith.cmpi sge, %674, %675 : vector<1x512xi32>
    %c-3_i32_278 = arith.constant -3 : i32
    %677 = vector.broadcast %c-3_i32_278 : i32 to vector<1x512xi32>
    %678 = arith.addi %0, %677 : vector<1x512xi32>
    %c16_i32_279 = arith.constant 16 : i32
    %679 = vector.broadcast %c16_i32_279 : i32 to vector<1x512xi32>
    %680 = arith.cmpi slt, %678, %679 : vector<1x512xi32>
    %681 = arith.andi %676, %680 : vector<1x512xi1>
    %c-3_i32_280 = arith.constant -3 : i32
    %682 = vector.broadcast %c-3_i32_280 : i32 to vector<1x512xi32>
    %683 = arith.addi %1, %682 : vector<1x512xi32>
    %c0_i32_281 = arith.constant 0 : i32
    %684 = vector.broadcast %c0_i32_281 : i32 to vector<1x512xi32>
    %685 = arith.cmpi sge, %683, %684 : vector<1x512xi32>
    %686 = arith.andi %681, %685 : vector<1x512xi1>
    %c-3_i32_282 = arith.constant -3 : i32
    %687 = vector.broadcast %c-3_i32_282 : i32 to vector<1x512xi32>
    %688 = arith.addi %1, %687 : vector<1x512xi32>
    %c16_i32_283 = arith.constant 16 : i32
    %689 = vector.broadcast %c16_i32_283 : i32 to vector<1x512xi32>
    %690 = arith.cmpi slt, %688, %689 : vector<1x512xi32>
    %691 = arith.andi %686, %690 : vector<1x512xi1>
    %cst_284 = arith.constant 0.000000e+00 : f32
    %692 = vector.shape_cast %691 : vector<1x512xi1> to vector<1x512xi1>
    %693 = vector.broadcast %692 : vector<1x512xi1> to vector<8x512xi1>
    %694 = vector.broadcast %cst_284 : f32 to vector<8x512xf32>
    %695 = arith.select %693, %672, %694 : vector<8x512xi1>, vector<8x512xf32>
    %c0_285 = arith.constant 0 : index
    %c0_286 = arith.constant 0 : index
    %696 = vector.load %arg13[%c0_285, %c0_286] : memref<72x512xf32, #tpu.memory_space<vmem>>, vector<8x512xf32>
    tpu.vector_store %arg13[%c0_285, %c0_286], %695 {strides = array<i32>} : memref<72x512xf32, #tpu.memory_space<vmem>>, vector<8x512xf32>,
    %c48_i32 = arith.constant 48 : i32
    %697 = tpu.dynamic_rotate %671 by %c48_i32 dim 1 : vector<8x512xf32>, i32 -> vector<8x512xf32>
    %c-3_i32_287 = arith.constant -3 : i32
    %698 = vector.broadcast %c-3_i32_287 : i32 to vector<1x512xi32>
    %699 = arith.addi %0, %698 : vector<1x512xi32>
    %c0_i32_288 = arith.constant 0 : i32
    %700 = vector.broadcast %c0_i32_288 : i32 to vector<1x512xi32>
    %701 = arith.cmpi sge, %699, %700 : vector<1x512xi32>
    %c-3_i32_289 = arith.constant -3 : i32
    %702 = vector.broadcast %c-3_i32_289 : i32 to vector<1x512xi32>
    %703 = arith.addi %0, %702 : vector<1x512xi32>
    %c16_i32_290 = arith.constant 16 : i32
    %704 = vector.broadcast %c16_i32_290 : i32 to vector<1x512xi32>
    %705 = arith.cmpi slt, %703, %704 : vector<1x512xi32>
    %706 = arith.andi %701, %705 : vector<1x512xi1>
    %c0_i32_291 = arith.constant 0 : i32
    %707 = vector.broadcast %c0_i32_291 : i32 to vector<1x512xi32>
    %708 = arith.addi %1, %707 : vector<1x512xi32>
    %c0_i32_292 = arith.constant 0 : i32
    %709 = vector.broadcast %c0_i32_292 : i32 to vector<1x512xi32>
    %710 = arith.cmpi sge, %708, %709 : vector<1x512xi32>
    %711 = arith.andi %706, %710 : vector<1x512xi1>
    %c0_i32_293 = arith.constant 0 : i32
    %712 = vector.broadcast %c0_i32_293 : i32 to vector<1x512xi32>
    %713 = arith.addi %1, %712 : vector<1x512xi32>
    %c16_i32_294 = arith.constant 16 : i32
    %714 = vector.broadcast %c16_i32_294 : i32 to vector<1x512xi32>
    %715 = arith.cmpi slt, %713, %714 : vector<1x512xi32>
    %716 = arith.andi %711, %715 : vector<1x512xi1>
    %cst_295 = arith.constant 0.000000e+00 : f32
    %717 = vector.shape_cast %716 : vector<1x512xi1> to vector<1x512xi1>
    %718 = vector.broadcast %717 : vector<1x512xi1> to vector<8x512xi1>
    %719 = vector.broadcast %cst_295 : f32 to vector<8x512xf32>
    %720 = arith.select %718, %697, %719 : vector<8x512xi1>, vector<8x512xf32>
    %c8_296 = arith.constant 8 : index
    %c0_297 = arith.constant 0 : index
    %721 = vector.load %arg13[%c8_296, %c0_297] : memref<72x512xf32, #tpu.memory_space<vmem>>, vector<8x512xf32>
    tpu.vector_store %arg13[%c8_296, %c0_297], %720 {strides = array<i32>} : memref<72x512xf32, #tpu.memory_space<vmem>>, vector<8x512xf32>,
    %c45_i32 = arith.constant 45 : i32
    %722 = tpu.dynamic_rotate %671 by %c45_i32 dim 1 : vector<8x512xf32>, i32 -> vector<8x512xf32>
    %c-3_i32_298 = arith.constant -3 : i32
    %723 = vector.broadcast %c-3_i32_298 : i32 to vector<1x512xi32>
    %724 = arith.addi %0, %723 : vector<1x512xi32>
    %c0_i32_299 = arith.constant 0 : i32
    %725 = vector.broadcast %c0_i32_299 : i32 to vector<1x512xi32>
    %726 = arith.cmpi sge, %724, %725 : vector<1x512xi32>
    %c-3_i32_300 = arith.constant -3 : i32
    %727 = vector.broadcast %c-3_i32_300 : i32 to vector<1x512xi32>
    %728 = arith.addi %0, %727 : vector<1x512xi32>
    %c16_i32_301 = arith.constant 16 : i32
    %729 = vector.broadcast %c16_i32_301 : i32 to vector<1x512xi32>
    %730 = arith.cmpi slt, %728, %729 : vector<1x512xi32>
    %731 = arith.andi %726, %730 : vector<1x512xi1>
    %c3_i32 = arith.constant 3 : i32
    %732 = vector.broadcast %c3_i32 : i32 to vector<1x512xi32>
    %733 = arith.addi %1, %732 : vector<1x512xi32>
    %c0_i32_302 = arith.constant 0 : i32
    %734 = vector.broadcast %c0_i32_302 : i32 to vector<1x512xi32>
    %735 = arith.cmpi sge, %733, %734 : vector<1x512xi32>
    %736 = arith.andi %731, %735 : vector<1x512xi1>
    %c3_i32_303 = arith.constant 3 : i32
    %737 = vector.broadcast %c3_i32_303 : i32 to vector<1x512xi32>
    %738 = arith.addi %1, %737 : vector<1x512xi32>
    %c16_i32_304 = arith.constant 16 : i32
    %739 = vector.broadcast %c16_i32_304 : i32 to vector<1x512xi32>
    %740 = arith.cmpi slt, %738, %739 : vector<1x512xi32>
    %741 = arith.andi %736, %740 : vector<1x512xi1>
    %cst_305 = arith.constant 0.000000e+00 : f32
    %742 = vector.shape_cast %741 : vector<1x512xi1> to vector<1x512xi1>
    %743 = vector.broadcast %742 : vector<1x512xi1> to vector<8x512xi1>
    %744 = vector.broadcast %cst_305 : f32 to vector<8x512xf32>
    %745 = arith.select %743, %722, %744 : vector<8x512xi1>, vector<8x512xf32>
    %c16_306 = arith.constant 16 : index
    %c0_307 = arith.constant 0 : index
    %746 = vector.load %arg13[%c16_306, %c0_307] : memref<72x512xf32, #tpu.memory_space<vmem>>, vector<8x512xf32>
    tpu.vector_store %arg13[%c16_306, %c0_307], %745 {strides = array<i32>} : memref<72x512xf32, #tpu.memory_space<vmem>>, vector<8x512xf32>,
    %c3_i32_308 = arith.constant 3 : i32
    %747 = tpu.dynamic_rotate %671 by %c3_i32_308 dim 1 : vector<8x512xf32>, i32 -> vector<8x512xf32>
    %c0_i32_309 = arith.constant 0 : i32
    %748 = vector.broadcast %c0_i32_309 : i32 to vector<1x512xi32>
    %749 = arith.addi %0, %748 : vector<1x512xi32>
    %c0_i32_310 = arith.constant 0 : i32
    %750 = vector.broadcast %c0_i32_310 : i32 to vector<1x512xi32>
    %751 = arith.cmpi sge, %749, %750 : vector<1x512xi32>
    %c0_i32_311 = arith.constant 0 : i32
    %752 = vector.broadcast %c0_i32_311 : i32 to vector<1x512xi32>
    %753 = arith.addi %0, %752 : vector<1x512xi32>
    %c16_i32_312 = arith.constant 16 : i32
    %754 = vector.broadcast %c16_i32_312 : i32 to vector<1x512xi32>
    %755 = arith.cmpi slt, %753, %754 : vector<1x512xi32>
    %756 = arith.andi %751, %755 : vector<1x512xi1>
    %c-3_i32_313 = arith.constant -3 : i32
    %757 = vector.broadcast %c-3_i32_313 : i32 to vector<1x512xi32>
    %758 = arith.addi %1, %757 : vector<1x512xi32>
    %c0_i32_314 = arith.constant 0 : i32
    %759 = vector.broadcast %c0_i32_314 : i32 to vector<1x512xi32>
    %760 = arith.cmpi sge, %758, %759 : vector<1x512xi32>
    %761 = arith.andi %756, %760 : vector<1x512xi1>
    %c-3_i32_315 = arith.constant -3 : i32
    %762 = vector.broadcast %c-3_i32_315 : i32 to vector<1x512xi32>
    %763 = arith.addi %1, %762 : vector<1x512xi32>
    %c16_i32_316 = arith.constant 16 : i32
    %764 = vector.broadcast %c16_i32_316 : i32 to vector<1x512xi32>
    %765 = arith.cmpi slt, %763, %764 : vector<1x512xi32>
    %766 = arith.andi %761, %765 : vector<1x512xi1>
    %cst_317 = arith.constant 0.000000e+00 : f32
    %767 = vector.shape_cast %766 : vector<1x512xi1> to vector<1x512xi1>
    %768 = vector.broadcast %767 : vector<1x512xi1> to vector<8x512xi1>
    %769 = vector.broadcast %cst_317 : f32 to vector<8x512xf32>
    %770 = arith.select %768, %747, %769 : vector<8x512xi1>, vector<8x512xf32>
    %c24_318 = arith.constant 24 : index
    %c0_319 = arith.constant 0 : index
    %771 = vector.load %arg13[%c24_318, %c0_319] : memref<72x512xf32, #tpu.memory_space<vmem>>, vector<8x512xf32>
    tpu.vector_store %arg13[%c24_318, %c0_319], %770 {strides = array<i32>} : memref<72x512xf32, #tpu.memory_space<vmem>>, vector<8x512xf32>,
    %c0_i32_320 = arith.constant 0 : i32
    %772 = vector.broadcast %c0_i32_320 : i32 to vector<1x512xi32>
    %773 = arith.addi %0, %772 : vector<1x512xi32>
    %c0_i32_321 = arith.constant 0 : i32
    %774 = vector.broadcast %c0_i32_321 : i32 to vector<1x512xi32>
    %775 = arith.cmpi sge, %773, %774 : vector<1x512xi32>
    %c0_i32_322 = arith.constant 0 : i32
    %776 = vector.broadcast %c0_i32_322 : i32 to vector<1x512xi32>
    %777 = arith.addi %0, %776 : vector<1x512xi32>
    %c16_i32_323 = arith.constant 16 : i32
    %778 = vector.broadcast %c16_i32_323 : i32 to vector<1x512xi32>
    %779 = arith.cmpi slt, %777, %778 : vector<1x512xi32>
    %780 = arith.andi %775, %779 : vector<1x512xi1>
    %c0_i32_324 = arith.constant 0 : i32
    %781 = vector.broadcast %c0_i32_324 : i32 to vector<1x512xi32>
    %782 = arith.addi %1, %781 : vector<1x512xi32>
    %c0_i32_325 = arith.constant 0 : i32
    %783 = vector.broadcast %c0_i32_325 : i32 to vector<1x512xi32>
    %784 = arith.cmpi sge, %782, %783 : vector<1x512xi32>
    %785 = arith.andi %780, %784 : vector<1x512xi1>
    %c0_i32_326 = arith.constant 0 : i32
    %786 = vector.broadcast %c0_i32_326 : i32 to vector<1x512xi32>
    %787 = arith.addi %1, %786 : vector<1x512xi32>
    %c16_i32_327 = arith.constant 16 : i32
    %788 = vector.broadcast %c16_i32_327 : i32 to vector<1x512xi32>
    %789 = arith.cmpi slt, %787, %788 : vector<1x512xi32>
    %790 = arith.andi %785, %789 : vector<1x512xi1>
    %cst_328 = arith.constant 0.000000e+00 : f32
    %791 = vector.shape_cast %790 : vector<1x512xi1> to vector<1x512xi1>
    %792 = vector.broadcast %791 : vector<1x512xi1> to vector<8x512xi1>
    %793 = vector.broadcast %cst_328 : f32 to vector<8x512xf32>
    %794 = arith.select %792, %671, %793 : vector<8x512xi1>, vector<8x512xf32>
    %c32_329 = arith.constant 32 : index
    %c0_330 = arith.constant 0 : index
    %795 = vector.load %arg13[%c32_329, %c0_330] : memref<72x512xf32, #tpu.memory_space<vmem>>, vector<8x512xf32>
    tpu.vector_store %arg13[%c32_329, %c0_330], %794 {strides = array<i32>} : memref<72x512xf32, #tpu.memory_space<vmem>>, vector<8x512xf32>,
    %c509_i32 = arith.constant 509 : i32
    %796 = tpu.dynamic_rotate %671 by %c509_i32 dim 1 : vector<8x512xf32>, i32 -> vector<8x512xf32>
    %c0_i32_331 = arith.constant 0 : i32
    %797 = vector.broadcast %c0_i32_331 : i32 to vector<1x512xi32>
    %798 = arith.addi %0, %797 : vector<1x512xi32>
    %c0_i32_332 = arith.constant 0 : i32
    %799 = vector.broadcast %c0_i32_332 : i32 to vector<1x512xi32>
    %800 = arith.cmpi sge, %798, %799 : vector<1x512xi32>
    %c0_i32_333 = arith.constant 0 : i32
    %801 = vector.broadcast %c0_i32_333 : i32 to vector<1x512xi32>
    %802 = arith.addi %0, %801 : vector<1x512xi32>
    %c16_i32_334 = arith.constant 16 : i32
    %803 = vector.broadcast %c16_i32_334 : i32 to vector<1x512xi32>
    %804 = arith.cmpi slt, %802, %803 : vector<1x512xi32>
    %805 = arith.andi %800, %804 : vector<1x512xi1>
    %c3_i32_335 = arith.constant 3 : i32
    %806 = vector.broadcast %c3_i32_335 : i32 to vector<1x512xi32>
    %807 = arith.addi %1, %806 : vector<1x512xi32>
    %c0_i32_336 = arith.constant 0 : i32
    %808 = vector.broadcast %c0_i32_336 : i32 to vector<1x512xi32>
    %809 = arith.cmpi sge, %807, %808 : vector<1x512xi32>
    %810 = arith.andi %805, %809 : vector<1x512xi1>
    %c3_i32_337 = arith.constant 3 : i32
    %811 = vector.broadcast %c3_i32_337 : i32 to vector<1x512xi32>
    %812 = arith.addi %1, %811 : vector<1x512xi32>
    %c16_i32_338 = arith.constant 16 : i32
    %813 = vector.broadcast %c16_i32_338 : i32 to vector<1x512xi32>
    %814 = arith.cmpi slt, %812, %813 : vector<1x512xi32>
    %815 = arith.andi %810, %814 : vector<1x512xi1>
    %cst_339 = arith.constant 0.000000e+00 : f32
    %816 = vector.shape_cast %815 : vector<1x512xi1> to vector<1x512xi1>
    %817 = vector.broadcast %816 : vector<1x512xi1> to vector<8x512xi1>
    %818 = vector.broadcast %cst_339 : f32 to vector<8x512xf32>
    %819 = arith.select %817, %796, %818 : vector<8x512xi1>, vector<8x512xf32>
    %c40_340 = arith.constant 40 : index
    %c0_341 = arith.constant 0 : index
    %820 = vector.load %arg13[%c40_340, %c0_341] : memref<72x512xf32, #tpu.memory_space<vmem>>, vector<8x512xf32>
    tpu.vector_store %arg13[%c40_340, %c0_341], %819 {strides = array<i32>} : memref<72x512xf32, #tpu.memory_space<vmem>>, vector<8x512xf32>,
    %c467_i32 = arith.constant 467 : i32
    %821 = tpu.dynamic_rotate %671 by %c467_i32 dim 1 : vector<8x512xf32>, i32 -> vector<8x512xf32>
    %c3_i32_342 = arith.constant 3 : i32
    %822 = vector.broadcast %c3_i32_342 : i32 to vector<1x512xi32>
    %823 = arith.addi %0, %822 : vector<1x512xi32>
    %c0_i32_343 = arith.constant 0 : i32
    %824 = vector.broadcast %c0_i32_343 : i32 to vector<1x512xi32>
    %825 = arith.cmpi sge, %823, %824 : vector<1x512xi32>
    %c3_i32_344 = arith.constant 3 : i32
    %826 = vector.broadcast %c3_i32_344 : i32 to vector<1x512xi32>
    %827 = arith.addi %0, %826 : vector<1x512xi32>
    %c16_i32_345 = arith.constant 16 : i32
    %828 = vector.broadcast %c16_i32_345 : i32 to vector<1x512xi32>
    %829 = arith.cmpi slt, %827, %828 : vector<1x512xi32>
    %830 = arith.andi %825, %829 : vector<1x512xi1>
    %c-3_i32_346 = arith.constant -3 : i32
    %831 = vector.broadcast %c-3_i32_346 : i32 to vector<1x512xi32>
    %832 = arith.addi %1, %831 : vector<1x512xi32>
    %c0_i32_347 = arith.constant 0 : i32
    %833 = vector.broadcast %c0_i32_347 : i32 to vector<1x512xi32>
    %834 = arith.cmpi sge, %832, %833 : vector<1x512xi32>
    %835 = arith.andi %830, %834 : vector<1x512xi1>
    %c-3_i32_348 = arith.constant -3 : i32
    %836 = vector.broadcast %c-3_i32_348 : i32 to vector<1x512xi32>
    %837 = arith.addi %1, %836 : vector<1x512xi32>
    %c16_i32_349 = arith.constant 16 : i32
    %838 = vector.broadcast %c16_i32_349 : i32 to vector<1x512xi32>
    %839 = arith.cmpi slt, %837, %838 : vector<1x512xi32>
    %840 = arith.andi %835, %839 : vector<1x512xi1>
    %cst_350 = arith.constant 0.000000e+00 : f32
    %841 = vector.shape_cast %840 : vector<1x512xi1> to vector<1x512xi1>
    %842 = vector.broadcast %841 : vector<1x512xi1> to vector<8x512xi1>
    %843 = vector.broadcast %cst_350 : f32 to vector<8x512xf32>
    %844 = arith.select %842, %821, %843 : vector<8x512xi1>, vector<8x512xf32>
    %c48_351 = arith.constant 48 : index
    %c0_352 = arith.constant 0 : index
    %845 = vector.load %arg13[%c48_351, %c0_352] : memref<72x512xf32, #tpu.memory_space<vmem>>, vector<8x512xf32>
    tpu.vector_store %arg13[%c48_351, %c0_352], %844 {strides = array<i32>} : memref<72x512xf32, #tpu.memory_space<vmem>>, vector<8x512xf32>,
    %c464_i32 = arith.constant 464 : i32
    %846 = tpu.dynamic_rotate %671 by %c464_i32 dim 1 : vector<8x512xf32>, i32 -> vector<8x512xf32>
    %c3_i32_353 = arith.constant 3 : i32
    %847 = vector.broadcast %c3_i32_353 : i32 to vector<1x512xi32>
    %848 = arith.addi %0, %847 : vector<1x512xi32>
    %c0_i32_354 = arith.constant 0 : i32
    %849 = vector.broadcast %c0_i32_354 : i32 to vector<1x512xi32>
    %850 = arith.cmpi sge, %848, %849 : vector<1x512xi32>
    %c3_i32_355 = arith.constant 3 : i32
    %851 = vector.broadcast %c3_i32_355 : i32 to vector<1x512xi32>
    %852 = arith.addi %0, %851 : vector<1x512xi32>
    %c16_i32_356 = arith.constant 16 : i32
    %853 = vector.broadcast %c16_i32_356 : i32 to vector<1x512xi32>
    %854 = arith.cmpi slt, %852, %853 : vector<1x512xi32>
    %855 = arith.andi %850, %854 : vector<1x512xi1>
    %c0_i32_357 = arith.constant 0 : i32
    %856 = vector.broadcast %c0_i32_357 : i32 to vector<1x512xi32>
    %857 = arith.addi %1, %856 : vector<1x512xi32>
    %c0_i32_358 = arith.constant 0 : i32
    %858 = vector.broadcast %c0_i32_358 : i32 to vector<1x512xi32>
    %859 = arith.cmpi sge, %857, %858 : vector<1x512xi32>
    %860 = arith.andi %855, %859 : vector<1x512xi1>
    %c0_i32_359 = arith.constant 0 : i32
    %861 = vector.broadcast %c0_i32_359 : i32 to vector<1x512xi32>
    %862 = arith.addi %1, %861 : vector<1x512xi32>
    %c16_i32_360 = arith.constant 16 : i32
    %863 = vector.broadcast %c16_i32_360 : i32 to vector<1x512xi32>
    %864 = arith.cmpi slt, %862, %863 : vector<1x512xi32>
    %865 = arith.andi %860, %864 : vector<1x512xi1>
    %cst_361 = arith.constant 0.000000e+00 : f32
    %866 = vector.shape_cast %865 : vector<1x512xi1> to vector<1x512xi1>
    %867 = vector.broadcast %866 : vector<1x512xi1> to vector<8x512xi1>
    %868 = vector.broadcast %cst_361 : f32 to vector<8x512xf32>
    %869 = arith.select %867, %846, %868 : vector<8x512xi1>, vector<8x512xf32>
    %c56_362 = arith.constant 56 : index
    %c0_363 = arith.constant 0 : index
    %870 = vector.load %arg13[%c56_362, %c0_363] : memref<72x512xf32, #tpu.memory_space<vmem>>, vector<8x512xf32>
    tpu.vector_store %arg13[%c56_362, %c0_363], %869 {strides = array<i32>} : memref<72x512xf32, #tpu.memory_space<vmem>>, vector<8x512xf32>,
    %c461_i32 = arith.constant 461 : i32
    %871 = tpu.dynamic_rotate %671 by %c461_i32 dim 1 : vector<8x512xf32>, i32 -> vector<8x512xf32>
    %c3_i32_364 = arith.constant 3 : i32
    %872 = vector.broadcast %c3_i32_364 : i32 to vector<1x512xi32>
    %873 = arith.addi %0, %872 : vector<1x512xi32>
    %c0_i32_365 = arith.constant 0 : i32
    %874 = vector.broadcast %c0_i32_365 : i32 to vector<1x512xi32>
    %875 = arith.cmpi sge, %873, %874 : vector<1x512xi32>
    %c3_i32_366 = arith.constant 3 : i32
    %876 = vector.broadcast %c3_i32_366 : i32 to vector<1x512xi32>
    %877 = arith.addi %0, %876 : vector<1x512xi32>
    %c16_i32_367 = arith.constant 16 : i32
    %878 = vector.broadcast %c16_i32_367 : i32 to vector<1x512xi32>
    %879 = arith.cmpi slt, %877, %878 : vector<1x512xi32>
    %880 = arith.andi %875, %879 : vector<1x512xi1>
    %c3_i32_368 = arith.constant 3 : i32
    %881 = vector.broadcast %c3_i32_368 : i32 to vector<1x512xi32>
    %882 = arith.addi %1, %881 : vector<1x512xi32>
    %c0_i32_369 = arith.constant 0 : i32
    %883 = vector.broadcast %c0_i32_369 : i32 to vector<1x512xi32>
    %884 = arith.cmpi sge, %882, %883 : vector<1x512xi32>
    %885 = arith.andi %880, %884 : vector<1x512xi1>
    %c3_i32_370 = arith.constant 3 : i32
    %886 = vector.broadcast %c3_i32_370 : i32 to vector<1x512xi32>
    %887 = arith.addi %1, %886 : vector<1x512xi32>
    %c16_i32_371 = arith.constant 16 : i32
    %888 = vector.broadcast %c16_i32_371 : i32 to vector<1x512xi32>
    %889 = arith.cmpi slt, %887, %888 : vector<1x512xi32>
    %890 = arith.andi %885, %889 : vector<1x512xi1>
    %cst_372 = arith.constant 0.000000e+00 : f32
    %891 = vector.shape_cast %890 : vector<1x512xi1> to vector<1x512xi1>
    %892 = vector.broadcast %891 : vector<1x512xi1> to vector<8x512xi1>
    %893 = vector.broadcast %cst_372 : f32 to vector<8x512xf32>
    %894 = arith.select %892, %871, %893 : vector<8x512xi1>, vector<8x512xf32>
    %c64_373 = arith.constant 64 : index
    %c0_374 = arith.constant 0 : index
    %895 = vector.load %arg13[%c64_373, %c0_374] : memref<72x512xf32, #tpu.memory_space<vmem>>, vector<8x512xf32>
    tpu.vector_store %arg13[%c64_373, %c0_374], %894 {strides = array<i32>} : memref<72x512xf32, #tpu.memory_space<vmem>>, vector<8x512xf32>,
    %c0_375 = arith.constant 0 : index
    %c0_376 = arith.constant 0 : index
    %896 = vector.load %arg9[%c0_375, %c0_376] : memref<8x72xf32, #tpu.memory_space<vmem>>, vector<8x72xf32>
    %c0_377 = arith.constant 0 : index
    %c0_378 = arith.constant 0 : index
    %897 = vector.load %arg13[%c0_377, %c0_378] : memref<72x512xf32, #tpu.memory_space<vmem>>, vector<72x512xf32>
    %cst_379 = arith.constant dense<0.000000e+00> : vector<8x512xf32>
    %898 = tpu.matmul %896, %897, %cst_379 {dimension_numbers = #tpu.dot_dimension_numbers<[1], [0], [0], [1], [0, 0, 1, 1], [], []>} : vector<8x72xf32>, vector<72x512xf32>, vector<8x512xf32> -> vector<8x512xf32>
    %c0_380 = arith.constant 0 : index
    %c0_381 = arith.constant 0 : index
    %899 = vector.load %arg10[%c0_380, %c0_381] : memref<8x1xf32, #tpu.memory_space<vmem>>, vector<8x1xf32>
    %900 = vector.broadcast %899 : vector<8x1xf32> to vector<8x512xf32>
    %901 = arith.addf %898, %900 : vector<8x512xf32>
    %902 = arith.addf %12, %901 : vector<8x512xf32>
    %cst_382 = arith.constant 0.000000e+00 : f32
    %903 = vector.broadcast %cst_382 : f32 to vector<8x512xf32>
    %904 = arith.cmpf ogt, %902, %903 : vector<8x512xf32>
    %cst_383 = arith.constant 0.00999999977 : f32
    %905 = vector.broadcast %cst_383 : f32 to vector<8x512xf32>
    %906 = arith.mulf %905, %902 : vector<8x512xf32>
    %907 = arith.select %904, %902, %906 : vector<8x512xi1>, vector<8x512xf32>
    %c0_384 = arith.constant 0 : index
    %c0_385 = arith.constant 0 : index
    %908 = vector.load %arg11[%c0_384, %c0_385] : memref<8x512xf32, #tpu.memory_space<vmem>>, vector<8x512xf32>
    tpu.vector_store %arg11[%c0_384, %c0_385], %907 {strides = array<i32>} : memref<8x512xf32, #tpu.memory_space<vmem>>, vector<8x512xf32>,
    return
  }
}

</mosaic_0001>

<bundles_post_ra>
// kernel: tpu_custom_call.1
= control target key start
LH: loop header
LB: loop body
LE: loop exit
PB: predicated region body
PF: predicated region fallthrough
CT: control target
= control target key end

     0   :  { %s2646_s19 = smov 31   ;;  %s2647_s20 = smov 33   ;;  %v2648_v3 = vmov 0   ;;  %s4966_s0 = inlined_call_operand.vmem [shape: f32[4,512], index: 0, kind: input, shape index: {}]   ;;  %s4967_s1 = inlined_call_operand.vmem [shape: s32[1,512], index: 1, kind: input, shape index: {}]   ;;  %s4968_s2 = inlined_call_operand.vmem [shape: s32[1,512], index: 2, kind: input, shape index: {}]   ;;  %s4969_s3 = inlined_call_operand.vmem [shape: f32[8,4], index: 3, kind: input, shape index: {}]   ;;  %s4970_s4 = inlined_call_operand.vmem [shape: f32[8,1], index: 4, kind: input, shape index: {}]   ;;  %s4971_s5 = inlined_call_operand.vmem [shape: f32[8,100], index: 5, kind: input, shape index: {}]   ;;  %s4972_s6 = inlined_call_operand.vmem [shape: f32[8,1], index: 6, kind: input, shape index: {}]   ;;  %s4973_s7 = inlined_call_operand.vmem [shape: f32[8,1], index: 7, kind: input, shape index: {}]   ;;  %s4974_s8 = inlined_call_operand.vmem [shape: f32[8,1], index: 8, kind: input, shape index: {}]   ;;  %s4975_s9 = inlined_call_operand.vmem [shape: f32[8,72], index: 9, kind: input, shape index: {}]   ;;  %s4976_s10 = inlined_call_operand.vmem [shape: f32[8,1], index: 10, kind: input, shape index: {}]   ;;  %s4977_s11 = inlined_call_operand.hbm [shape: f32[8,512], index: 11, kind: output, shape index: {}]  }
   0x1   :  { %v2744_v0 = vld [vmem:[%s4966_s0] sm:$0xff]  ;;  %v2756_v2 = vld [vmem:[%s4966_s0 + $0x8] sm:$0xff]  ;;  %2544 = vset.pattern.permute.xlu0 %v2648_v3  ;;  %2545 = vset.pattern.permute.xlu1 %v2648_v3  ;;  %s2649_s0 = smov 34  }
   0x2   :  { %381 = vrot.lane.b32.xlu1 %v2744_v0, %s2646_s19  ;;  %276 = vrot.lane.b32.xlu0 %v2744_v0, %s2647_s20  ;;  %v2751_v1 = vcombine.high %v2744_v0, %v2744_v0  ;;  %v2765_v4 = vcombine.high %v2756_v2, %v2756_v2 }
   0x6   :  { %383 = vrot.lane.b32.xlu1 %v2751_v1, %s2646_s19  ;;  %278 = vrot.lane.b32.xlu0 %v2751_v1, %s2647_s20 }
   0xa   :  { %387 = vrot.lane.b32.xlu1 %v2765_v4, %s2646_s19  ;;  %282 = vrot.lane.b32.xlu0 %v2765_v4, %s2647_s20 }
   0xe   :  { %225 = vrot.lane.b32.xlu1 %v2751_v1, %s2649_s0  ;;  %223 = vrot.lane.b32.xlu0 %v2744_v0, %s2649_s0 }
   0xf   :  { %16 = vsyncpa [#allocation5], 0  ;;  %vm4978_vm0 = vcmask 1043456   ;;  %s2650_s23 = smov 32   ;;  %v2651_v5 = vmov 0.0   ;;  %v43_v6 = vld [vmem:[%s4969_s3] sm:$0xff]  ;;  %v231_v9 = vlaneseq }
  0x10   :  { %2363 = vmatprep.subr.msk.mxu0 %vm4978_vm0, %v2751_v1  ;;  %2366 = vmatprep.subr.msk.mxu1 %vm4978_vm0, %v2765_v4  ;;  %vm54_vm1 = vcmask 31744   ;;  %s2652_s26 = smov 18   ;;  %s2653_s3 = smov 16   ;;  %v2825_v7 = vld [vmem:[%s4967_s1] sm:$0xf]  ;;  %v5014_v15 = vmov 0 }
  0x11   :  { %2364 = vmatpush1.msk.msra.mxu0 %vm4978_vm0, %v2744_v0  ;;  %2367 = vmatpush1.msk.msra.mxu1 %vm4978_vm0, %v2756_v2  ;;  %s2654_s27 = smov 30   ;;  %s2655_s28 = smov 17   ;;  %vm760_vm2 = vcmp.ge.s32.totalorder %v2825_v7, 0  ;;  %vm761_vm3 = vcmp.lt.s32.totalorder %v2825_v7, 16  ;;  %v2834_v8 = vld [vmem:[%s4968_s2] sm:$0xf] }
  0x12   :  { %337 = vrot.lane.b32.xlu1 %v2751_v1, %s2650_s23  ;;  %335 = vrot.lane.b32.xlu0 %v2744_v0, %s2650_s23  ;;  %s2656_s29 = smov 14   ;;  %s2657_s30 = smov 1   ;;  %vm4983_vm4 = vcmp.ge.s32.totalorder %v2834_v8, 0  ;;  %vm2837_vm5 = vmand %vm760_vm2, %vm761_vm3  ;;  %vm4990_vm7 = vcmp.lt.s32.totalorder %v2834_v8, 16  ;;  %v249_v11 = vshrl.u32 %v231_v9, 7  ;;  %v5016_v19 = vmov 0 }
  0x13   :  { %131 = vmatprep.mubr.f32.mxu0 %v2651_v5  ;;  %202 = vmatprep.mubr.f32.mxu1 %v2651_v5  ;;  %vm850_vm6 = vmand %vm2837_vm5, %vm4983_vm4  ;;  %s2658_s16 = smov 15   ;;  %s2659_s17 = smov 2   ;;  %v238_v20 = vadd.s32 4294967294, %v2825_v7  ;;  %v2899_v23 = vadd.s32 1, %v2834_v8  ;;  %v2903_v25 = vadd.s32 4294967295, %v2834_v8  ;;  %v5020_v28 = vmov 0 }
  0x14   :  { %2365 = vmatmul.mubr.msk.f32.vlgmr.msra.gmra.mrb[0].mxu0 %vm54_vm1, %v43_v6  ;;  %2368 = vmatmul.mubr.msk.f32.vlgmr.msra.gmra.mrb[0].mxu1 %vm54_vm1, %v43_v6  ;;  %vm851_vm8 = vmand %vm850_vm6, %vm4990_vm7  ;;  %v2858_v13 = vsub.s32 1, %v249_v11  ;;  %v2874_v17 = vsub.s32 0, %v249_v11  ;;  %s2660_s18 = smov 127   ;;  %v2889_v21 = vsub.s32 2, %v249_v11  ;;  %v2905_v26 = vsub.s32 3, %v249_v11  ;;  %s2663_s21 = smov 112  }
  0x15   :  { %1628 = vmatprep.mubr.f32.mxu0 %v2651_v5  ;;  %1699 = vmatprep.mubr.f32.mxu1 %v2651_v5  ;;  %v852_v12 = vsel %vm851_vm8, 1, %v2648_v3  ;;  %vm239_vm11 = vcmp.ge.s32.totalorder %v238_v20, 0  ;;  %vm240_vm12 = vcmp.lt.s32.totalorder %v238_v20, 16  ;;  %vm4979_vm14 = vcmp.ge.s32.totalorder %v2899_v23, 0  ;;  %s2664_s22 = smov 110   ;;  %s2667_s24 = smov 97  }
  0x16   :  { %280 = vrot.lane.b32.xlu1 %v2756_v2, %s2647_s20  ;;  %229 = vrot.lane.b32.xlu0 %v2765_v4, %s2649_s0  ;;  %v860_v14 = vrot.slane %v852_v12, %v2858_v13  ;;  %v856_v18 = vrot.slane %v852_v12, %v2874_v17  ;;  %v864_v24 = vrot.slane %v852_v12, %v2889_v21  ;;  %vm2910_vm13 = vmand %vm239_vm11, %vm240_vm12  ;;  %vm4982_vm1 = vcmp.ge.s32.totalorder %v2903_v25, 0  ;;  %s2662_s20 = smov 126   ;;  %s2668_s25 = smov 95  }
  0x17   :  { %v868_v29 = vrot.slane %v852_v12, %v2905_v26  ;;  %v5022_v30 = vmov 0  ;;  %vm396_vm3 = vmand %vm2910_vm13, %vm4979_vm14  ;;  %vm4980_vm6 = vcmp.lt.s32.totalorder %v2899_v23, 16  ;;  %vm4981_vm11 = vcmp.lt.s32.totalorder %v2903_v25, 16 }
  0x18   :  { %vm2863_vm9 = vcmp.eq.s32.totalorder %v860_v14, 1  ;;  %vm2884_vm10 = vcmp.eq.s32.totalorder %v856_v18, 1  ;;  %vm2915_vm15 = vcmp.eq.s32.totalorder %v864_v24, 1  ;;  %vm291_vm8 = vmand %vm2910_vm13, %vm4982_vm1  ;;  %v2946_v33 = vadd.s32 4294967294, %v2834_v8 }
  0x19   :  { %v5015_v15 = vsel %vm2863_vm9, 4294967295, %v5014_v15  ;;  %v874_v16 = vsel %vm2863_vm9, %v2751_v1, 0.0  ;;  %v5017_v19 = vsel %vm2884_vm10, 4294967295, %v5016_v19  ;;  %v873_v22 = vsel %vm2884_vm10, %v2744_v0, 0.0  ;;  %vm398_vm12 = vmand %vm396_vm3, %vm4980_vm6 }
  0x1a   :  { %385 = vrot.lane.b32.xlu1 %v2756_v2, %s2646_s19  ;;  %341 = vrot.lane.b32.xlu0 %v2765_v4, %s2650_s23  ;;  %878 = vst [vmem:[#allocation2 + $0xc8] sm:$0xf] %v874_v16  ;;  %s2661_s19 = smov 114   ;;  %877 = vst [vmem:[#allocation2 + $0xc0] sm:$0xf] %v873_v22  ;;  %v5021_v28 = vsel %vm2915_vm15, 4294967295, %v5020_v28 }
  0x1b   :  { %vm2921_vm2 = vcmp.eq.s32.totalorder %v868_v29, 1  ;;  %v875_v32 = vsel %vm2915_vm15, %v2756_v2, 0.0  ;;  %vm293_vm0 = vmand %vm291_vm8, %vm4981_vm11  ;;  %vm4985_vm14 = vcmp.ge.s32.totalorder %v2946_v33, 0  ;;  %v2958_v34 = vsel %vm398_vm12, 1, %v2648_v3 }
  0x1c   :  { %v5023_v30 = vsel %vm2921_vm2, 4294967295, %v5022_v30  ;;  %v876_v31 = vsel %vm2921_vm2, %v2765_v4, 0.0  ;;  %879 = vst [vmem:[#allocation2 + $0xd0] sm:$0xf] %v875_v32  ;;  %v2961_v35 = vsel %vm293_vm0, 1, %v2648_v3  ;;  %v2968_v36 = vand.u32 127, %v231_v9  ;;  %vm244_vm3 = vmand %vm2910_vm13, %vm4985_vm14 }
  0x1d   :  { %880 = vst [vmem:[#allocation2 + $0xd8] sm:$0xf] %v876_v31  ;;  %vm4984_vm8 = vcmp.lt.s32.totalorder %v2946_v33, 16  ;;  %v407_v37 = vrot.slane %v2958_v34, %v2858_v13  ;;  %v302_v38 = vrot.slane %v2961_v35, %v2858_v13  ;;  %v500_v41 = vadd.s32 4294967295, %v2825_v7 }
  0x1e   :  { %489 = vrot.lane.b32.xlu1 %v2751_v1, %s2652_s26  ;;  %487 = vrot.lane.b32.xlu0 %v2744_v0, %s2652_s26  ;;  %vm246_vm0 = vmand %vm244_vm3, %vm4984_vm8  ;;  %vm4986_vm12 = vcmp.lt.s32.totalorder %v2968_v36, 31  ;;  %vm284_vm6 = vcmp.lt.s32.totalorder %v2968_v36, 33  ;;  %v403_v42 = vrot.slane %v2958_v34, %v2874_v17  ;;  %v298_v45 = vrot.slane %v2961_v35, %v2874_v17 }
  0x1f   :  { %vm349_vm3 = vmand %vm2910_vm13, %vm4983_vm4  ;;  %vm2994_vm11 = vcmp.eq.s32.totalorder %v407_v37, 1  ;;  %vm2998_vm1 = vcmp.eq.s32.totalorder %v302_v38, 1  ;;  %v3009_v48 = vsel %vm246_vm0, 1, %v2648_v3  ;;  %vm501_vm8 = vcmp.ge.s32.totalorder %v500_v41, 0 }
  0x20   :  { %vm351_vm4 = vmand %vm349_vm3, %vm4990_vm7  ;;  %vm3027_vm0 = vcmp.eq.s32.totalorder %v403_v42, 1  ;;  %vm502_vm14 = vcmp.lt.s32.totalorder %v500_v41, 16  ;;  %vm3031_vm3 = vcmp.eq.s32.totalorder %v298_v45, 1  ;;  %v255_v57 = vrot.slane %v3009_v48, %v2858_v13 }
  0x21   :  { %v3040_v60 = vsel %vm351_vm4, 1, %v2648_v3  ;;  %vm4987_vm4 = vcmp.lt.s32.totalorder %v2968_v36, 34  ;;  %v306_v29 = vrot.slane %v2961_v35, %v2889_v21  ;;  %v310_v31 = vrot.slane %v2961_v35, %v2905_v26 }
  0x22   :  { %593 = vrot.lane.b32.xlu1 %v2751_v1, %s2653_s3  ;;  %591 = vrot.lane.b32.xlu0 %v2744_v0, %s2653_s3  ;;  %v360_v14 = vrot.slane %v3040_v60, %v2858_v13  ;;  %v251_v32 = vrot.slane %v3009_v48, %v2874_v17  ;;  %vm5051_vm15 = vcmp.lt.s32.totalorder %v2968_v36, 34  ;;  %v364_v45 = vrot.slane %v3040_v60, %v2889_v21 }
  0x23   :  { %v263_v53 = vrot.slane %v3009_v48, %v2905_v26 }
  0x26   :  { %339 = vrot.lane.b32.xlu1 %v2756_v2, %s2650_s23  ;;  %227 = vrot.lane.b32.xlu0 %v2756_v2, %s2649_s0  ;;  %s2665_s0 = smov 113   ;;  %s2666_s23 = smov 111  }
  0x2a   :  { %597 = vrot.lane.b32.xlu1 %v2765_v4, %s2653_s3  ;;  %493 = vrot.lane.b32.xlu0 %v2765_v4, %s2652_s26 }
  0x2e   :  { %442 = vrot.lane.b32.xlu1 %v2751_v1, %s2654_s27  ;;  %440 = vrot.lane.b32.xlu0 %v2744_v0, %s2654_s27 }
  0x32   :  { %549 = vrot.lane.b32.xlu1 %v2751_v1, %s2655_s28  ;;  %547 = vrot.lane.b32.xlu0 %v2744_v0, %s2655_s28 }
  0x36   :  { %491 = vrot.lane.b32.xlu1 %v2756_v2, %s2652_s26  ;;  %446 = vrot.lane.b32.xlu0 %v2765_v4, %s2654_s27  ;;  %s2669_s26 = smov 98  }
  0x3a   :  { %595 = vrot.lane.b32.xlu1 %v2756_v2, %s2653_s3  ;;  %553 = vrot.lane.b32.xlu0 %v2765_v4, %s2655_s28  ;;  %s2670_s3 = smov 96  }
  0x3e   :  { %693 = vrot.lane.b32.xlu1 %v2751_v1, %s2656_s29  ;;  %691 = vrot.lane.b32.xlu0 %v2744_v0, %s2656_s29 }
  0x42   :  { %796 = vrot.lane.b32.xlu1 %v2751_v1, %s2657_s30  ;;  %794 = vrot.lane.b32.xlu0 %v2744_v0, %s2657_s30 }
  0x46   :  { %551 = vrot.lane.b32.xlu1 %v2756_v2, %s2655_s28  ;;  %444 = vrot.lane.b32.xlu0 %v2756_v2, %s2654_s27  ;;  %s2671_s27 = smov 94  }
  0x4a   :  { %800 = vrot.lane.b32.xlu1 %v2765_v4, %s2657_s30  ;;  %697 = vrot.lane.b32.xlu0 %v2765_v4, %s2656_s29 }
  0x4e   :  { %649 = vrot.lane.b32.xlu1 %v2751_v1, %s2658_s16  ;;  %647 = vrot.lane.b32.xlu0 %v2744_v0, %s2658_s16 }
  0x52   :  { %749 = vrot.lane.b32.xlu1 %v2751_v1, %s2659_s17  ;;  %747 = vrot.lane.b32.xlu0 %v2744_v0, %s2659_s17 }
  0x56   :  { %695 = vrot.lane.b32.xlu1 %v2756_v2, %s2656_s29  ;;  %653 = vrot.lane.b32.xlu0 %v2765_v4, %s2658_s16 }
  0x5a   :  { %798 = vrot.lane.b32.xlu1 %v2756_v2, %s2657_s30  ;;  %753 = vrot.lane.b32.xlu0 %v2765_v4, %s2659_s17 }
  0x5e   :  { %885 = vrot.lane.b32.xlu1 %v2756_v2, %s2660_s18  ;;  %883 = vrot.lane.b32.xlu0 %v2751_v1, %s2660_s18 }
  0x62   :  { %985 = vrot.lane.b32.xlu1 %v2756_v2, %s2661_s19  ;;  %983 = vrot.lane.b32.xlu0 %v2751_v1, %s2661_s19 }
  0x66   :  { %751 = vrot.lane.b32.xlu1 %v2756_v2, %s2659_s17  ;;  %651 = vrot.lane.b32.xlu0 %v2756_v2, %s2658_s16  ;;  %s2674_s16 = smov 45   ;;  %s2675_s17 = smov 3  }
  0x6a   :  { %981 = vrot.lane.b32.xlu1 %v2744_v0, %s2661_s19  ;;  %881 = vrot.lane.b32.xlu0 %v2744_v0, %s2660_s18 }
  0x6e   :  { %941 = vrot.lane.b32.xlu1 %v2756_v2, %s2662_s20  ;;  %939 = vrot.lane.b32.xlu0 %v2751_v1, %s2662_s20 }
  0x72   :  { %937 = vrot.lane.b32.xlu1 %v2744_v0, %s2662_s20  ;;  %887 = vrot.lane.b32.xlu0 %v2765_v4, %s2660_s18  ;;  %s2676_s18 = smov 125  }
  0x74   :  { %v382_v39 = vpop.permute.xlu1 %381  ;;  %v277_v40 = vpop.permute.xlu0 %276 }
  0x76   :  { %1087 = vrot.lane.b32.xlu1 %v2751_v1, %s2663_s21  ;;  %987 = vrot.lane.b32.xlu0 %v2765_v4, %s2661_s19  ;;  %s2677_s19 = smov 83  }
  0x78   :  { %v3004_v46 = vpop.permute.xlu1 %383  ;;  %v3006_v47 = vpop.permute.xlu0 %278 }
  0x79   :  { %v392_v49 = vsel %vm4986_vm12, %v382_v39, %v3004_v46  ;;  %v287_v50 = vsel %vm284_vm6, %v277_v40, %v3006_v47 }
  0x7a   :  { %v421_v51 = vsel %vm2994_vm11, %v392_v49, 0.0  ;;  %v316_v52 = vsel %vm2998_vm1, %v287_v50, 0.0  ;;  %1187 = vrot.lane.b32.xlu1 %v2751_v1, %s2664_s22  ;;  %1089 = vrot.lane.b32.xlu0 %v2756_v2, %s2663_s21  ;;  %vm3048_vm1 = vmand %vm501_vm8, %vm502_vm14  ;;  %vm265_vm14 = vcmp.eq.s32.totalorder %v255_v57, 1  ;;  %vm5034_vm11 = vcmp.ge.s32.totalorder %v2946_v33, 0 }
  0x7b   :  { %v429_v54 = vrot.slane %v421_v51, 4  ;;  %v324_v55 = vrot.slane %v316_v52, 4  ;;  %vm504_vm8 = vmand %vm3048_vm1, %vm5034_vm11  ;;  %v368_v49 = vrot.slane %v3040_v60, %v2905_v26  ;;  %v259_v52 = vrot.slane %v3009_v48, %v2889_v21 }
  0x7c   :  { %v3037_v58 = vpop.permute.xlu1 %387  ;;  %v283_v59 = vpop.permute.xlu0 %282 }
  0x7d   :  { %437 = vst [vmem:[#allocation2 + $0x28] sm:$0xf0] %v429_v54  ;;  %332 = vst [vmem:[#allocation2 + $0x8] sm:$0xf0] %v324_v55  ;;  %v393_v61 = vsel %vm4986_vm12, %v3037_v58, %v382_v39  ;;  %v288_v62 = vsel %vm284_vm6, %v283_v59, %v277_v40  ;;  %v411_v39 = vrot.slane %v2958_v34, %v2889_v21  ;;  %vm5038_vm12 = vcmp.ge.s32.totalorder %v2834_v8, 0 }
  0x7e   :  { %v420_v6 = vsel %vm3027_vm0, %v393_v61, 0.0  ;;  %v315_v9 = vsel %vm3031_vm3, %v288_v62, 0.0  ;;  %943 = vrot.lane.b32.xlu1 %v2765_v4, %s2662_s20  ;;  %1189 = vrot.lane.b32.xlu0 %v2756_v2, %s2664_s22  ;;  %vm4988_vm0 = vcmp.lt.s32.totalorder %v2968_v36, 32  ;;  %vm3077_vm3 = vcmp.eq.s32.totalorder %v360_v14, 1  ;;  %s2678_s20 = smov 80  }
  0x7f   :  { %v428_v11 = vrot.slane %v420_v6, 4  ;;  %v323_v12 = vrot.slane %v315_v9, 4  ;;  %v415_v40 = vrot.slane %v2958_v34, %v2905_v26  ;;  %v356_v34 = vrot.slane %v3040_v60, %v2874_v17 }
  0x80   :  { %v3063_v16 = vpop.permute.xlu1 %225  ;;  %v224_v18 = vpop.permute.xlu0 %223 }
  0x81   :  { %436 = vst [vmem:[#allocation2 + $0x20] sm:$0xf0] %v428_v11  ;;  %331 = vst [vmem:[#allocation2] sm:$0xf0] %v323_v12  ;;  %v236_v20 = vsel %vm4987_vm4, %v224_v18, %v3063_v16  ;;  %v3171_v12 = vadd.s32 2, %v2834_v8 }
  0x82   :  { %v269_v22 = vsel %vm265_vm14, %v236_v20, 0.0  ;;  %1185 = vrot.lane.b32.xlu1 %v2744_v0, %s2664_s22  ;;  %1085 = vrot.lane.b32.xlu0 %v2744_v0, %s2663_s21  ;;  %vm5037_vm14 = vcmp.lt.s32.totalorder %v2946_v33, 16  ;;  %vm3102_vm4 = vmand %vm3048_vm1, %vm5038_vm12  ;;  %vm3117_vm12 = vcmp.eq.s32.totalorder %v306_v29, 1 }
  0x83   :  { %273 = vst [vmem:[#allocation2 + $0x8] sm:$0xf] %v269_v22  ;;  %vm505_vm11 = vmand %vm504_vm8, %vm5037_vm14  ;;  %vm3121_vm8 = vcmp.eq.s32.totalorder %v310_v31, 1  ;;  %vm3131_vm14 = vcmp.eq.s32.totalorder %v411_v39, 1 }
  0x84   :  { %v3089_v37 = vpop.permute.xlu1 %337  ;;  %v336_v38 = vpop.permute.xlu0 %335  ;;  %v3115_v43 = vsel %vm505_vm11, 1, %v2648_v3  ;;  %vm3135_vm11 = vcmp.eq.s32.totalorder %v415_v40, 1 }
  0x85   :  { %v346_v41 = vsel %vm4988_vm0, %v336_v38, %v3089_v37  ;;  %vm605_vm0 = vmand %vm3102_vm4, %vm4990_vm7  ;;  %v514_v57 = vrot.slane %v3115_v43, %v2858_v13  ;;  %vm5054_vm4 = vcmp.lt.s32.totalorder %v2968_v36, 31 }
  0x86   :  { %v374_v42 = vsel %vm3077_vm3, %v346_v41, 0.0  ;;  %1045 = vrot.lane.b32.xlu1 %v2756_v2, %s2665_s0  ;;  %1043 = vrot.lane.b32.xlu0 %v2751_v1, %s2665_s0  ;;  %vm3125_vm3 = vcmp.eq.s32.totalorder %v251_v32, 1  ;;  %v3168_v11 = vsel %vm605_vm0, 1, %v2648_v3  ;;  %vm5056_vm0 = vcmp.lt.s32.totalorder %v2968_v36, 32 }
  0x87   :  { %378 = vst [vmem:[#allocation2 + $0x28] sm:$0xf] %v374_v42  ;;  %v614_v39 = vrot.slane %v3168_v11, %v2858_v13 }
  0x88   :  { %v281_v50 = vpop.permute.xlu1 %280  ;;  %v3129_v51 = vpop.permute.xlu0 %229 }
  0x89   :  { %v285_v54 = vsel %vm284_vm6, %v281_v50, %v283_v59  ;;  %v286_v55 = vsel %vm284_vm6, %v3006_v47, %v281_v50  ;;  %v237_v56 = vsel %vm5051_vm15, %v3129_v51, %v224_v18  ;;  %vm3163_vm15 = vcmp.eq.s32.totalorder %v356_v34, 1 }
  0x8a   :  { %v317_v61 = vsel %vm3117_vm12, %v286_v55, 0.0  ;;  %v318_v62 = vsel %vm3121_vm8, %v285_v54, 0.0  ;;  %v268_v59 = vsel %vm3125_vm3, %v237_v56, 0.0  ;;  %1145 = vrot.lane.b32.xlu1 %v2756_v2, %s2666_s23  ;;  %1143 = vrot.lane.b32.xlu0 %v2751_v1, %s2666_s23  ;;  %vm4993_vm6 = vcmp.lt.s32.totalorder %v2968_v36, 18  ;;  %vm5055_vm12 = vmmov %vm5054_vm4 }
  0x8b   :  { %v325_v6 = vrot.slane %v317_v61, 4  ;;  %v326_v9 = vrot.slane %v318_v62, 4  ;;  %272 = vst [vmem:[#allocation2] sm:$0xf] %v268_v59  ;;  %vm3185_vm8 = vcmp.eq.s32.totalorder %v514_v57, 1  ;;  %vm4992_vm3 = vcmp.ge.s32.totalorder %v3171_v12, 0 }
  0x8c   :  { %v386_v14 = vpop.permute.xlu1 %385  ;;  %v3173_v18 = vpop.permute.xlu0 %341 }
  0x8d   :  { %333 = vst [vmem:[#allocation2 + $0x10] sm:$0xf0] %v325_v6  ;;  %334 = vst [vmem:[#allocation2 + $0x18] sm:$0xf0] %v326_v9  ;;  %v390_v20 = vsel %vm5054_vm4, %v386_v14, %v3037_v58  ;;  %v391_v22 = vsel %vm5055_vm12, %v3004_v46, %v386_v14  ;;  %v347_v24 = vsel %vm5056_vm0, %v3173_v18, %v336_v38  ;;  %v1491_v46 = vld [vmem:[#allocation2 + $0x8] sm:$0xff]  ;;  %vm3230_vm4 = vcmp.eq.s32.totalorder %v614_v39, 1 }
  0x8e   :  { %v422_v31 = vsel %vm3131_vm14, %v391_v22, 0.0  ;;  %v423_v32 = vsel %vm3135_vm11, %v390_v20, 0.0  ;;  %v373_v58 = vsel %vm3163_vm15, %v347_v24, 0.0  ;;  %1091 = vrot.lane.b32.xlu1 %v2765_v4, %s2663_s21  ;;  %1041 = vrot.lane.b32.xlu0 %v2744_v0, %s2665_s0  ;;  %v1495_v38 = vld [vmem:[#allocation2 + $0x28] sm:$0xff]  ;;  %vm4994_vm14 = vcmp.lt.s32.totalorder %v2968_v36, 16  ;;  %vm455_vm11 = vmand %vm2910_vm13, %vm4992_vm3  ;;  %s2679_s21 = smov 77  }
  0x8f   :  { %v430_v40 = vrot.slane %v422_v31, 4  ;;  %v431_v41 = vrot.slane %v423_v32, 4  ;;  %377 = vst [vmem:[#allocation2 + $0x20] sm:$0xf] %v373_v58  ;;  %v2413_v35 = vpack.c.bf16 %v1495_v38, %v1491_v46  ;;  %vm4991_vm15 = vcmp.lt.s32.totalorder %v3171_v12, 16 }
  0x90   :  { %v3202_v42 = vpop.permute.xlu1 %489  ;;  %v3204_v34 = vpop.permute.xlu0 %487  ;;  %vm3239_vm12 = vcmp.eq.s32.totalorder %v364_v45, 1  ;;  %vm3245_vm13 = vmand %vm455_vm11, %vm4991_vm15  ;;  %vm3255_vm0 = vcmp.eq.s32.totalorder %v368_v49, 1  ;;  %vm3263_vm11 = vcmp.eq.s32.totalorder %v263_v53, 1  ;;  %v610_v22 = vrot.slane %v3168_v11, %v2874_v17 }
  0x91   :  { %438 = vst [vmem:[#allocation2 + $0x30] sm:$0xf0] %v430_v40  ;;  %439 = vst [vmem:[#allocation2 + $0x38] sm:$0xf0] %v431_v41  ;;  %v498_v44 = vsel %vm4993_vm6, %v3204_v34, %v3202_v42  ;;  %2414 = vmatprep.subr.bf16.mxu0 %v2413_v35  ;;  %v510_v24 = vrot.slane %v3115_v43, %v2874_v17  ;;  %v3278_v32 = vsel %vm3245_vm13, 1, %v2648_v3  ;;  %vm5072_vm15 = vcmp.lt.s32.totalorder %v2968_v36, 32 }
  0x92   :  { %v528_v50 = vsel %vm3185_vm8, %v498_v44, 0.0  ;;  %1191 = vrot.lane.b32.xlu1 %v2765_v4, %s2664_s22  ;;  %1141 = vrot.lane.b32.xlu0 %v2744_v0, %s2666_s23  ;;  %vm3259_vm8 = vcmp.eq.s32.totalorder %v259_v52, 1  ;;  %v1490_v6 = vld [vmem:[#allocation2] sm:$0xff]  ;;  %vm5074_vm3 = vcmp.lt.s32.totalorder %v2968_v36, 34  ;;  %vm5076_vm13 = vcmp.lt.s32.totalorder %v2903_v25, 16 }
  0x93   :  { %v536_v60 = vrot.slane %v528_v50, 4  ;;  %vm5075_vm6 = vmmov %vm5074_vm3 }
  0x94   :  { %v3234_v55 = vpop.permute.xlu1 %593  ;;  %v592_v56 = vpop.permute.xlu0 %591 }
  0x95   :  { %544 = vst [vmem:[#allocation2 + $0x48] sm:$0xf0] %v536_v60  ;;  %v602_v48 = vsel %vm4994_vm14, %v592_v56, %v3234_v55 }
  0x96   :  { %v628_v61 = vsel %vm3230_vm4, %v602_v48, 0.0  ;;  %1293 = vrot.lane.b32.xlu1 %v2756_v2, %s2667_s24  ;;  %1291 = vrot.lane.b32.xlu0 %v2751_v1, %s2667_s24  ;;  %v1494_v9 = vld [vmem:[#allocation2 + $0x20] sm:$0xff]  ;;  %vm5071_vm4 = vcmp.ge.s32.totalorder %v2903_v25, 0 }
  0x97   :  { %vm560_vm7 = vmand %vm3048_vm1, %vm5071_vm4  ;;  %v636_v14 = vrot.slane %v628_v61, 4  ;;  %v2415_v20 = vpack.c.bf16 %v1494_v9, %v1490_v6  ;;  %v518_v9 = vrot.slane %v3115_v43, %v2889_v21 }
  0x98   :  { %v340_v29 = vpop.permute.xlu1 %339  ;;  %v228_v31 = vpop.permute.xlu0 %227  ;;  %vm5073_vm4 = vmmov %vm5072_vm15 }
  0x99   :  { %644 = vst [vmem:[#allocation2 + $0x68] sm:$0xf0] %v636_v14  ;;  %v344_v58 = vsel %vm5072_vm15, %v340_v29, %v3173_v18  ;;  %v345_v46 = vsel %vm5073_vm4, %v3089_v37, %v340_v29  ;;  %v234_v38 = vsel %vm5074_vm3, %v228_v31, %v3129_v51  ;;  %v235_v39 = vsel %vm5075_vm6, %v3063_v16, %v228_v31  ;;  %vm3294_vm14 = vmand %vm560_vm7, %vm5076_vm13 }
  0x9a   :  { %2416 = vmatpush1.bf16.msra.mxu0 %v2415_v20  ;;  %v375_v18 = vsel %vm3239_vm12, %v345_v46, 0.0  ;;  %v376_v37 = vsel %vm3255_vm0, %v344_v58, 0.0  ;;  %v270_v51 = vsel %vm3259_vm8, %v235_v39, 0.0  ;;  %v271_v41 = vsel %vm3263_vm11, %v234_v38, 0.0  ;;  %1393 = vrot.lane.b32.xlu1 %v2756_v2, %s2668_s25 }
  0x9b   :  { %1391 = vrot.lane.b32.xlu0 %v2751_v1, %s2668_s25  ;;  %379 = vst [vmem:[#allocation2 + $0x30] sm:$0xf] %v375_v18  ;;  %380 = vst [vmem:[#allocation2 + $0x38] sm:$0xf] %v376_v37  ;;  %vm623_vm7 = vcmp.eq.s32.totalorder %v610_v22, 1  ;;  %vm523_vm6 = vcmp.eq.s32.totalorder %v510_v24, 1  ;;  %v466_v16 = vrot.slane %v3278_v32, %v2858_v13  ;;  %v522_v14 = vrot.slane %v3115_v43, %v2905_v26 }
  0x9c   :  { %274 = vst [vmem:[#allocation2 + $0x10] sm:$0xf] %v270_v51  ;;  %275 = vst [vmem:[#allocation2 + $0x18] sm:$0xf] %v271_v41  ;;  %v3312_v35 = vpop.permute.xlu1 %597  ;;  %v494_v44 = vpop.permute.xlu0 %493  ;;  %v3317_v45 = vsel %vm3294_vm14, 1, %v2648_v3  ;;  %vm5079_vm3 = vcmp.lt.s32.totalorder %v2968_v36, 16  ;;  %v462_v29 = vrot.slane %v3278_v32, %v2874_v17  ;;  %v618_v39 = vrot.slane %v3168_v11, %v2889_v21 }
  0x9d   :  { %v603_v49 = vsel %vm5079_vm3, %v3312_v35, %v592_v56  ;;  %vm5080_vm15 = vcmp.lt.s32.totalorder %v2968_v36, 18  ;;  %vm448_vm12 = vcmp.lt.s32.totalorder %v2968_v36, 30  ;;  %vm3330_vm14 = vcmp.eq.s32.totalorder %v466_v16, 1 }
  0x9e   :  { %v499_v50 = vsel %vm5080_vm15, %v494_v44, %v3204_v34  ;;  %v627_v52 = vsel %vm623_vm7, %v603_v49, 0.0  ;;  %1147 = vrot.lane.b32.xlu1 %v2765_v4, %s2666_s23  ;;  %v570_v56 = vrot.slane %v3317_v45, %v2858_v13  ;;  %vm5083_vm0 = vcmp.ge.s32.totalorder %v3171_v12, 0 }
  0x9f   :  { %v527_v53 = vsel %vm523_vm6, %v499_v50, 0.0  ;;  %1047 = vrot.lane.b32.xlu0 %v2765_v4, %s2665_s0  ;;  %v635_v60 = vrot.slane %v627_v52, 4  ;;  %vm3345_vm8 = vmand %vm3048_vm1, %vm5083_vm0  ;;  %vm555_vm11 = vcmp.lt.s32.totalorder %v2968_v36, 17  ;;  %vm5088_vm13 = vcmp.lt.s32.totalorder %v3171_v12, 16 }
  0xa0   :  { %v535_v54 = vrot.slane %v527_v53, 4  ;;  %v3336_v34 = vpop.permute.xlu1 %442  ;;  %v441_v57 = vpop.permute.xlu0 %440  ;;  %vm3360_vm4 = vcmp.eq.s32.totalorder %v570_v56, 1  ;;  %vm3372_vm7 = vmand %vm3345_vm8, %vm5088_vm13  ;;  %vm3387_vm6 = vcmp.eq.s32.totalorder %v518_v9, 1  ;;  %vm3391_vm3 = vcmp.eq.s32.totalorder %v522_v14, 1 }
  0xa1   :  { %643 = vst [vmem:[#allocation2 + $0x60] sm:$0xf0] %v635_v60  ;;  %v451_v27 = vsel %vm448_vm12, %v441_v57, %v3336_v34  ;;  %vm5095_vm15 = vcmp.ge.s32.totalorder %v2903_v25, 0  ;;  %vm3399_vm0 = vcmp.eq.s32.totalorder %v462_v29, 1  ;;  %v622_v41 = vrot.slane %v3168_v11, %v2905_v26 }
  0xa2   :  { %543 = vst [vmem:[#allocation2 + $0x40] sm:$0xf0] %v535_v54  ;;  %v480_v62 = vsel %vm3330_vm14, %v451_v27, 0.0  ;;  %1389 = vrot.lane.b32.xlu1 %v2744_v0, %s2668_s25  ;;  %v1497_v47 = vld [vmem:[#allocation2 + $0x38] sm:$0xff]  ;;  %v1496_v24 = vld [vmem:[#allocation2 + $0x30] sm:$0xff]  ;;  %vm807_vm14 = vmand %vm2837_vm5, %vm5095_vm15  ;;  %v566_v16 = vrot.slane %v3317_v45, %v2874_v17  ;;  %v3410_v49 = vsel %vm3372_vm7, 1, %v2648_v3  ;;  %v574_v51 = vrot.slane %v3317_v45, %v2889_v21 }
  0xa3   :  { %1289 = vrot.lane.b32.xlu0 %v2744_v0, %s2667_s24  ;;  %v1493_v59 = vld [vmem:[#allocation2 + $0x18] sm:$0xff]  ;;  %v1492_v6 = vld [vmem:[#allocation2 + $0x10] sm:$0xff]  ;;  %484 = vst [vmem:[#allocation2 + $0x48] sm:$0xf] %v480_v62  ;;  %vm5098_vm8 = vcmp.lt.s32.totalorder %v2968_v36, 18  ;;  %vm3422_vm13 = vcmp.eq.s32.totalorder %v618_v39, 1  ;;  %v714_v56 = vrot.slane %v3410_v49, %v2858_v13 }
  0xa4   :  { %v2437_v22 = vpack.c.bf16 %v1497_v47, %v1493_v59  ;;  %v3366_v31 = vpop.permute.xlu1 %549  ;;  %v548_v58 = vpop.permute.xlu0 %547  ;;  %v2439_v46 = vpack.c.bf16 %v1496_v24, %v1492_v6  ;;  %vm5102_vm7 = vcmp.lt.s32.totalorder %v2903_v25, 16 }
  0xa5   :  { %v558_v38 = vsel %vm555_vm11, %v548_v58, %v3366_v31  ;;  %vm808_vm15 = vmand %vm807_vm14, %vm5102_vm7  ;;  %vm5107_vm14 = vcmp.lt.s32.totalorder %v2968_v36, 16  ;;  %vm5111_vm7 = vcmp.ge.s32.totalorder %v2899_v23, 0 }
  0xa6   :  { %2438 = vmatprep.subr.bf16.mxu1 %v2437_v22  ;;  %v584_v40 = vsel %vm3360_vm4, %v558_v38, 0.0  ;;  %1245 = vrot.lane.b32.xlu1 %v2756_v2, %s2669_s26  ;;  %vm5099_vm4 = vmmov %vm5098_vm8  ;;  %v3449_v6 = vsel %vm808_vm15, 1, %v2648_v3 }
  0xa7   :  { %1243 = vrot.lane.b32.xlu0 %v2751_v1, %s2669_s26  ;;  %588 = vst [vmem:[#allocation2 + $0x68] sm:$0xf] %v584_v40  ;;  %2440 = vmatpush1.bf16.msra.mxu1 %v2439_v46  ;;  %v817_v39 = vrot.slane %v3449_v6, %v2858_v13  ;;  %vm660_vm15 = vmand %vm3048_vm1, %vm5111_vm7 }
  0xa8   :  { %v492_v50 = vpop.permute.xlu1 %491  ;;  %v3412_v52 = vpop.permute.xlu0 %446 }
  0xa9   :  { %v496_v53 = vsel %vm5098_vm8, %v492_v50, %v494_v44  ;;  %v497_v60 = vsel %vm5099_vm4, %v3202_v42, %v492_v50  ;;  %v452_v11 = vsel %vm448_vm12, %v3412_v52, %v441_v57  ;;  %vm699_vm8 = vcmp.lt.s32.totalorder %v2968_v36, 14 }
  0xaa   :  { %v529_v48 = vsel %vm3387_vm6, %v497_v60, 0.0  ;;  %v530_v44 = vsel %vm3391_vm3, %v496_v53, 0.0  ;;  %v479_v42 = vsel %vm3399_vm0, %v452_v11, 0.0  ;;  %1349 = vrot.lane.b32.xlu1 %v2756_v2, %s2670_s3  ;;  %vm3440_vm6 = vcmp.eq.s32.totalorder %v622_v41, 1  ;;  %vm5108_vm0 = vmmov %vm5107_vm14 }
  0xab   :  { %1347 = vrot.lane.b32.xlu0 %v2751_v1, %s2670_s3  ;;  %v537_v57 = vrot.slane %v529_v48, 4  ;;  %v538_v27 = vrot.slane %v530_v44, 4  ;;  %483 = vst [vmem:[#allocation2 + $0x40] sm:$0xf] %v479_v42  ;;  %vm3444_vm3 = vcmp.eq.s32.totalorder %v566_v16, 1  ;;  %vm3470_vm4 = vcmp.eq.s32.totalorder %v714_v56, 1 }
  0xac   :  { %v596_v59 = vpop.permute.xlu1 %595  ;;  %v554_v47 = vpop.permute.xlu0 %553  ;;  %v578_v16 = vrot.slane %v3317_v45, %v2905_v26  ;;  %v470_v50 = vrot.slane %v3278_v32, %v2889_v21  ;;  %v474_v53 = vrot.slane %v3278_v32, %v2905_v26  ;;  %v718_v42 = vrot.slane %v3410_v49, %v2889_v21 }
  0xad   :  { %545 = vst [vmem:[#allocation2 + $0x50] sm:$0xf0] %v537_v57  ;;  %546 = vst [vmem:[#allocation2 + $0x58] sm:$0xf0] %v538_v27  ;;  %v600_v9 = vsel %vm5107_vm14, %v596_v59, %v3312_v35  ;;  %v601_v14 = vsel %vm5108_vm0, %v3234_v55, %v596_v59  ;;  %v559_v20 = vsel %vm555_vm11, %v554_v47, %v548_v58  ;;  %v1499_v35 = vld [vmem:[#allocation2 + $0x48] sm:$0xff]  ;;  %vm5116_vm14 = vcmp.lt.s32.totalorder %v2899_v23, 16 }
  0xae   :  { %v629_v22 = vsel %vm3422_vm13, %v601_v14, 0.0  ;;  %v630_v24 = vsel %vm3440_vm6, %v600_v9, 0.0  ;;  %v583_v29 = vsel %vm3444_vm3, %v559_v20, 0.0  ;;  %1295 = vrot.lane.b32.xlu1 %v2765_v4, %s2667_s24  ;;  %v1503_v58 = vld [vmem:[#allocation2 + $0x68] sm:$0xff]  ;;  %vm802_vm13 = vcmp.lt.s32.totalorder %v2968_v36, 1  ;;  %vm3518_vm1 = vmand %vm660_vm15, %vm5116_vm14 }
  0xaf   :  { %1241 = vrot.lane.b32.xlu0 %v2744_v0, %s2669_s26  ;;  %v637_v46 = vrot.slane %v629_v22, 4  ;;  %v638_v43 = vrot.slane %v630_v24, 4  ;;  %587 = vst [vmem:[#allocation2 + $0x60] sm:$0xf] %v583_v29  ;;  %v2417_v38 = vpack.c.bf16 %v1503_v58, %v1499_v35  ;;  %vm3503_vm6 = vcmp.eq.s32.totalorder %v817_v39, 1 }
  0xb0   :  { %v3476_v40 = vpop.permute.xlu1 %693  ;;  %v3478_v18 = vpop.permute.xlu0 %691  ;;  %vm3512_vm3 = vcmp.eq.s32.totalorder %v574_v51, 1  ;;  %vm3528_vm0 = vcmp.eq.s32.totalorder %v578_v16, 1  ;;  %vm3536_vm7 = vcmp.eq.s32.totalorder %v474_v53, 1  ;;  %vm5125_vm15 = vcmp.ge.s32.totalorder %v2946_v33, 0 }
  0xb1   :  { %645 = vst [vmem:[#allocation2 + $0x70] sm:$0xf0] %v637_v46  ;;  %646 = vst [vmem:[#allocation2 + $0x78] sm:$0xf0] %v638_v43  ;;  %v702_v37 = vsel %vm699_vm8, %v3478_v18, %v3476_v40  ;;  %2418 = vmatprep.subr.bf16.mxu0 %v2417_v38  ;;  %v813_v9 = vrot.slane %v3449_v6, %v2874_v17  ;;  %v710_v14 = vrot.slane %v3410_v49, %v2874_v17 }
  0xb2   :  { %v728_v41 = vsel %vm3470_vm4, %v702_v37, 0.0  ;;  %1395 = vrot.lane.b32.xlu1 %v2765_v4, %s2668_s25  ;;  %vm3532_vm4 = vcmp.eq.s32.totalorder %v470_v50, 1  ;;  %v1498_v27 = vld [vmem:[#allocation2 + $0x40] sm:$0xff]  ;;  %v3551_v24 = vsel %vm3518_vm1, 1, %v2648_v3  ;;  %vm5126_vm14 = vcmp.lt.s32.totalorder %v2946_v33, 16 }
  0xb3   :  { %1345 = vrot.lane.b32.xlu0 %v2744_v0, %s2670_s3  ;;  %v736_v60 = vrot.slane %v728_v41, 4  ;;  %v722_v56 = vrot.slane %v3410_v49, %v2905_v26  ;;  %v825_v46 = vrot.slane %v3449_v6, %v2905_v26 }
  0xb4   :  { %v3507_v54 = vpop.permute.xlu1 %796  ;;  %v795_v48 = vpop.permute.xlu0 %794 }
  0xb5   :  { %744 = vst [vmem:[#allocation2 + $0x88] sm:$0xf0] %v736_v60  ;;  %v805_v45 = vsel %vm802_vm13, %v795_v48, %v3507_v54 }
  0xb6   :  { %v831_v44 = vsel %vm3503_vm6, %v805_v45, 0.0  ;;  %1351 = vrot.lane.b32.xlu1 %v2765_v4, %s2670_s3  ;;  %v1502_v61 = vld [vmem:[#allocation2 + $0x60] sm:$0xff]  ;;  %vm763_vm6 = vmand %vm2837_vm5, %vm5125_vm15  ;;  %vm5131_vm15 = vcmp.ge.s32.totalorder %v2899_v23, 0 }
  0xb7   :  { %1247 = vrot.lane.b32.xlu0 %v2765_v4, %s2669_s26  ;;  %v839_v62 = vrot.slane %v831_v44, 4  ;;  %v2419_v59 = vpack.c.bf16 %v1502_v61, %v1498_v27  ;;  %vm3566_vm1 = vmand %vm763_vm6, %vm5126_vm14  ;;  %vm755_vm14 = vcmp.lt.s32.totalorder %v2968_v36, 2 }
  0xb8   :  { %v552_v20 = vpop.permute.xlu1 %551  ;;  %v445_v22 = vpop.permute.xlu0 %444  ;;  %v3587_v37 = vsel %vm3566_vm1, 1, %v2648_v3  ;;  %vm3617_vm6 = vmand %vm2837_vm5, %vm5131_vm15  ;;  %vm5143_vm15 = vcmp.ge.s32.totalorder %v2946_v33, 0 }
  0xb9   :  { %847 = vst [vmem:[#allocation2 + $0xa8] sm:$0xf0] %v839_v62  ;;  %v556_v29 = vsel %vm555_vm11, %v552_v20, %v554_v47  ;;  %v557_v55 = vsel %vm555_vm11, %v3366_v31, %v552_v20  ;;  %v449_v35 = vsel %vm448_vm12, %v445_v22, %v3412_v52  ;;  %v450_v58 = vsel %vm448_vm12, %v3336_v34, %v445_v22 }
  0xba   :  { %2420 = vmatpush1.bf16.msra.mxu0 %v2419_v59  ;;  %v585_v47 = vsel %vm3512_vm3, %v557_v55, 0.0  ;;  %v586_v31 = vsel %vm3528_vm0, %v556_v29, 0.0  ;;  %v481_v52 = vsel %vm3532_vm4, %v450_v58, 0.0  ;;  %v482_v43 = vsel %vm3536_vm7, %v449_v35, 0.0  ;;  %1449 = vrot.lane.b32.xlu1 %v2756_v2, %s2671_s27 }
  0xbb   :  { %1447 = vrot.lane.b32.xlu0 %v2751_v1, %s2671_s27  ;;  %589 = vst [vmem:[#allocation2 + $0x70] sm:$0xf] %v585_v47  ;;  %590 = vst [vmem:[#allocation2 + $0x78] sm:$0xf] %v586_v31  ;;  %vm826_vm12 = vcmp.eq.s32.totalorder %v813_v9, 1  ;;  %vm723_vm11 = vcmp.eq.s32.totalorder %v710_v14, 1  ;;  %v670_v34 = vrot.slane %v3551_v24, %v2858_v13  ;;  %v773_v60 = vrot.slane %v3587_v37, %v2858_v13 }
  0xbc   :  { %485 = vst [vmem:[#allocation2 + $0x50] sm:$0xf] %v481_v52  ;;  %486 = vst [vmem:[#allocation2 + $0x58] sm:$0xf] %v482_v43  ;;  %v3582_v38 = vpop.permute.xlu1 %800  ;;  %v698_v39 = vpop.permute.xlu0 %697  ;;  %v994_v2 = vadd.s32 1, %v2825_v7  ;;  %vm655_vm3 = vcmp.lt.s32.totalorder %v2968_v36, 15  ;;  %v666_v62 = vrot.slane %v3551_v24, %v2874_v17  ;;  %v821_v22 = vrot.slane %v3449_v6, %v2889_v21 }
  0xbd   :  { %v806_v1 = vsel %vm802_vm13, %v3582_v38, %v795_v48  ;;  %v703_v51 = vsel %vm699_vm8, %v698_v39, %v3478_v18  ;;  %vm3599_vm0 = vcmp.eq.s32.totalorder %v670_v34, 1  ;;  %v1542_v18 = vld [vmem:[%s4972_s6] sm:$0xff]  ;;  %vm3628_vm1 = vcmp.eq.s32.totalorder %v773_v60, 1 }
  0xbe   :  { %v830_v41 = vsel %vm826_vm12, %v806_v1, 0.0  ;;  %v727_v16 = vsel %vm723_vm11, %v703_v51, 0.0  ;;  %1451 = vrot.lane.b32.xlu1 %v2765_v4, %s2671_s27  ;;  %vm995_vm4 = vcmp.ge.s32.totalorder %v994_v2, 0  ;;  %vm996_vm7 = vcmp.lt.s32.totalorder %v994_v2, 16 }
  0xbf   :  { %1445 = vrot.lane.b32.xlu0 %v2744_v0, %s2671_s27  ;;  %v838_v50 = vrot.slane %v830_v41, 4  ;;  %v735_v53 = vrot.slane %v727_v16, 4  ;;  %vm3636_vm12 = vmand %vm995_vm4, %vm996_vm7  ;;  %vm5138_vm11 = vcmp.lt.s32.totalorder %v2899_v23, 16  ;;  %vm3653_vm4 = vcmp.eq.s32.totalorder %v718_v42, 1 }
  0xc0   :  { %v3608_v11 = vpop.permute.xlu1 %649  ;;  %v648_v4 = vpop.permute.xlu0 %647  ;;  %vm3657_vm7 = vcmp.eq.s32.totalorder %v722_v56, 1  ;;  %v769_v47 = vrot.slane %v3587_v37, %v2874_v17  ;;  %v674_v55 = vrot.slane %v3551_v24, %v2889_v21  ;;  %v678_v35 = vrot.slane %v3551_v24, %v2905_v26 }
  0xc1   :  { %846 = vst [vmem:[#allocation2 + $0xa0] sm:$0xf0] %v838_v50  ;;  %743 = vst [vmem:[#allocation2 + $0x80] sm:$0xf0] %v735_v53  ;;  %v658_v0 = vsel %vm655_vm3, %v648_v4, %v3608_v11 }
  0xc2   :  { %v684_v45 = vsel %vm3599_vm0, %v658_v0, 0.0  ;;  %v1505_v63 = vld [vmem:[#allocation2 + $0x78] sm:$0xff]  ;;  %v1504_v61 = vld [vmem:[#allocation2 + $0x70] sm:$0xff]  ;;  %vm895_vm0 = vmand %vm3617_vm6, %vm5138_vm11  ;;  %vm3665_vm11 = vcmp.eq.s32.totalorder %v666_v62, 1 }
  0xc3   :  { %v1501_v32 = vld [vmem:[#allocation2 + $0x58] sm:$0xff]  ;;  %v1500_v44 = vld [vmem:[#allocation2 + $0x50] sm:$0xff]  ;;  %1545 = vperm.xlu0 %2544, %v1542_v18   ;;  %688 = vst [vmem:[#allocation2 + $0x88] sm:$0xf] %v684_v45  ;;  %vm998_vm6 = vmand %vm3636_vm12, %vm5143_vm15  ;;  %v3674_v31 = vsel %vm895_vm0, 1, %v2648_v3  ;;  %vm5148_vm0 = vcmp.lt.s32.totalorder %v2946_v33, 16 }
  0xc4   :  { %v2441_v27 = vpack.c.bf16 %v1505_v63, %v1501_v32  ;;  %v3640_v9 = vpop.permute.xlu1 %749  ;;  %v748_v49 = vpop.permute.xlu0 %747  ;;  %v2443_v14 = vpack.c.bf16 %v1504_v61, %v1500_v44  ;;  %vm999_vm15 = vmand %vm998_vm6, %vm5148_vm0  ;;  %v904_v41 = vrot.slane %v3674_v31, %v2858_v13  ;;  %vm3704_vm6 = vcmp.eq.s32.totalorder %v769_v47, 1 }
  0xc5   :  { %v758_v20 = vsel %vm755_vm14, %v748_v49, %v3640_v9 }
  0xc6   :  { %2442 = vmatprep.subr.bf16.mxu1 %v2441_v27  ;;  %v787_v29 = vsel %vm3628_vm1, %v758_v20, 0.0  ;;  %vm3686_vm1 = vcmp.eq.s32.totalorder %v821_v22, 1  ;;  %v777_v20 = vrot.slane %v3587_v37, %v2889_v21 }
  0xc7   :  { %2444 = vmatpush1.bf16.msra.mxu1 %v2443_v14  ;;  %791 = vst [vmem:[#allocation2 + $0xa8] sm:$0xf] %v787_v29  ;;  %v781_v29 = vrot.slane %v3587_v37, %v2905_v26 }
  0xc8   :  { %v696_v52 = vpop.permute.xlu1 %695  ;;  %v3676_v43 = vpop.permute.xlu0 %653 }
  0xc9   :  { %v700_v34 = vsel %vm699_vm8, %v696_v52, %v698_v39  ;;  %v701_v2 = vsel %vm699_vm8, %v3476_v40, %v696_v52  ;;  %v659_v6 = vsel %vm655_vm3, %v3676_v43, %v648_v4  ;;  %vm3700_vm8 = vcmp.eq.s32.totalorder %v825_v46, 1 }
  0xca   :  { %v729_v51 = vsel %vm3653_vm4, %v701_v2, 0.0  ;;  %v730_v39 = vsel %vm3657_vm7, %v700_v34, 0.0  ;;  %v683_v40 = vsel %vm3665_vm11, %v659_v6, 0.0  ;;  %v3709_v4 = vsel %vm999_vm15, 1, %v2648_v3  ;;  %v1507_v42 = vld [vmem:[#allocation2 + $0x88] sm:$0xff] }
  0xcb   :  { %v737_v16 = vrot.slane %v729_v51, 4  ;;  %v738_v50 = vrot.slane %v730_v39, 4  ;;  %687 = vst [vmem:[#allocation2 + $0x80] sm:$0xf] %v683_v40  ;;  %vm4995_vm4 = vcmp.lt.s32.totalorder %v2968_v36, 127  ;;  %vm3726_vm7 = vcmp.eq.s32.totalorder %v904_v41, 1 }
  0xcc   :  { %v799_v60 = vpop.permute.xlu1 %798  ;;  %v754_v18 = vpop.permute.xlu0 %753  ;;  %v1008_v61 = vrot.slane %v3709_v4, %v2858_v13  ;;  %vm5155_vm11 = vcmp.ge.s32.totalorder %v3171_v12, 0  ;;  %vm3757_vm15 = vcmp.eq.s32.totalorder %v777_v20, 1  ;;  %v1004_v41 = vrot.slane %v3709_v4, %v2874_v17 }
  0xcd   :  { %745 = vst [vmem:[#allocation2 + $0x90] sm:$0xf0] %v737_v16  ;;  %746 = vst [vmem:[#allocation2 + $0x98] sm:$0xf0] %v738_v50  ;;  %v803_v0 = vsel %vm802_vm13, %v799_v60, %v3582_v38  ;;  %v804_v48 = vsel %vm802_vm13, %v3507_v54, %v799_v60  ;;  %v759_v45 = vsel %vm755_vm14, %v754_v18, %v748_v49  ;;  %vm989_vm13 = vcmp.lt.s32.totalorder %v2968_v36, 114 }
  0xce   :  { %v832_v32 = vsel %vm3686_vm1, %v804_v48, 0.0  ;;  %v833_v63 = vsel %vm3700_vm8, %v803_v0, 0.0  ;;  %v786_v44 = vsel %vm3704_vm6, %v759_v45, 0.0  ;;  %v1511_v54 = vld [vmem:[#allocation2 + $0xa8] sm:$0xff]  ;;  %vm950_vm1 = vmand %vm2837_vm5, %vm5155_vm11  ;;  %vm1018_vm0 = vcmp.eq.s32.totalorder %v1008_v61, 1 }
  0xcf   :  { %v840_v56 = vrot.slane %v832_v32, 4  ;;  %v841_v57 = vrot.slane %v833_v63, 4  ;;  %790 = vst [vmem:[#allocation2 + $0xa0] sm:$0xf] %v786_v44  ;;  %v2421_v27 = vpack.c.bf16 %v1511_v54, %v1507_v42  ;;  %vm5158_vm8 = vcmp.lt.s32.totalorder %v3171_v12, 16 }
  0xd0   :  { %v3732_v62 = vpop.permute.xlu1 %885  ;;  %v884_v49 = vpop.permute.xlu0 %883  ;;  %vm951_vm6 = vmand %vm950_vm1, %vm5158_vm8  ;;  %vm3767_vm11 = vcmp.eq.s32.totalorder %v674_v55, 1  ;;  %v900_v16 = vrot.slane %v3674_v31, %v2874_v17  ;;  %v912_v61 = vrot.slane %v3674_v31, %v2905_v26 }
  0xd1   :  { %848 = vst [vmem:[#allocation2 + $0xb0] sm:$0xf0] %v840_v56  ;;  %849 = vst [vmem:[#allocation2 + $0xb8] sm:$0xf0] %v841_v57  ;;  %v891_v14 = vsel %vm4995_vm4, %v884_v49, %v3732_v62  ;;  %2422 = vmatprep.subr.bf16.mxu0 %v2421_v27  ;;  %vm3771_vm4 = vcmp.eq.s32.totalorder %v678_v35, 1  ;;  %v3780_v7 = vsel %vm951_vm6, 1, %v2648_v3  ;;  %v908_v27 = vrot.slane %v3674_v31, %v2889_v21 }
  0xd2   :  { %v918_v22 = vsel %vm3726_vm7, %v891_v14, 0.0  ;;  %vm3763_vm7 = vcmp.eq.s32.totalorder %v781_v29, 1  ;;  %v1506_v1 = vld [vmem:[#allocation2 + $0x80] sm:$0xff]  ;;  %vm913_vm1 = vcmp.eq.s32.totalorder %v900_v16, 1  ;;  %v956_v54 = vrot.slane %v3780_v7, %v2874_v17 }
  0xd3   :  { %v926_v58 = vrot.slane %v918_v22, 4  ;;  %vm5167_vm6 = vcmp.lt.s32.totalorder %v2834_v8, 16 }
  0xd4   :  { %v3752_v46 = vpop.permute.xlu1 %985  ;;  %v984_v47 = vpop.permute.xlu0 %983 }
  0xd5   :  { %934 = vst [vmem:[#allocation2 + $0xc8] sm:$0xf0] %v926_v58  ;;  %v991_v37 = vsel %vm989_vm13, %v984_v47, %v3752_v46 }
  0xd6   :  { %v1022_v24 = vsel %vm1018_vm0, %v991_v37, 0.0  ;;  %v1510_v51 = vld [vmem:[#allocation2 + $0xa0] sm:$0xff]  ;;  %vm945_vm0 = vcmp.lt.s32.totalorder %v2968_v36, 126 }
  0xd7   :  { %v1030_v39 = vrot.slane %v1022_v24, 4  ;;  %v2423_v40 = vpack.c.bf16 %v1510_v51, %v1506_v1  ;;  %v1012_v1 = vrot.slane %v3709_v4, %v2889_v21  ;;  %v1016_v51 = vrot.slane %v3709_v4, %v2905_v26 }
  0xd8   :  { %v752_v50 = vpop.permute.xlu1 %751  ;;  %v652_v53 = vpop.permute.xlu0 %651 }
  0xd9   :  { %1038 = vst [vmem:[#allocation2 + $0xe8] sm:$0xf0] %v1030_v39  ;;  %v756_v60 = vsel %vm755_vm14, %v752_v50, %v754_v18  ;;  %v757_v0 = vsel %vm755_vm14, %v3640_v9, %v752_v50  ;;  %v656_v48 = vsel %vm655_vm3, %v652_v53, %v3676_v43  ;;  %v657_v45 = vsel %vm655_vm3, %v3608_v11, %v652_v53 }
  0xda   :  { %2424 = vmatpush1.bf16.msra.mxu0 %v2423_v40  ;;  %v788_v32 = vsel %vm3757_vm15, %v757_v0, 0.0  ;;  %v789_v63 = vsel %vm3763_vm7, %v756_v60, 0.0  ;;  %v685_v18 = vsel %vm3767_vm11, %v657_v45, 0.0  ;;  %v686_v9 = vsel %vm3771_vm4, %v656_v48, 0.0 }
  0xdb   :  { %792 = vst [vmem:[#allocation2 + $0xb0] sm:$0xf] %v788_v32  ;;  %793 = vst [vmem:[#allocation2 + $0xb8] sm:$0xf] %v789_v63  ;;  %vm1017_vm14 = vcmp.eq.s32.totalorder %v1004_v41, 1  ;;  %v960_v11 = vrot.slane %v3780_v7, %v2858_v13  ;;  %vm5165_vm3 = vcmp.lt.s32.totalorder %v2968_v36, 127 }
  0xdc   :  { %689 = vst [vmem:[#allocation2 + $0x90] sm:$0xf] %v685_v18  ;;  %690 = vst [vmem:[#allocation2 + $0x98] sm:$0xf] %v686_v9  ;;  %v982_v43 = vpop.permute.xlu1 %981  ;;  %v882_v44 = vpop.permute.xlu0 %881  ;;  %vm5166_vm4 = vcmp.ge.s32.totalorder %v2834_v8, 0  ;;  %vm3829_vm11 = vcmp.eq.s32.totalorder %v956_v54, 1  ;;  %v964_v54 = vrot.slane %v3780_v7, %v2889_v21 }
  0xdd   :  { %v992_v38 = vsel %vm989_vm13, %v982_v43, %v984_v47  ;;  %v892_v42 = vsel %vm5165_vm3, %v882_v44, %v884_v49  ;;  %vm1098_vm15 = vmand %vm3636_vm12, %vm5166_vm4  ;;  %vm970_vm8 = vcmp.eq.s32.totalorder %v960_v11, 1  ;;  %vm3841_vm3 = vcmp.eq.s32.totalorder %v908_v27, 1 }
  0xde   :  { %v1021_v56 = vsel %vm1017_vm14, %v992_v38, 0.0  ;;  %v917_v57 = vsel %vm913_vm1, %v892_v42, 0.0  ;;  %vm3822_vm7 = vmand %vm1098_vm15, %vm5167_vm6  ;;  %vm5172_vm14 = vcmp.ge.s32.totalorder %v3171_v12, 0  ;;  %vm3845_vm4 = vcmp.eq.s32.totalorder %v912_v61, 1  ;;  %v1515_v61 = vld [vmem:[#allocation2 + $0xc8] sm:$0xff] }
  0xdf   :  { %v1029_v14 = vrot.slane %v1021_v56, 4  ;;  %v925_v49 = vrot.slane %v917_v57, 4  ;;  %vm3837_vm1 = vmand %vm3636_vm12, %vm5172_vm14  ;;  %v3856_v39 = vsel %vm3822_vm7, 1, %v2648_v3  ;;  %vm5179_vm15 = vcmp.lt.s32.totalorder %v2968_v36, 127 }
  0xe0   :  { %v3818_v20 = vpop.permute.xlu1 %941  ;;  %v940_v22 = vpop.permute.xlu0 %939  ;;  %vm5181_vm6 = vcmp.lt.s32.totalorder %v3171_v12, 16  ;;  %vm3880_vm14 = vcmp.eq.s32.totalorder %v1012_v1, 1 }
  0xe1   :  { %1037 = vst [vmem:[#allocation2 + $0xe0] sm:$0xf0] %v1029_v14  ;;  %933 = vst [vmem:[#allocation2 + $0xc0] sm:$0xf0] %v925_v49  ;;  %v947_v55 = vsel %vm945_vm0, %v940_v22, %v3818_v20 }
  0xe2   :  { %v974_v58 = vsel %vm970_vm8, %v947_v55, 0.0  ;;  %v1513_v24 = vld [vmem:[#allocation2 + $0xb8] sm:$0xff]  ;;  %v1512_v6 = vld [vmem:[#allocation2 + $0xb0] sm:$0xff]  ;;  %vm5180_vm8 = vmmov %vm5179_vm15 }
  0xe3   :  { %v1509_v52 = vld [vmem:[#allocation2 + $0x98] sm:$0xff]  ;;  %v1508_v34 = vld [vmem:[#allocation2 + $0x90] sm:$0xff]  ;;  %978 = vst [vmem:[#allocation2 + $0xe8] sm:$0xf] %v974_v58  ;;  %vm1199_vm7 = vmand %vm3837_vm1, %vm5181_vm6  ;;  %vm3884_vm1 = vcmp.eq.s32.totalorder %v1016_v51, 1  ;;  %vm5191_vm6 = vcmp.lt.s32.totalorder %v2903_v25, 16 }
  0xe4   :  { %v2445_v2 = vpack.c.bf16 %v1513_v24, %v1509_v52  ;;  %v3858_v40 = vpop.permute.xlu1 %937  ;;  %v888_v41 = vpop.permute.xlu0 %887  ;;  %v2447_v16 = vpack.c.bf16 %v1512_v6, %v1508_v34  ;;  %v1112_v6 = vrot.slane %v3856_v39, %v2889_v21 }
  0xe5   :  { %v948_v50 = vsel %vm945_vm0, %v3858_v40, %v940_v22  ;;  %v890_v53 = vsel %vm5179_vm15, %v3732_v62, %v888_v41  ;;  %v893_v4 = vsel %vm5180_vm8, %v888_v41, %v882_v44  ;;  %v1108_v62 = vrot.slane %v3856_v39, %v2858_v13 }
  0xe6   :  { %2446 = vmatprep.subr.bf16.mxu1 %v2445_v2  ;;  %v973_v60 = vsel %vm3829_vm11, %v948_v50, 0.0  ;;  %v919_v0 = vsel %vm3841_vm3, %v890_v53, 0.0  ;;  %v920_v48 = vsel %vm3845_vm4, %v893_v4, 0.0  ;;  %v3891_v44 = vsel %vm1199_vm7, 1, %v2648_v3  ;;  %v3963_v53 = vld [vmem:[%s4967_s1] sm:$0xf] }
  0xe7   :  { %2448 = vmatpush1.bf16.msra.mxu1 %v2447_v16  ;;  %977 = vst [vmem:[#allocation2 + $0xe0] sm:$0xf] %v973_v60  ;;  %v927_v45 = vrot.slane %v919_v0, 4  ;;  %v928_v32 = vrot.slane %v920_v48, 4  ;;  %vm1093_vm11 = vcmp.lt.s32.totalorder %v2968_v36, 112  ;;  %vm3905_vm3 = vcmp.eq.s32.totalorder %v1108_v62, 1 }
  0xe8   :  { %v3888_v9 = vpop.permute.xlu1 %1087  ;;  %v988_v11 = vpop.permute.xlu0 %987  ;;  %v1208_v29 = vrot.slane %v3891_v44, %v2858_v13  ;;  %vm3923_vm15 = vcmp.eq.s32.totalorder %v964_v54, 1  ;;  %vm1193_vm8 = vcmp.lt.s32.totalorder %v2968_v36, 110  ;;  %v1204_v58 = vrot.slane %v3891_v44, %v2874_v17  ;;  %v1514_v24 = vld [vmem:[#allocation2 + $0xc0] sm:$0xff] }
  0xe9   :  { %935 = vst [vmem:[#allocation2 + $0xd0] sm:$0xf0] %v927_v45  ;;  %936 = vst [vmem:[#allocation2 + $0xd8] sm:$0xf0] %v928_v32  ;;  %v990_v38 = vsel %vm989_vm13, %v3752_v46, %v988_v11  ;;  %v993_v42 = vsel %vm989_vm13, %v988_v11, %v982_v43  ;;  %v968_v43 = vrot.slane %v3780_v7, %v2905_v26  ;;  %vm5188_vm13 = vcmp.ge.s32.totalorder %v2903_v25, 0  ;;  %v3952_v1 = vpop.f32.mrb[0].mxu0 }
  0xea   :  { %v1023_v56 = vsel %vm3880_vm14, %v990_v38, 0.0  ;;  %v1024_v57 = vsel %vm3884_vm1, %v993_v42, 0.0  ;;  %v1519_v46 = vld [vmem:[#allocation2 + $0xe8] sm:$0xff]  ;;  %vm1054_vm4 = vmand %vm3636_vm12, %vm5188_vm13  ;;  %v1104_v2 = vrot.slane %v3856_v39, %v2874_v17  ;;  %vm5196_vm1 = vcmp.ge.s32.totalorder %v2899_v23, 0  ;;  %v3954_v51 = vpop.f32.mrb[0].mxu1  ;;  %v3966_v4 = vpop.f32.mrb[1].mxu0 }
  0xeb   :  { %v1031_v14 = vrot.slane %v1023_v56, 4  ;;  %v1032_v49 = vrot.slane %v1024_v57, 4  ;;  %v2425_v22 = vpack.c.bf16 %v1519_v46, %v1515_v61  ;;  %vm3932_vm7 = vmand %vm1054_vm4, %vm5191_vm6  ;;  %vm3938_vm14 = vcmp.eq.s32.totalorder %v968_v43, 1  ;;  %v3968_v60 = vpop.f32.mrb[1].mxu1 }
  0xec   :  { %v1188_v55 = vpop.permute.xlu1 %1187  ;;  %v3917_v31 = vpop.permute.xlu0 %1089  ;;  %vm3948_vm13 = vmand %vm3636_vm12, %vm5196_vm1  ;;  %v1254_v59 = vadd.s32 2, %v3963_v53  ;;  %v3975_v62 = vsel %vm3932_vm7, 1, %v2648_v3  ;;  %vm3986_vm12 = vcmp.eq.s32.totalorder %v1204_v58, 1  ;;  %vm5203_vm4 = vcmp.lt.s32.totalorder %v2899_v23, 16 }
  0xed   :  { %1039 = vst [vmem:[#allocation2 + $0xf0] sm:$0xf0] %v1031_v14  ;;  %1040 = vst [vmem:[#allocation2 + $0xf8] sm:$0xf0] %v1032_v49  ;;  %v1095_v7 = vsel %vm1093_vm11, %v3888_v9, %v3917_v31  ;;  %2426 = vmatprep.subr.bf16.mxu0 %v2425_v22  ;;  %v1064_v54 = vrot.slane %v3975_v62, %v2858_v13 }
  0xee   :  { %v1122_v37 = vsel %vm3905_vm3, %v1095_v7, 0.0  ;;  %v1518_v34 = vld [vmem:[#allocation2 + $0xe0] sm:$0xff]  ;;  %vm3956_vm3 = vcmp.eq.s32.totalorder %v1208_v29, 1  ;;  %vm1155_vm6 = vmand %vm3948_vm13, %vm5203_vm4  ;;  %vm1255_vm7 = vcmp.ge.s32.totalorder %v1254_v59, 0  ;;  %vm1256_vm1 = vcmp.lt.s32.totalorder %v1254_v59, 16 }
  0xef   :  { %v1130_v41 = vrot.slane %v1122_v37, 4  ;;  %v2427_v50 = vpack.c.bf16 %v1518_v34, %v1514_v24  ;;  %v4009_v27 = vsel %vm1155_vm6, 1, %v2648_v3  ;;  %vm4026_vm13 = vcmp.eq.s32.totalorder %v1064_v54, 1 }
  0xf0   :  { %v944_v0 = vpop.permute.xlu1 %943  ;;  %v3970_v48 = vpop.permute.xlu0 %1189  ;;  %v1517_v47 = vld [vmem:[#allocation2 + $0xd8] sm:$0xff]  ;;  %vm1149_vm4 = vcmp.lt.s32.totalorder %v2968_v36, 111  ;;  %v1516_v34 = vld [vmem:[#allocation2 + $0xd0] sm:$0xff]  ;;  %v1160_v38 = vrot.slane %v4009_v27, %v2874_v17 }
  0xf1   :  { %1138 = vst [vmem:[#allocation2 + $0x108] sm:$0xf0] %v1130_v41  ;;  %v946_v45 = vsel %vm945_vm0, %v3818_v20, %v944_v0  ;;  %v949_v32 = vsel %vm945_vm0, %v944_v0, %v3858_v40  ;;  %v1195_v63 = vsel %vm1193_vm8, %v1188_v55, %v3970_v48  ;;  %2428 = vmatpush1.bf16.msra.mxu0 %v2427_v50  ;;  %vm4000_vm0 = vcmp.eq.s32.totalorder %v1104_v2, 1 }
  0xf2   :  { %v975_v20 = vsel %vm3923_vm15, %v946_v45, 0.0  ;;  %v976_v40 = vsel %vm3938_vm14, %v949_v32, 0.0  ;;  %v1222_v11 = vsel %vm3956_vm3, %v1195_v63, 0.0  ;;  %vm1049_vm15 = vcmp.lt.s32.totalorder %v2968_v36, 113  ;;  %vm4022_vm14 = vmand %vm1255_vm7, %vm1256_vm1 }
  0xf3   :  { %979 = vst [vmem:[#allocation2 + $0xf0] sm:$0xf] %v975_v20  ;;  %980 = vst [vmem:[#allocation2 + $0xf8] sm:$0xf] %v976_v40  ;;  %v1230_v42 = vrot.slane %v1222_v11, 4  ;;  %vm5210_vm3 = vcmp.ge.s32.totalorder %v2903_v25, 0  ;;  %v1116_v41 = vrot.slane %v3856_v39, %v2905_v26  ;;  %v1060_v0 = vrot.slane %v3975_v62, %v2874_v17 }
  0xf4   :  { %v4006_v56 = vpop.permute.xlu1 %1185  ;;  %v1086_v57 = vpop.permute.xlu0 %1085  ;;  %v1212_v63 = vrot.slane %v3891_v44, %v2889_v21  ;;  %vm4071_vm1 = vcmp.eq.s32.totalorder %v1112_v6, 1  ;;  %v1216_v11 = vrot.slane %v3891_v44, %v2905_v26  ;;  %v1168_v20 = vrot.slane %v4009_v27, %v2889_v21 }
  0xf5   :  { %1238 = vst [vmem:[#allocation2 + $0x128] sm:$0xf0] %v1230_v42  ;;  %v1196_v61 = vsel %vm1193_vm8, %v4006_v56, %v1188_v55  ;;  %v1096_v46 = vsel %vm1093_vm11, %v1086_v57, %v3888_v9  ;;  %v1164_v9 = vrot.slane %v4009_v27, %v2858_v13  ;;  %v1172_v40 = vrot.slane %v4009_v27, %v2905_v26 }
  0xf6   :  { %v1221_v43 = vsel %vm3986_vm12, %v1196_v61, 0.0  ;;  %v1121_v14 = vsel %vm4000_vm0, %v1096_v46, 0.0  ;;  %vm4041_vm12 = vmand %vm4022_vm14, %vm5210_vm3  ;;  %vm5215_vm0 = vcmp.lt.s32.totalorder %v2903_v25, 16  ;;  %vm5220_vm3 = vcmp.ge.s32.totalorder %v2899_v23, 0 }
  0xf7   :  { %v1229_v22 = vrot.slane %v1221_v43, 4  ;;  %v1129_v29 = vrot.slane %v1121_v14, 4  ;;  %vm4052_vm6 = vcmp.eq.s32.totalorder %v1164_v9, 1  ;;  %vm1303_vm7 = vmand %vm4041_vm12, %vm5215_vm0  ;;  %vm4083_vm0 = vcmp.eq.s32.totalorder %v1060_v0, 1 }
  0xf8   :  { %v4032_v7 = vpop.permute.xlu1 %1045  ;;  %v1044_v35 = vpop.permute.xlu0 %1043  ;;  %vm1402_vm12 = vmand %vm4022_vm14, %vm5220_vm3  ;;  %v4092_v42 = vsel %vm1303_vm7, 1, %v2648_v3  ;;  %vm5225_vm7 = vcmp.lt.s32.totalorder %v2899_v23, 16 }
  0xf9   :  { %1237 = vst [vmem:[#allocation2 + $0x120] sm:$0xf0] %v1229_v22  ;;  %1137 = vst [vmem:[#allocation2 + $0x100] sm:$0xf0] %v1129_v29  ;;  %v1051_v58 = vsel %vm1049_vm15, %v1044_v35, %v4032_v7  ;;  %v1312_v29 = vrot.slane %v4092_v42, %v2858_v13 }
  0xfa   :  { %v1078_v52 = vsel %vm4026_vm13, %v1051_v58, 0.0  ;;  %v1521_v24 = vld [vmem:[#allocation2 + $0xf8] sm:$0xff]  ;;  %v1520_v2 = vld [vmem:[#allocation2 + $0xf0] sm:$0xff]  ;;  %vm4075_vm13 = vcmp.eq.s32.totalorder %v1116_v41, 1  ;;  %vm1403_vm3 = vmand %vm1402_vm12, %vm5225_vm7  ;;  %vm4122_vm12 = vcmp.eq.s32.totalorder %v1160_v38, 1  ;;  %v1072_v38 = vrot.slane %v3975_v62, %v2905_v26 }
  0xfb   :  { %1082 = vst [vmem:[#allocation2 + $0x108] sm:$0xf] %v1078_v52  ;;  %v2449_v50 = vpack.c.bf16 %v1521_v24, %v1517_v47  ;;  %v2451_v59 = vpack.c.bf16 %v1520_v2, %v1516_v34  ;;  %v4127_v37 = vsel %vm1403_vm3, 1, %v2648_v3  ;;  %vm4175_vm3 = vcmp.eq.s32.totalorder %v1168_v20, 1 }
  0xfc   :  { %v4058_v45 = vpop.permute.xlu1 %1145  ;;  %v1144_v32 = vpop.permute.xlu0 %1143 }
  0xfd   :  { %v1151_v39 = vsel %vm1149_vm4, %v1144_v32, %v4058_v45  ;;  %2450 = vmatprep.subr.bf16.mxu1 %v2449_v50 }
  0xfe   :  { %v1178_v18 = vsel %vm4052_vm6, %v1151_v39, 0.0  ;;  %2452 = vmatpush1.bf16.msra.mxu1 %v2451_v59  ;;  %vm4104_vm6 = vcmp.eq.s32.totalorder %v1212_v63, 1 }
  0xff   :  { %1182 = vst [vmem:[#allocation2 + $0x128] sm:$0xf] %v1178_v18 }
 0x100   :  { %v1092_v54 = vpop.permute.xlu1 %1091  ;;  %v4094_v61 = vpop.permute.xlu0 %1041 }
 0x101   :  { %v1094_v46 = vsel %vm1093_vm11, %v3917_v31, %v1092_v54  ;;  %v1097_v43 = vsel %vm1093_vm11, %v1092_v54, %v1086_v57  ;;  %v1052_v44 = vsel %vm1049_vm15, %v4094_v61, %v1044_v35  ;;  %vm4118_vm11 = vcmp.eq.s32.totalorder %v1216_v11, 1 }
 0x102   :  { %v1123_v22 = vsel %vm4071_vm1, %v1094_v46, 0.0  ;;  %v1124_v31 = vsel %vm4075_vm13, %v1097_v43, 0.0  ;;  %v1077_v57 = vsel %vm4083_vm0, %v1052_v44, 0.0  ;;  %vm4996_vm1 = vcmp.lt.s32.totalorder %v2968_v36, 97  ;;  %v1523_v16 = vld [vmem:[#allocation2 + $0x108] sm:$0xff] }
 0x103   :  { %v1131_v55 = vrot.slane %v1123_v22, 4  ;;  %v1132_v9 = vrot.slane %v1124_v31, 4  ;;  %1081 = vst [vmem:[#allocation2 + $0x100] sm:$0xf] %v1077_v57  ;;  %vm4144_vm13 = vcmp.eq.s32.totalorder %v1312_v29, 1  ;;  %v1068_v11 = vrot.slane %v3975_v62, %v2889_v21 }
 0x104   :  { %v1192_v58 = vpop.permute.xlu1 %1191  ;;  %v1142_v47 = vpop.permute.xlu0 %1141  ;;  %vm5232_vm0 = vcmp.ge.s32.totalorder %v2946_v33, 0  ;;  %v1308_v35 = vrot.slane %v4092_v42, %v2874_v17  ;;  %v1316_v44 = vrot.slane %v4092_v42, %v2889_v21  ;;  %v1320_v31 = vrot.slane %v4092_v42, %v2905_v26 }
 0x105   :  { %1139 = vst [vmem:[#allocation2 + $0x110] sm:$0xf0] %v1131_v55  ;;  %1140 = vst [vmem:[#allocation2 + $0x118] sm:$0xf0] %v1132_v9  ;;  %v1194_v52 = vsel %vm1193_vm8, %v3970_v48, %v1192_v58  ;;  %v1197_v24 = vsel %vm1193_vm8, %v1192_v58, %v4006_v56  ;;  %v1152_v34 = vsel %vm1149_vm4, %v1142_v47, %v1144_v32  ;;  %vm4997_vm8 = vcmp.lt.s32.totalorder %v2968_v36, 95 }
 0x106   :  { %v1223_v2 = vsel %vm4104_vm6, %v1194_v52, 0.0  ;;  %v1224_v6 = vsel %vm4118_vm11, %v1197_v24, 0.0  ;;  %v1177_v41 = vsel %vm4122_vm12, %v1152_v34, 0.0  ;;  %v1527_v56 = vld [vmem:[#allocation2 + $0x128] sm:$0xff]  ;;  %v1412_v32 = vrot.slane %v4127_v37, %v2858_v13  ;;  %vm1258_vm6 = vmand %vm4022_vm14, %vm5232_vm0 }
 0x107   :  { %v1231_v50 = vrot.slane %v1223_v2, 4  ;;  %v1232_v59 = vrot.slane %v1224_v6, 4  ;;  %1181 = vst [vmem:[#allocation2 + $0x120] sm:$0xf] %v1177_v41  ;;  %v2429_v0 = vpack.c.bf16 %v1527_v56, %v1523_v16  ;;  %vm5235_vm11 = vcmp.lt.s32.totalorder %v2946_v33, 16 }
 0x108   :  { %v4150_v39 = vpop.permute.xlu1 %1293  ;;  %v1292_v63 = vpop.permute.xlu0 %1291  ;;  %vm1422_vm7 = vcmp.eq.s32.totalorder %v1412_v32, 1  ;;  %vm1259_vm12 = vmand %vm1258_vm6, %vm5235_vm11  ;;  %vm4185_vm0 = vcmp.eq.s32.totalorder %v1068_v11, 1  ;;  %v1408_v9 = vrot.slane %v4127_v37, %v2874_v17  ;;  %vm1249_vm11 = vcmp.lt.s32.totalorder %v2968_v36, 98 }
 0x109   :  { %1239 = vst [vmem:[#allocation2 + $0x130] sm:$0xf0] %v1231_v50  ;;  %1240 = vst [vmem:[#allocation2 + $0x138] sm:$0xf0] %v1232_v59  ;;  %v1299_v18 = vsel %vm4996_vm1, %v1292_v63, %v4150_v39  ;;  %2430 = vmatprep.subr.bf16.mxu0 %v2429_v0  ;;  %vm4189_vm1 = vcmp.eq.s32.totalorder %v1072_v38, 1  ;;  %v4202_v52 = vsel %vm1259_vm12, 1, %v2648_v3 }
 0x10a   :  { %v1326_v25 = vsel %vm4144_vm13, %v1299_v18, 0.0  ;;  %vm4181_vm13 = vcmp.eq.s32.totalorder %v1172_v40, 1  ;;  %v1522_v57 = vld [vmem:[#allocation2 + $0x100] sm:$0xff] }
 0x10b   :  { %v1334_v54 = vrot.slane %v1326_v25, 4 }
 0x10c   :  { %v4170_v46 = vpop.permute.xlu1 %1393 }
 0x10d   :  { %v1392_v43 = vpop.permute.xlu0 %1391  ;;  %1342 = vst [vmem:[#allocation2 + $0x148] sm:$0xf0] %v1334_v54 }
 0x10e   :  { %v1399_v27 = vsel %vm4997_vm8, %v1392_v43, %v4170_v46  ;;  %v1526_v29 = vld [vmem:[#allocation2 + $0x120] sm:$0xff]  ;;  %vm5242_vm8 = vcmp.ge.s32.totalorder %v2834_v8, 0 }
 0x10f   :  { %v1426_v62 = vsel %vm1422_vm7, %v1399_v27, 0.0  ;;  %vm1358_vm6 = vmand %vm4022_vm14, %vm5242_vm8  ;;  %v2431_v55 = vpack.c.bf16 %v1526_v29, %v1522_v57  ;;  %vm5243_vm8 = vcmp.lt.s32.totalorder %v2834_v8, 16  ;;  %v1264_v57 = vrot.slane %v4202_v52, %v2874_v17 }
 0x110   :  { %v1434_v33 = vrot.slane %v1426_v62, 4  ;;  %v1148_v23 = vpop.permute.xlu1 %1147  ;;  %vm1359_vm7 = vmand %vm1358_vm6, %vm5243_vm8  ;;  %vm4262_vm6 = vcmp.eq.s32.totalorder %v1316_v44, 1  ;;  %vm5250_vm8 = vcmp.ge.s32.totalorder %v3171_v12, 0 }
 0x111   :  { %v1048_v58 = vpop.permute.xlu0 %1047  ;;  %v1150_v24 = vsel %vm1149_vm4, %v4058_v45, %v1148_v23  ;;  %v1153_v34 = vsel %vm1149_vm4, %v1148_v23, %v1142_v47  ;;  %2432 = vmatpush1.bf16.msra.mxu0 %v2431_v55  ;;  %vm1321_vm4 = vcmp.eq.s32.totalorder %v1308_v35, 1  ;;  %v4230_v56 = vsel %vm1359_vm7, 1, %v2648_v3  ;;  %vm4270_vm7 = vmand %vm4022_vm14, %vm5250_vm8 }
 0x112   :  { %1442 = vst [vmem:[#allocation2 + $0x168] sm:$0xf0] %v1434_v33  ;;  %v1050_v2 = vsel %vm1049_vm15, %v4032_v7, %v1048_v58  ;;  %v1053_v6 = vsel %vm1049_vm15, %v1048_v58, %v4094_v61  ;;  %v1179_v41 = vsel %vm4175_vm3, %v1150_v24, 0.0  ;;  %v1180_v45 = vsel %vm4181_vm13, %v1153_v34, 0.0 }
 0x113   :  { %v1079_v47 = vsel %vm4185_vm0, %v1050_v2, 0.0  ;;  %v1080_v7 = vsel %vm4189_vm1, %v1053_v6, 0.0  ;;  %1183 = vst [vmem:[#allocation2 + $0x130] sm:$0xf] %v1179_v41  ;;  %1184 = vst [vmem:[#allocation2 + $0x138] sm:$0xf] %v1180_v45  ;;  %v1268_v61 = vrot.slane %v4202_v52, %v2858_v13  ;;  %v1368_v25 = vrot.slane %v4230_v56, %v2858_v13 }
 0x114   :  { %1083 = vst [vmem:[#allocation2 + $0x110] sm:$0xf] %v1079_v47  ;;  %1084 = vst [vmem:[#allocation2 + $0x118] sm:$0xf] %v1080_v7  ;;  %vm1421_vm15 = vcmp.eq.s32.totalorder %v1408_v9, 1  ;;  %v4227_v48 = vpop.permute.xlu1 %1389  ;;  %vm5244_vm3 = vcmp.lt.s32.totalorder %v2968_v36, 95  ;;  %v1416_v9 = vrot.slane %v4127_v37, %v2889_v21  ;;  %v1420_v2 = vrot.slane %v4127_v37, %v2905_v26 }
 0x115   :  { %v1290_v16 = vpop.permute.xlu0 %1289  ;;  %v1400_v50 = vsel %vm5244_vm3, %v4227_v48, %v1392_v43  ;;  %vm5245_vm1 = vcmp.lt.s32.totalorder %v2968_v36, 97  ;;  %vm1278_vm12 = vcmp.eq.s32.totalorder %v1268_v61, 1  ;;  %vm1353_vm13 = vcmp.lt.s32.totalorder %v2968_v36, 96 }
 0x116   :  { %v1300_v59 = vsel %vm5245_vm1, %v1290_v16, %v1292_v63  ;;  %v1425_v0 = vsel %vm1421_vm15, %v1400_v50, 0.0  ;;  %vm4248_vm0 = vcmp.eq.s32.totalorder %v1368_v25, 1  ;;  %vm4274_vm15 = vcmp.eq.s32.totalorder %v1320_v31, 1  ;;  %vm5259_vm3 = vmmov %vm5245_vm1 }
 0x117   :  { %v1325_v32 = vsel %vm1321_vm4, %v1300_v59, 0.0  ;;  %v1433_v18 = vrot.slane %v1425_v0, 4  ;;  %vm4278_vm4 = vcmp.eq.s32.totalorder %v1264_v57, 1  ;;  %v1364_v6 = vrot.slane %v4230_v56, %v2874_v17 }
 0x118   :  { %v1333_v20 = vrot.slane %v1325_v32, 4  ;;  %v4240_v40 = vpop.permute.xlu1 %1245  ;;  %vm4286_vm14 = vcmp.eq.s32.totalorder %v1416_v9, 1  ;;  %v1372_v47 = vrot.slane %v4230_v56, %v2889_v21  ;;  %v1376_v7 = vrot.slane %v4230_v56, %v2905_v26 }
 0x119   :  { %v1244_v11 = vpop.permute.xlu0 %1243  ;;  %1441 = vst [vmem:[#allocation2 + $0x160] sm:$0xf0] %v1433_v18  ;;  %v1272_v59 = vrot.slane %v4202_v52, %v2889_v21  ;;  %v1276_v0 = vrot.slane %v4202_v52, %v2905_v26  ;;  %vm4315_vm8 = vcmp.eq.s32.totalorder %v1420_v2, 1 }
 0x11a   :  { %1341 = vst [vmem:[#allocation2 + $0x140] sm:$0xf0] %v1333_v20  ;;  %v1251_v38 = vsel %vm1249_vm11, %v1244_v11, %v4240_v40  ;;  %v1529_v43 = vld [vmem:[#allocation2 + $0x138] sm:$0xff]  ;;  %v1528_v22 = vld [vmem:[#allocation2 + $0x130] sm:$0xff] }
 0x11b   :  { %v1282_v63 = vsel %vm1278_vm12, %v1251_v38, 0.0  ;;  %v1525_v54 = vld [vmem:[#allocation2 + $0x118] sm:$0xff]  ;;  %v1524_v27 = vld [vmem:[#allocation2 + $0x110] sm:$0xff]  ;;  %vm5260_vm12 = vcmp.lt.s32.totalorder %v3171_v12, 16 }
 0x11c   :  { %1286 = vst [vmem:[#allocation2 + $0x148] sm:$0xf] %v1282_v63  ;;  %v2453_v14 = vpack.c.bf16 %v1529_v43, %v1525_v54  ;;  %v1350_v29 = vpop.permute.xlu1 %1349  ;;  %v2455_v55 = vpack.c.bf16 %v1528_v22, %v1524_v27 }
 0x11d   :  { %v1348_v33 = vpop.permute.xlu0 %1347 }
 0x11e   :  { %v1355_v35 = vsel %vm1353_vm13, %v1348_v33, %v1350_v29  ;;  %2454 = vmatprep.subr.bf16.mxu1 %v2453_v14 }
 0x11f   :  { %v1382_v23 = vsel %vm4248_vm0, %v1355_v35, 0.0  ;;  %2456 = vmatpush1.bf16.msra.mxu1 %v2455_v55  ;;  %vm1459_vm0 = vmand %vm4270_vm7, %vm5260_vm12  ;;  %vm4319_vm7 = vcmp.eq.s32.totalorder %v1364_v6, 1  ;;  %vm4350_vm12 = vcmp.eq.s32.totalorder %v1276_v0, 1 }
 0x120   :  { %1386 = vst [vmem:[#allocation2 + $0x168] sm:$0xf] %v1382_v23  ;;  %v1296_v49 = vpop.permute.xlu1 %1295  ;;  %v1460_v52 = vsel %vm1459_vm0, 1, %v2648_v3 }
 0x121   :  { %v1242_v41 = vpop.permute.xlu0 %1241  ;;  %v1298_v61 = vsel %vm5259_vm3, %v4150_v39, %v1296_v49  ;;  %v1301_v37 = vsel %vm5245_vm1, %v1296_v49, %v1290_v16  ;;  %vm4340_vm1 = vcmp.eq.s32.totalorder %v1272_v59, 1  ;;  %v1468_v9 = vrot.slane %v1460_v52, %v2858_v13 }
 0x122   :  { %v1252_v50 = vsel %vm1249_vm11, %v1242_v41, %v1244_v11  ;;  %v1327_v56 = vsel %vm4262_vm6, %v1298_v61, 0.0  ;;  %v1328_v39 = vsel %vm4274_vm15, %v1301_v37, 0.0  ;;  %vm4323_vm6 = vcmp.eq.s32.totalorder %v1372_v47, 1 }
 0x123   :  { %v1281_v16 = vsel %vm4278_vm4, %v1252_v50, 0.0  ;;  %v1335_v32 = vrot.slane %v1327_v56, 4  ;;  %v1336_v18 = vrot.slane %v1328_v39, 4  ;;  %vm4327_vm15 = vcmp.eq.s32.totalorder %v1376_v7, 1 }
 0x124   :  { %1285 = vst [vmem:[#allocation2 + $0x140] sm:$0xf] %v1281_v16  ;;  %v1396_v25 = vpop.permute.xlu1 %1395  ;;  %vm5269_vm4 = vcmp.lt.s32.totalorder %v2968_v36, 95  ;;  %v1476_v45 = vrot.slane %v1460_v52, %v2905_v26 }
 0x125   :  { %v1346_v11 = vpop.permute.xlu0 %1345  ;;  %1343 = vst [vmem:[#allocation2 + $0x150] sm:$0xf0] %v1335_v32  ;;  %1344 = vst [vmem:[#allocation2 + $0x158] sm:$0xf0] %v1336_v18  ;;  %v1398_v54 = vsel %vm5269_vm4, %v4170_v46, %v1396_v25 }
 0x126   :  { %vm5270_vm3 = vmmov %vm5269_vm4  ;;  %v1356_v27 = vsel %vm1353_vm13, %v1346_v11, %v1348_v33  ;;  %v1427_v62 = vsel %vm4286_vm14, %v1398_v54, 0.0  ;;  %vm1453_vm14 = vcmp.lt.s32.totalorder %v2968_v36, 94 }
 0x127   :  { %v1401_v43 = vsel %vm5270_vm3, %v1396_v25, %v4227_v48  ;;  %v1381_v46 = vsel %vm4319_vm7, %v1356_v27, 0.0  ;;  %v1531_v48 = vld [vmem:[#allocation2 + $0x148] sm:$0xff]  ;;  %v1435_v57 = vrot.slane %v1427_v62, 4  ;;  %vm5281_vm7 = vcmask 1043456  }
 0x128   :  { %v1428_v14 = vsel %vm4315_vm8, %v1401_v43, 0.0  ;;  %v1535_v31 = vld [vmem:[#allocation2 + $0x168] sm:$0xff]  ;;  %1385 = vst [vmem:[#allocation2 + $0x160] sm:$0xf] %v1381_v46  ;;  %v1352_v35 = vpop.permute.xlu1 %1351  ;;  %vm4386_vm8 = vcmp.eq.s32.totalorder %v1476_v45, 1  ;;  %v1489_v46 = vld [vmem:[%s4971_s5] sm:$0xff]  ;;  %vm5283_vm4 = vmmov %vm5281_vm7 }
 0x129   :  { %v1436_v33 = vrot.slane %v1428_v14, 4  ;;  %v2433_v55 = vpack.c.bf16 %v1535_v31, %v1531_v48  ;;  %v1248_v23 = vpop.permute.xlu0 %1247  ;;  %1443 = vst [vmem:[#allocation2 + $0x170] sm:$0xf0] %v1435_v57  ;;  %v1354_v58 = vsel %vm1353_vm13, %v1350_v29, %v1352_v35  ;;  %v1357_v42 = vsel %vm1353_vm13, %v1352_v35, %v1346_v11  ;;  %vm5284_vm3 = vmmov %vm5283_vm4 }
 0x12a   :  { %v1250_v24 = vsel %vm1249_vm11, %v4240_v40, %v1248_v23  ;;  %v1253_v34 = vsel %vm1249_vm11, %v1248_v23, %v1242_v41  ;;  %v1383_v2 = vsel %vm4323_vm6, %v1354_v58, 0.0  ;;  %v1384_v6 = vsel %vm4327_vm15, %v1357_v42, 0.0  ;;  %vm5282_vm15 = vmmov %vm5281_vm7 }
 0x12b   :  { %1444 = vst [vmem:[#allocation2 + $0x178] sm:$0xf0] %v1436_v33  ;;  %2434 = vmatprep.subr.bf16.mxu0 %v2433_v55  ;;  %v1283_v29 = vsel %vm4340_vm1, %v1250_v24, 0.0  ;;  %v1284_v49 = vsel %vm4350_vm12, %v1253_v34, 0.0  ;;  %1387 = vst [vmem:[#allocation2 + $0x170] sm:$0xf] %v1383_v2  ;;  %v1472_v40 = vrot.slane %v1460_v52, %v2889_v21  ;;  %v1464_v41 = vrot.slane %v1460_v52, %v2874_v17 }
 0x12c   :  { %1388 = vst [vmem:[#allocation2 + $0x178] sm:$0xf] %v1384_v6  ;;  %1287 = vst [vmem:[#allocation2 + $0x150] sm:$0xf] %v1283_v29  ;;  %vm1478_vm13 = vcmp.eq.s32.totalorder %v1468_v9, 1  ;;  %v1450_v47 = vpop.permute.xlu1 %1449  ;;  %v1530_v50 = vld [vmem:[#allocation2 + $0x140] sm:$0xff] }
 0x12d   :  { %1288 = vst [vmem:[#allocation2 + $0x158] sm:$0xf] %v1284_v49  ;;  %v1448_v7 = vpop.permute.xlu0 %1447  ;;  %vm4378_vm11 = vcmp.eq.s32.totalorder %v1472_v40, 1  ;;  %vm4382_vm0 = vcmp.eq.s32.totalorder %v1464_v41, 1  ;;  %vm1548_vm6 = vcmask 818176  }
 0x12e   :  { %v1455_v61 = vsel %vm1453_vm14, %v1448_v7, %v1450_v47 }
 0x12f   :  { %v1482_v37 = vsel %vm1478_vm13, %v1455_v61, 0.0  ;;  %v1534_v59 = vld [vmem:[#allocation2 + $0x160] sm:$0xff] }
 0x130   :  { %1486 = vst [vmem:[#allocation2 + $0x188] sm:$0xf] %v1482_v37  ;;  %v2435_v0 = vpack.c.bf16 %v1534_v59, %v1530_v50  ;;  %v1452_v32 = vpop.permute.xlu1 %1451 }
 0x131   :  { %v1446_v18 = vpop.permute.xlu0 %1445  ;;  %v1454_v12 = vsel %vm1453_vm14, %v1450_v47, %v1452_v32 }
 0x132   :  { %v1456_v20 = vsel %vm1453_vm14, %v1446_v18, %v1448_v7  ;;  %v1457_v25 = vsel %vm1453_vm14, %v1452_v32, %v1446_v18  ;;  %2436 = vmatpush1.bf16.msra.mxu0 %v2435_v0  ;;  %v1483_v11 = vsel %vm4378_vm11, %v1454_v12, 0.0  ;;  %v1536_v44 = vld [vmem:[#allocation2 + $0x170] sm:$0xff]  ;;  %v1746_v0 = vld [vmem:[%s4973_s7] sm:$0xff]  ;;  %s2672_s7 = smov 48  }
 0x133   :  { %v1481_v38 = vsel %vm4382_vm0, %v1456_v20, 0.0  ;;  %v1484_v63 = vsel %vm4386_vm8, %v1457_v25, 0.0  ;;  %v1537_v54 = vld [vmem:[#allocation2 + $0x178] sm:$0xff]  ;;  %v1532_v43 = vld [vmem:[#allocation2 + $0x150] sm:$0xff]  ;;  %1487 = vst [vmem:[#allocation2 + $0x190] sm:$0xf] %v1483_v11 }
 0x134   :  { %v1533_v52 = vld [vmem:[#allocation2 + $0x158] sm:$0xff]  ;;  %1485 = vst [vmem:[#allocation2 + $0x180] sm:$0xf] %v1481_v38  ;;  %1488 = vst [vmem:[#allocation2 + $0x198] sm:$0xf] %v1484_v63  ;;  %v2459_v62 = vpack.c.bf16 %v1536_v44, %v1532_v43  ;;  %v1756_v32 = vld [vmem:[%s4974_s8] sm:$0xff] }
 0x135   :  { %v2457_v27 = vpack.c.bf16 %v1537_v54, %v1533_v52  ;;  %s2673_s8 = smov 51  }
 0x137   :  { %2458 = vmatprep.subr.bf16.mxu1 %v2457_v27  ;;  %v1539_v14 = vld [vmem:[#allocation2 + $0x188] sm:$0xf] }
 0x138   :  { %2460 = vmatpush1.bf16.msra.mxu1 %v2459_v62  ;;  %2369 = vmatprep.subr.msk.mxu0 %vm5281_vm7, %v1539_v14 }
 0x13a   :  { %v1540_v31 = vld [vmem:[#allocation2 + $0x190] sm:$0xf] }
 0x13b   :  { %v1538_v22 = vld [vmem:[#allocation2 + $0x180] sm:$0xf]  ;;  %v1541_v48 = vld [vmem:[#allocation2 + $0x198] sm:$0xf] }
 0x13c   :  { %2370 = vmatpush1.msk.msra.mxu0 %vm5282_vm15, %v1538_v22  ;;  %2372 = vmatprep.subr.msk.mxu1 %vm5283_vm4, %v1541_v48  ;;  %vm5285_vm4 = vcmp.ge.s32.totalorder %v2834_v8, 0 }
 0x13d   :  { %2371 = vmatmul.mubr.msk.f32.vlgmr.msra.gmra.mrb[2].mxu0 %vm1548_vm6, %v1489_v46  ;;  %2373 = vmatpush1.msk.msra.mxu1 %vm5284_vm3, %v1540_v31 }
 0x13e   :  { %2374 = vmatmul.mubr.msk.f32.vlgmr.msra.gmra.mrb[2].mxu1 %vm1548_vm6, %v1489_v46  ;;  %2251 = vmatprep.mubr.f32.mxu0 %v2651_v5 }
 0x13f   :  { %2322 = vmatprep.mubr.f32.mxu1 %v2651_v5 }
 0x142   :  { %v1546_v57 = vpop.permute.xlu0 %1545 }
 0x210   :  { %v1630_v33 = vpop.f32.mrb[2].mxu0 }
 0x211   :  { %v1631_v55 = vadd.f32 %v1630_v33, %v1546_v57  ;;  %v1632_v9 = vpop.f32.mrb[3].mxu0  ;;  %v1701_v35 = vpop.f32.mrb[2].mxu1 }
 0x212   :  { %v1633_v23 = vadd.f32 %v1632_v9, %v1546_v57  ;;  %v1702_v58 = vadd.f32 %v1701_v35, %v1546_v57  ;;  %v1703_v42 = vpop.f32.mrb[3].mxu1 }
 0x213   :  { %vm1706_vm1 = vcmp.gt.f32.partialorder %v1631_v55, 0.0  ;;  %v1710_v24 = vmul.f32 0.01, %v1631_v55  ;;  %v1704_v34 = vadd.f32 %v1703_v42, %v1546_v57 }
 0x214   :  { %vm1707_vm12 = vcmp.gt.f32.partialorder %v1633_v23, 0.0  ;;  %v1711_v2 = vmul.f32 0.01, %v1633_v23  ;;  %vm1708_vm14 = vcmp.gt.f32.partialorder %v1702_v58, 0.0  ;;  %v1712_v6 = vmul.f32 0.01, %v1702_v58 }
 0x215   :  { %v1714_v29 = vsel %vm1706_vm1, %v1631_v55, %v1710_v24  ;;  %vm1709_vm13 = vcmp.gt.f32.partialorder %v1704_v34, 0.0  ;;  %v1713_v49 = vmul.f32 0.01, %v1704_v34 }
 0x216   :  { %v1724_v40 = vmul.f32 %v1714_v29, %v1714_v29  ;;  %v1715_v5 = vsel %vm1707_vm12, %v1633_v23, %v1711_v2  ;;  %v1716_v41 = vsel %vm1708_vm14, %v1702_v58, %v1712_v6  ;;  %v44_v2 = vld [vmem:[%s4970_s4] sm:$0xff]  ;;  %vm5286_vm14 = vcmp.lt.s32.totalorder %v2834_v8, 16 }
 0x217   :  { %v1725_v45 = vmul.f32 %v1715_v5, %v1715_v5  ;;  %v1718_v47 = vadd.f32 %v1715_v5, %v1714_v29  ;;  %v1717_v7 = vsel %vm1709_vm13, %v1704_v34, %v1713_v49  ;;  %v1726_v61 = vmul.f32 %v1716_v41, %v1716_v41  ;;  %v2177_v6 = vld [vmem:[%s4976_s10] sm:$0xff] }
 0x218   :  { %v1727_v56 = vmul.f32 %v1717_v7, %v1717_v7  ;;  %v2621_v49 = vld [vmem:[%s4968_s2] sm:$0xf] }
 0x219   :  { %v1719_v37 = vadd.f32 %v1718_v47, %v1716_v41  ;;  %v1728_v50 = vadd.f32 %v1725_v45, %v1724_v40  ;;  %v4443_v40 = vadd.s32 4294967293, %v2621_v49 }
 0x21b   :  { %v1720_v59 = vadd.f32 %v1719_v37, %v1717_v7  ;;  %v1729_v39 = vadd.f32 %v1728_v50, %v1726_v61  ;;  %vm5000_vm7 = vcmp.ge.s32.totalorder %v4443_v40, 0  ;;  %vm4999_vm15 = vcmp.lt.s32.totalorder %v4443_v40, 16 }
 0x21c   :  { %v2017_v37 = vadd.s32 3, %v3963_v53  ;;  %vm5322_vm9 = vcmp.lt.s32.totalorder %v4443_v40, 16 }
 0x21d   :  { %1721 = vadd.xlane.f32.xlu1 %v1720_v59  ;;  %v1730_v16 = vadd.f32 %v1729_v39, %v1727_v56 }
 0x21f   :  { %1731 = vadd.xlane.f32.xlu0 %v1730_v16 }
 0x22e   :  { %1749 = vperm.xlu1 %2545, %v1746_v0  }
 0x235   :  { %1759 = vperm.xlu0 %2544, %v1756_v32  }
 0x2aa   :  { %v1722_v18 = vpop.xlane.xlu1 %1721 }
 0x2ab   :  { %v1723_v12 = vmul.f32 0.001953125, %v1722_v18 }
 0x2ac   :  { %v1732_v20 = vpop.xlane.xlu0 %1731 }
 0x2ad   :  { %v1733_v25 = vmul.f32 0.001953125, %v1732_v20  ;;  %v1734_v11 = vmul.f32 %v1723_v12, %v1723_v12  ;;  %v1736_v52 = vsub.f32 %v1714_v29, %v1723_v12  ;;  %v1737_v54 = vsub.f32 %v1715_v5, %v1723_v12 }
 0x2ae   :  { %v1738_v43 = vsub.f32 %v1716_v41, %v1723_v12  ;;  %v1739_v27 = vsub.f32 %v1717_v7, %v1723_v12  ;;  %v1750_v62 = vpop.permute.xlu1 %1749  ;;  %v1779_v29 = vadd.s32 4294967293, %v3963_v53  ;;  %v4446_v5 = vadd.s32 3, %v2621_v49 }
 0x2af   :  { %v1735_v38 = vsub.f32 %v1733_v25, %v1734_v11 }
 0x2b0   :  { %vm1780_vm11 = vcmp.ge.s32.totalorder %v1779_v29, 0  ;;  %vm1781_vm0 = vcmp.lt.s32.totalorder %v1779_v29, 16  ;;  %vm4998_vm12 = vcmp.ge.s32.totalorder %v4446_v5, 0 }
 0x2b1   :  { %v1740_v63 = vadd.f32 1e-05, %v1735_v38  ;;  %vm1782_vm8 = vmand %vm1780_vm11, %vm1781_vm0  ;;  %vm5001_vm0 = vcmp.lt.s32.totalorder %v4446_v5, 16 }
 0x2b2   :  { %vm1785_vm6 = vmand %vm1782_vm8, %vm5000_vm7 }
 0x2b3   :  { %2618 = vrsqrt.f32 %v1740_v63  ;;  %vm1830_vm3 = vmand %vm1782_vm8, %vm5285_vm4 }
 0x2b4   :  { %v1760_v9 = vpop.permute.xlu0 %1759  ;;  %vm1787_vm1 = vmand %vm1785_vm6, %vm4999_vm15 }
 0x2b5   :  { %vm1831_vm13 = vmand %vm1830_vm3, %vm5286_vm14  ;;  %v1788_v41 = vsel %vm1787_vm1, 1, %v2648_v3  ;;  %vm5002_vm3 = vcmp.lt.s32.totalorder %v2968_v36, 48  ;;  %vm5003_vm1 = vcmp.lt.s32.totalorder %v2968_v36, 51 }
 0x2b6   :  { %vm1876_vm11 = vmand %vm1782_vm8, %vm4998_vm12  ;;  %v1832_v45 = vsel %vm1831_vm13, 1, %v2648_v3  ;;  %v1796_v47 = vrot.slane %v1788_v41, %v2858_v13  ;;  %v1792_v39 = vrot.slane %v1788_v41, %v2874_v17  ;;  %v1804_v53 = vrot.slane %v1788_v41, %v2905_v26 }
 0x2b7   :  { %vm1921_vm4 = vmand %vm2837_vm5, %vm5000_vm7  ;;  %v1840_v7 = vrot.slane %v1832_v45, %v2858_v13  ;;  %v1836_v16 = vrot.slane %v1832_v45, %v2874_v17  ;;  %v1848_v0 = vrot.slane %v1832_v45, %v2905_v26  ;;  %v1800_v18 = vrot.slane %v1788_v41, %v2889_v21 }
 0x2b8   :  { %vm1878_vm6 = vmand %vm1876_vm11, %vm5001_vm0  ;;  %vm4482_vm14 = vcmp.eq.s32.totalorder %v1796_v47, 1  ;;  %v1844_v38 = vrot.slane %v1832_v45, %v2889_v21 }
 0x2b9   :  { %vm1922_vm8 = vmand %vm1921_vm4, %vm4999_vm15  ;;  %v4474_v61 = vsel %vm1878_vm6, 1, %v2648_v3  ;;  %vm4486_vm13 = vcmp.eq.s32.totalorder %v1840_v7, 1  ;;  %vm2019_vm6 = vcmp.lt.s32.totalorder %v2017_v37, 16  ;;  %vm4518_vm15 = vcmp.eq.s32.totalorder %v1836_v16, 1 }
 0x2ba   :  { %v4480_v50 = vsel %vm1922_vm8, 1, %v2648_v3  ;;  %v1887_v32 = vrot.slane %v4474_v61, %v2858_v13  ;;  %vm4501_vm11 = vmand %vm2837_vm5, %vm4998_vm12  ;;  %vm4514_vm12 = vcmp.eq.s32.totalorder %v1792_v39, 1  ;;  %vm4538_vm5 = vcmp.eq.s32.totalorder %v1804_v53, 1 }
 0x2bb   :  { %v1931_v11 = vrot.slane %v4480_v50, %v2858_v13  ;;  %vm4526_vm7 = vmand %vm4501_vm11, %vm5001_vm0  ;;  %vm4542_vm4 = vcmp.eq.s32.totalorder %v1848_v0, 1  ;;  %vm4566_vm10 = vcmp.eq.s32.totalorder %v1844_v38, 1  ;;  %v1895_v7 = vrot.slane %v4474_v61, %v2905_v26 }
 0x2bc   :  { %vm4548_vm11 = vcmp.eq.s32.totalorder %v1887_v32, 1  ;;  %v1975_v29 = vsel %vm4526_vm7, 1, %v2648_v3  ;;  %v1891_v39 = vrot.slane %v4474_v61, %v2889_v21  ;;  %v1935_v16 = vrot.slane %v4480_v50, %v2889_v21 }
 0x2bd   :  { %v2619_v44 = vpop.eup %2618  ;;  %vm4552_vm0 = vcmp.eq.s32.totalorder %v1931_v11, 1  ;;  %vm5315_vm7 = vcmp.ge.s32.totalorder %v4443_v40, 0  ;;  %v1979_v0 = vrot.slane %v1975_v29, %v2874_v17  ;;  %v1987_v32 = vrot.slane %v1975_v29, %v2889_v21 }
 0x2be   :  { %v1742_v14 = vmul.f32 %v2619_v44, %v1736_v52  ;;  %v1743_v46 = vmul.f32 %v2619_v44, %v1737_v54  ;;  %v1744_v22 = vmul.f32 %v2619_v44, %v1738_v43  ;;  %v1745_v48 = vmul.f32 %v2619_v44, %v1739_v27 }
 0x2c0   :  { %v1752_v31 = vmul.f32 %v1750_v62, %v1742_v14  ;;  %v1753_v57 = vmul.f32 %v1750_v62, %v1743_v46  ;;  %v1754_v33 = vmul.f32 %v1750_v62, %v1744_v22  ;;  %v1755_v55 = vmul.f32 %v1750_v62, %v1745_v48 }
 0x2c1   :  { %v5299_v46 = vmov 0 }
 0x2c2   :  { %v4417_v35 = vadd.f32 %v1760_v9, %v1752_v31  ;;  %v4419_v23 = vadd.f32 %v1760_v9, %v1753_v57  ;;  %v4421_v58 = vadd.f32 %v1760_v9, %v1754_v33  ;;  %v4423_v42 = vadd.f32 %v1760_v9, %v1755_v55 }
 0x2c3   :  { %v5300_v46 = vsel %vm4538_vm5, 4294967295, %v5299_v46  ;;  %vm5325_vm5 = vcmp.lt.s32.totalorder %v2968_v36, 3 }
 0x2c4   :  { %v2556_v24 = vpack.i.bf16 %v4419_v23, %v4417_v35  ;;  %v2551_v34 = vpack.i.bf16 %v4423_v42, %v4421_v58 }
 0x2c6   :  { %2557 = vrot.lane.b32.xlu0 %v2556_v24, %s2672_s7  ;;  %2547 = vrot.lane.b32.xlu1 %v2556_v24, %s2673_s8 }
 0x2ca   :  { %2567 = vrot.lane.b32.xlu0 %v2556_v24, %s2674_s16  ;;  %2552 = vrot.lane.b32.xlu1 %v2551_v34, %s2673_s8 }
 0x2ce   :  { %2577 = vrot.lane.b32.xlu0 %v2556_v24, %s2675_s17  ;;  %2562 = vrot.lane.b32.xlu1 %v2551_v34, %s2672_s7 }
 0x2d2   :  { %2587 = vrot.lane.b32.xlu0 %v2556_v24, %s2676_s18  ;;  %2572 = vrot.lane.b32.xlu1 %v2551_v34, %s2674_s16 }
 0x2d6   :  { %2597 = vrot.lane.b32.xlu0 %v2556_v24, %s2677_s19  ;;  %2582 = vrot.lane.b32.xlu1 %v2551_v34, %s2675_s17 }
 0x2da   :  { %2607 = vrot.lane.b32.xlu0 %v2556_v24, %s2678_s20  ;;  %2592 = vrot.lane.b32.xlu1 %v2551_v34, %s2676_s18 }
 0x2de   :  { %2096 = vrot.lane.b32.xlu0 %v4417_v35, %s2679_s21  ;;  %2602 = vrot.lane.b32.xlu1 %v2551_v34, %s2677_s19 }
 0x2e2   :  { %2100 = vrot.lane.b32.xlu0 %v4421_v58, %s2679_s21  ;;  %2612 = vrot.lane.b32.xlu1 %v2551_v34, %s2678_s20 }
 0x2e6   :  { %47 = vperm.xlu0 %2544, %v44_v2   ;;  %2098 = vrot.lane.b32.xlu1 %v4419_v23, %s2679_s21  ;;  %v1883_v2 = vrot.slane %v4474_v61, %v2874_v17  ;;  %v1983_v61 = vrot.slane %v1975_v29, %v2858_v13 }
 0x2ea   :  { %2102 = vrot.lane.b32.xlu1 %v4423_v42, %s2679_s21 }
 0x2ee   :  { %2180 = vperm.xlu1 %2545, %v2177_v6   ;;  %v1927_v6 = vrot.slane %v4480_v50, %v2874_v17 }
 0x338   :  { %v4505_v20 = vpop.permute.xlu0 %2557  ;;  %v2548_v25 = vpop.permute.xlu1 %2547 }
 0x339   :  { %v2560_v63 = vunpack.i.h.bf16 %v4505_v20  ;;  %v2559_v52 = vunpack.i.l.bf16 %v4505_v20  ;;  %v2550_v54 = vunpack.i.h.bf16 %v2548_v25  ;;  %v2549_v10 = vunpack.i.l.bf16 %v2548_v25 }
 0x33b   :  { %v1828_v62 = vsel %vm5002_vm3, %v2559_v52, %v2560_v63  ;;  %v1777_v14 = vsel %vm5003_vm1, %v2549_v10, %v2550_v54  ;;  %vm4556_vm3 = vcmp.eq.s32.totalorder %v1800_v18, 1  ;;  %vm5309_vm1 = vcmp.ge.s32.totalorder %v2017_v37, 0 }
 0x33c   :  { %v2461_v48 = vpack.c.bf16 %v1828_v62, %v1777_v14  ;;  %v4546_v31 = vpop.permute.xlu0 %2567  ;;  %v2553_v57 = vpop.permute.xlu1 %2552  ;;  %vm4562_vm8 = vmand %vm5309_vm1, %vm2019_vm6  ;;  %v1939_v37 = vrot.slane %v4480_v50, %v2905_v26  ;;  %v1991_v50 = vrot.slane %v1975_v29, %v2905_v26 }
 0x33d   :  { %v2570_v49 = vunpack.i.h.bf16 %v4546_v31  ;;  %v2569_v41 = vunpack.i.l.bf16 %v4546_v31  ;;  %v2555_v45 = vunpack.i.h.bf16 %v2553_v57  ;;  %v2554_v47 = vunpack.i.l.bf16 %v2553_v57  ;;  %vm5314_vm1 = vmpackc.low %vm4486_vm13, %vm4482_vm14 }
 0x33e   :  { %2463 = vmatprep.subr.msk.bf16.mxu0 %vm5314_vm1, %v2461_v48  ;;  %vm4596_vm6 = vmand %vm4562_vm8, %vm5315_vm7  ;;  %vm5318_vm1 = vcmp.lt.s32.totalorder %v2968_v36, 45  ;;  %vm5319_vm7 = vcmp.lt.s32.totalorder %v2968_v36, 51 }
 0x33f   :  { %v1872_v11 = vsel %vm5318_vm1, %v2569_v41, %v2570_v49  ;;  %v1775_v38 = vsel %vm5319_vm7, %v2554_v47, %v2555_v45  ;;  %vm5320_vm14 = vmmov %vm5319_vm7  ;;  %vm5326_vm1 = vcmp.lt.s32.totalorder %v2968_v36, 48 }
 0x340   :  { %v4600_v56 = vpop.permute.xlu0 %2577  ;;  %v2563_v53 = vpop.permute.xlu1 %2562  ;;  %v1776_v44 = vsel %vm5320_vm14, %v2550_v54, %v2554_v47  ;;  %vm5321_vm2 = vmmov %vm5319_vm7 }
 0x341   :  { %v2580_v18 = vunpack.i.h.bf16 %v4600_v56  ;;  %v2579_v12 = vunpack.i.l.bf16 %v4600_v56  ;;  %v2565_v20 = vunpack.i.h.bf16 %v2563_v53  ;;  %v2564_v25 = vunpack.i.l.bf16 %v2563_v53  ;;  %vm4632_vm13 = vmand %vm4596_vm6, %vm5322_vm9 }
 0x342   :  { %v1778_v62 = vsel %vm5321_vm2, %v2555_v45, %v2549_v10  ;;  %vm5327_vm7 = vmmov %vm5326_vm1  ;;  %vm5329_vm2 = vcmp.ge.s32.totalorder %v2834_v8, 0  ;;  %v4691_v34 = vsel %vm4632_vm13, 1, %v2648_v3 }
 0x343   :  { %v1919_v48 = vsel %vm5325_vm5, %v2579_v12, %v2580_v18  ;;  %v1829_v57 = vsel %vm5326_vm1, %v2565_v20, %v2559_v52  ;;  %v1826_v54 = vsel %vm5327_vm7, %v2564_v25, %v2565_v20  ;;  %vm5328_vm14 = vmmov %vm5326_vm1  ;;  %vm4662_vm1 = vcmp.eq.s32.totalorder %v1883_v2, 1 }
 0x344   :  { %v1827_v10 = vsel %vm5328_vm14, %v2560_v63, %v2564_v25  ;;  %vm4648_vm9 = vmand %vm4562_vm8, %vm5329_vm2  ;;  %v2467_v29 = vpack.c.bf16 %v1919_v48, %v1872_v11  ;;  %v2464_v45 = vpack.c.bf16 %v1829_v57, %v1778_v62  ;;  %v2485_v47 = vpack.c.bf16 %v1826_v54, %v1775_v38  ;;  %v4652_v56 = vpop.permute.xlu0 %2587  ;;  %v2573_v52 = vpop.permute.xlu1 %2572 }
 0x345   :  { %v2488_v59 = vpack.c.bf16 %v1827_v10, %v1776_v44  ;;  %vm2468_vm5 = vmpackc.low %vm4552_vm0, %vm4548_vm11  ;;  %vm4666_vm7 = vcmp.eq.s32.totalorder %v1927_v6, 1  ;;  %vm4670_vm14 = vcmp.eq.s32.totalorder %v1895_v7, 1  ;;  %v2575_v33 = vunpack.i.h.bf16 %v2573_v52 }
 0x346   :  { %vm2489_vm6 = vmpackc.low %vm4566_vm10, %vm4556_vm3  ;;  %v2574_v55 = vunpack.i.l.bf16 %v2573_v52  ;;  %vm5339_vm10 = vnez %v5300_v46  ;;  %vm4684_vm11 = vcmp.eq.s32.totalorder %v1939_v37, 1  ;;  %vm5343_vm2 = vcmp.lt.s32.totalorder %v2834_v8, 16 }
 0x347   :  { %vm5338_vm0 = vmpackc.low %vm4518_vm15, %vm4514_vm12  ;;  %v5354_v7 = vmov 0  ;;  %v5356_v37 = vmov 0  ;;  %vm5361_vm12 = vcmp.lt.s32.totalorder %v2968_v36, 3  ;;  %v2027_v10 = vrot.slane %v4691_v34, %v2874_v17 }
 0x348   :  { %2466 = vmatpush1.bf16.msk.msra.mxu0 %vm5338_vm0, %v2464_v45  ;;  %vm5340_vm3 = vmpackc.low %vm4542_vm4, %vm5339_vm10  ;;  %vm4702_vm4 = vcmp.eq.s32.totalorder %v1891_v39, 1  ;;  %vm4706_vm0 = vcmp.eq.s32.totalorder %v1935_v16, 1  ;;  %v4710_v22 = vpop.permute.xlu0 %2597  ;;  %v2583_v8 = vpop.permute.xlu1 %2582  ;;  %vm4724_vm10 = vcmp.eq.s32.totalorder %v1979_v0, 1  ;;  %v2590_v0 = vunpack.i.h.bf16 %v4652_v56 }
 0x349   :  { %2487 = vmatprep.subr.msk.bf16.mxu1 %vm5340_vm3, %v2485_v47  ;;  %vm4697_vm15 = vmand %vm4648_vm9, %vm5343_vm2  ;;  %2469 = vmatprep.subr.msk.bf16.mxu0 %vm2468_vm5, %v2467_v29  ;;  %vm4716_vm9 = vcmp.eq.s32.totalorder %v1983_v61, 1  ;;  %vm4720_vm5 = vcmp.eq.s32.totalorder %v1991_v50, 1  ;;  %v5355_v7 = vsel %vm4724_vm10, 4294967295, %v5354_v7  ;;  %v2585_v39 = vunpack.i.h.bf16 %v2583_v8 }
 0x34a   :  { %2490 = vmatpush1.bf16.msk.msra.mxu1 %vm2489_vm6, %v2488_v59  ;;  %vm4728_vm6 = vcmp.eq.s32.totalorder %v1987_v32, 1  ;;  %v2584_v16 = vunpack.i.l.bf16 %v2583_v8  ;;  %v2031_v61 = vrot.slane %v4691_v34, %v2858_v13  ;;  %v4741_v50 = vsel %vm4697_vm15, 1, %v2648_v3 }
 0x34b   :  { %v5357_v37 = vsel %vm4728_vm6, 4294967295, %v5356_v37  ;;  %v2589_v32 = vunpack.i.l.bf16 %v4652_v56  ;;  %vm5358_vm2 = vcmp.lt.s32.totalorder %v2968_v36, 45  ;;  %v1920_v44 = vsel %vm5361_vm12, %v2585_v39, %v2579_v12  ;;  %vm5362_vm6 = vmmov %vm5361_vm12 }
 0x34c   :  { %v1873_v25 = vsel %vm5358_vm2, %v2575_v33, %v2569_v41  ;;  %vm5359_vm13 = vmmov %vm5358_vm2  ;;  %v1917_v62 = vsel %vm5362_vm6, %v2584_v16, %v2585_v39  ;;  %vm5364_vm10 = vcmp.ge.s32.totalorder %v4446_v5, 0  ;;  %v2593_v12 = vpop.permute.xlu1 %2592  ;;  %vm5367_vm12 = vnez %v5015_v15  ;;  %v2608_v29 = vpop.permute.xlu0 %2607 }
 0x34d   :  { %v1870_v11 = vsel %vm5359_vm13, %v2574_v55, %v2575_v33  ;;  %vm5360_vm15 = vmmov %vm5358_vm2  ;;  %v2595_v57 = vunpack.i.h.bf16 %v2593_v12  ;;  %v2594_v24 = vunpack.i.l.bf16 %v2593_v12  ;;  %v2075_v54 = vrot.slane %v4741_v50, %v2858_v13 }
 0x34e   :  { %v1871_v38 = vsel %vm5360_vm15, %v2570_v49, %v2574_v55  ;;  %vm5363_vm2 = vmmov %vm5362_vm6  ;;  %v2470_v49 = vpack.c.bf16 %v1920_v44, %v1873_v25  ;;  %v2491_v14 = vpack.c.bf16 %v1917_v62, %v1870_v11  ;;  %v2083_v47 = vrot.slane %v4741_v50, %v2905_v26 }
 0x34f   :  { %v1918_v41 = vsel %vm5363_vm2, %v2580_v18, %v2584_v16  ;;  %vm4770_vm3 = vmand %vm4562_vm8, %vm5364_vm10  ;;  %v2039_v18 = vrot.slane %v4691_v34, %v2905_v26  ;;  %vm5368_vm8 = vnez %v5023_v30  ;;  %vm5369_vm2 = vcmp.lt.s32.totalorder %v2968_v36, 125 }
 0x350   :  { %v2494_v48 = vpack.c.bf16 %v1918_v41, %v1871_v38  ;;  %vm2474_vm6 = vmpackc.low %vm4716_vm9, %vm5367_vm12  ;;  %v1971_v40 = vsel %vm5369_vm2, %v2589_v32, %v2590_v0  ;;  %vm4801_vm10 = vcmp.eq.s32.totalorder %v2031_v61, 1  ;;  %v2035_v59 = vrot.slane %v4691_v34, %v2889_v21  ;;  %v2603_v9 = vpop.permute.xlu1 %2602  ;;  %v2097_v6 = vpop.permute.xlu0 %2096 }
 0x351   :  { %vm5370_vm15 = vmpackc.low %vm4666_vm7, %vm4662_vm1  ;;  %vm5374_vm2 = vcmp.lt.s32.totalorder %v4446_v5, 16  ;;  %vm5377_vm7 = vcmp.lt.s32.totalorder %v2968_v36, 125  ;;  %v2071_v5 = vrot.slane %v4741_v50, %v2874_v17  ;;  %v2079_v34 = vrot.slane %v4741_v50, %v2889_v21 }
 0x352   :  { %2472 = vmatpush1.bf16.msk.msra.mxu0 %vm5370_vm15, %v2470_v49  ;;  %vm5371_vm13 = vmpackc.low %vm4684_vm11, %vm4670_vm14  ;;  %v1972_v52 = vsel %vm5377_vm7, %v2595_v57, %v2589_v32  ;;  %vm5382_vm15 = vnez %v5355_v7  ;;  %v2476_v43 = vpack.c.bf16 %v1971_v40, %v4417_v35  ;;  %v2605_v46 = vunpack.i.h.bf16 %v2603_v9 }
 0x353   :  { %2493 = vmatprep.subr.msk.bf16.mxu1 %vm5371_vm13, %v2491_v14  ;;  %vm4813_vm1 = vmand %vm4770_vm3, %vm5374_vm2  ;;  %vm5381_vm3 = vnez %v5017_v19  ;;  %v2497_v20 = vpack.c.bf16 %v1972_v52, %v4423_v42  ;;  %v2609_v42 = vunpack.i.l.bf16 %v2608_v29  ;;  %v2604_v8 = vunpack.i.l.bf16 %v2603_v9 }
 0x354   :  { %vm5378_vm14 = vmmov %vm5377_vm7  ;;  %vm4879_vm9 = vcmp.eq.s32.totalorder %v2071_v5, 1  ;;  %v2600_v19 = vunpack.i.h.bf16 %v4710_v22  ;;  %v2599_v2 = vunpack.i.l.bf16 %v4710_v22  ;;  %v2613_v7 = vpop.permute.xlu1 %2612  ;;  %vm4889_vm12 = vcmp.eq.s32.totalorder %v2079_v34, 1  ;;  %v2101_v14 = vpop.permute.xlu0 %2100 }
 0x355   :  { %v1969_v63 = vsel %vm5378_vm14, %v2594_v24, %v2595_v57  ;;  %vm5379_vm11 = vmmov %vm5377_vm7  ;;  %vm5383_vm7 = vnez %v5021_v28  ;;  %v2111_v28 = vsel %vm4813_vm1, 1, %v2648_v3  ;;  %vm4871_vm1 = vcmp.eq.s32.totalorder %v2083_v47, 1 }
 0x356   :  { %v1970_v53 = vsel %vm5379_vm11, %v2590_v0, %v2594_v24  ;;  %vm5380_vm13 = vmpackc.low %vm4706_vm0, %vm4702_vm4  ;;  %v2500_v55 = vpack.c.bf16 %v1969_v63, %v4421_v58  ;;  %vm5384_vm4 = vnez %v5357_v37  ;;  %vm4845_vm11 = vcmp.eq.s32.totalorder %v2075_v54, 1  ;;  %v2140_v24 = vld [vmem:[%s4975_s9] sm:$0xff]  ;;  %s2680_s9 = smov [#allocation4]  }
 0x357   :  { %2496 = vmatpush1.bf16.msk.msra.mxu1 %vm5380_vm13, %v2494_v48  ;;  %vm2477_vm2 = vmpackc.low %vm5382_vm15, %vm5381_vm3  ;;  %v2473_v33 = vpack.c.bf16 %v1970_v53, %v4419_v23  ;;  %vm4849_vm13 = vcmp.eq.s32.totalorder %v2039_v18, 1  ;;  %v2610_v58 = vunpack.i.h.bf16 %v2608_v29  ;;  %v2119_v39 = vrot.slane %v2111_v28, %v2858_v13  ;;  %s2355_s10 = sshll.u32 %s2680_s9, 4  ;;  %s2356_s10 = int_to_ptr.vmem [resolvable:$true] %s2355_s10 }
 0x358   :  { %vm2501_vm0 = vmpackc.low %vm5384_vm4, %vm5383_vm7  ;;  %vm4875_vm4 = vcmp.eq.s32.totalorder %v2027_v10, 1  ;;  %v2615_v16 = vunpack.i.h.bf16 %v2613_v7  ;;  %v2614_v61 = vunpack.i.l.bf16 %v2613_v7  ;;  %v2127_v50 = vrot.slane %v2111_v28, %v2905_v26  ;;  %v2099_v31 = vpop.permute.xlu1 %2098  ;;  %s2622_s3 = scalar_lea.vmem %s2356_s10, 512  ;;  %p2627_p1 = scmp.lt.s32.totalorder %s2356_s10, %s2356_s10 }
 0x359   :  { %2475 = vmatprep.subr.msk.bf16.mxu0 %vm2474_vm6, %v2473_v33  ;;  %vm5389_vm7 = vmpackc.low %vm4720_vm5, %vm5368_vm8  ;;  %vm4883_vm5 = vcmp.eq.s32.totalorder %v2035_v59, 1  ;;  %v2115_v0 = vrot.slane %v2111_v28, %v2874_v17  ;;  %vm5400_vm8 = vcmp.lt.s32.totalorder %v2968_v36, 80  ;;  %vm5401_vm3 = vcmp.lt.s32.totalorder %v2968_v36, 83  ;;  %p2623_p0 = scmp.ne.s32.totalorder %s2356_s10, %s2622_s3  ;;  %p2628_p2 = scmp.lt.s32.totalorder %s2622_s3, %s2622_s3 }
 0x35a   :  { %2499 = vmatprep.subr.msk.bf16.mxu1 %vm5389_vm7, %v2497_v20  ;;  %2478 = vmatpush1.bf16.msk.msra.mxu0 %vm2477_vm2, %v2476_v43  ;;  %vm2480_vm6 = vmpackc.low %vm4845_vm11, %vm4801_vm10  ;;  %v2063_v22 = vsel %vm5400_vm8, %v2609_v42, %v2610_v58  ;;  %v2016_v32 = vsel %vm5401_vm3, %v2605_v46, %v2599_v2  ;;  %v2123_v25 = vrot.slane %v2111_v28, %v2889_v21  ;;  %vm2183_vm11 = vcmask 588800  }
 0x35b   :  { %2502 = vmatpush1.bf16.msk.msra.mxu1 %vm2501_vm0, %v2500_v55  ;;  %vm5402_vm15 = vmmov %vm5401_vm3  ;;  %p2629_p3 = por %p2628_p2, %p2627_p1 }
 0x35c   :  { %v2013_v13 = vsel %vm5402_vm15, %v2604_v8, %v2605_v46  ;;  %vm2504_vm2 = vmpackc.low %vm4871_vm1, %vm4849_vm13  ;;  %v2103_v12 = vpop.permute.xlu1 %2102 }
 0x35d   :  { %vm5403_vm0 = vmmov %vm5401_vm3  ;;  %p2630_p4 = pnand %p2629_p3, %p2623_p0 }
 0x35e   :  { %v2014_v26 = vsel %vm5403_vm0, %v2600_v19, %v2604_v8  ;;  %vm5404_vm7 = vmmov %vm5400_vm8 }
 0x35f   :  { %v2064_v17 = vsel %vm5404_vm7, %v2615_v16, %v2609_v42  ;;  %vm5405_vm8 = vmmov %vm5404_vm7 }
 0x360   :  { %v2061_v11 = vsel %vm5405_vm8, %v2614_v61, %v2615_v16  ;;  %vm5406_vm3 = vmmov %vm5404_vm7  ;;  %v2503_v62 = vpack.c.bf16 %v2064_v17, %v2016_v32  ;;  %vm2129_vm7 = vcmp.eq.s32.totalorder %v2119_v39, 1 }
 0x361   :  { %v2062_v38 = vsel %vm5406_vm3, %v2610_v58, %v2614_v61  ;;  %vm2483_vm15 = vmpackc.low %vm4879_vm9, %vm4875_vm4  ;;  %v2506_v41 = vpack.c.bf16 %v2061_v11, %v2013_v13  ;;  %vm2131_vm4 = vcmp.eq.s32.totalorder %v2127_v50, 1  ;;  %vm2128_vm9 = vcmp.eq.s32.totalorder %v2115_v0, 1 }
 0x362   :  { %vm5407_vm14 = vmmov %vm5403_vm0  ;;  %v2479_v44 = vpack.c.bf16 %v2062_v38, %v2014_v26  ;;  %2505 = vmatprep.subr.msk.bf16.mxu1 %vm2504_vm2, %v2503_v62 }
 0x363   :  { %v2015_v21 = vsel %vm5407_vm14, %v2599_v2, %v2600_v19  ;;  %vm2507_vm0 = vmpackc.low %vm4889_vm12, %vm4883_vm5  ;;  %vm5408_vm14 = vcmp.lt.s32.totalorder %v2968_v36, 77  ;;  %vm2130_vm5 = vcmp.eq.s32.totalorder %v2123_v25, 1 }
 0x364   :  { %v2482_v49 = vpack.c.bf16 %v2063_v22, %v2015_v21  ;;  %2481 = vmatprep.subr.msk.bf16.mxu0 %vm2480_vm6, %v2479_v44  ;;  %v2106_v48 = vsel %vm5408_vm14, %v2099_v31, %v2101_v14  ;;  %2508 = vmatpush1.bf16.msk.msra.mxu1 %vm2507_vm0, %v2506_v41  ;;  %vm5409_vm12 = vmmov %vm5408_vm14 }
 0x365   :  { %v2105_v18 = vsel %vm5409_vm12, %v2101_v14, %v2103_v12  ;;  %vm5410_vm10 = vmmov %vm5409_vm12  ;;  %v48_v10 = vpop.permute.xlu0 %47 }
 0x366   :  { %2484 = vmatpush1.bf16.msk.msra.mxu0 %vm2483_vm15, %v2482_v49  ;;  %v2108_v57 = vsel %vm5410_vm10, %v2103_v12, %v2097_v6  ;;  %vm5411_vm13 = vmmov %vm5410_vm10  ;;  %v134_v40 = vadd.f32 %v3952_v1, %v48_v10  ;;  %v205_v29 = vadd.f32 %v3954_v51, %v48_v10  ;;  %v136_v45 = vadd.f32 %v3966_v4, %v48_v10 }
 0x367   :  { %2393 = vmatprep.subr.msk.mxu0 %vm2129_vm7, %v2106_v48  ;;  %v2107_v54 = vsel %vm5411_vm13, %v2097_v6, %v2099_v31  ;;  %2411 = vmatprep.subr.msk.mxu1 %vm2131_vm4, %v2108_v57  ;;  %v207_v47 = vadd.f32 %v3968_v60, %v48_v10 }
 0x368   :  { %2412 = vmatpush1.msk.msra.mxu1 %vm2130_vm5, %v2105_v18  ;;  %v213_v59 = vmul.f32 0.01, %v134_v40  ;;  %v215_v56 = vmul.f32 0.01, %v205_v29  ;;  %vm209_vm1 = vcmp.gt.f32.partialorder %v134_v40, 0.0  ;;  %vm211_vm6 = vcmp.gt.f32.partialorder %v205_v29, 0.0 }
 0x369   :  { %2376 = vmatmul.mubr.msk.f32.vlgmr.msra.gmra.mrb[4].mxu1 %vm2183_vm11, %v2140_v24  ;;  %v214_v36 = vmul.f32 0.01, %v136_v45  ;;  %v216_v63 = vmul.f32 0.01, %v207_v47  ;;  %vm210_vm2 = vcmp.gt.f32.partialorder %v136_v45, 0.0  ;;  %vm212_vm8 = vcmp.gt.f32.partialorder %v207_v47, 0.0 }
 0x36a   :  { %2394 = vmatpush1.msk.msra.mxu0 %vm2128_vm9, %v2107_v54  ;;  %v217_v51 = vsel %vm209_vm1, %v134_v40, %v213_v59  ;;  %v219_v9 = vsel %vm211_vm6, %v205_v29, %v215_v56 }
 0x36b   :  { %2375 = vmatmul.mubr.msk.f32.vlgmr.msra.gmra.mrb[4].mxu0 %vm2183_vm11, %v2140_v24  ;;  %v218_v27 = vsel %vm210_vm2, %v136_v45, %v214_v36  ;;  %v220_v23 = vsel %vm212_vm8, %v207_v47, %v216_v63 }
 0x36d   :  { %v2181_v52 = vpop.permute.xlu1 %2180 }
 0x43c   :  { %v2324_v5 = vpop.f32.mrb[4].mxu1 }
 0x43d   :  { %v2325_v33 = vadd.f32 %v2324_v5, %v2181_v52  ;;  %v2326_v55 = vpop.f32.mrb[5].mxu1 }
 0x43e   :  { %v2253_v53 = vpop.f32.mrb[4].mxu0  ;;  %v2327_v34 = vadd.f32 %v2326_v55, %v2181_v52 }
 0x43f   :  { %v2254_v20 = vadd.f32 %v2253_v53, %v2181_v52  ;;  %v2255_v1 = vpop.f32.mrb[5].mxu0  ;;  %v2331_v43 = vadd.f32 %v2325_v33, %v219_v9 }
 0x440   :  { %v2256_v4 = vadd.f32 %v2255_v1, %v2181_v52  ;;  %v2332_v58 = vadd.f32 %v2327_v34, %v220_v23 }
 0x441   :  { %v2329_v60 = vadd.f32 %v2254_v20, %v217_v51  ;;  %vm2335_vm15 = vcmp.gt.f32.partialorder %v2331_v43, 0.0  ;;  %v2339_v46 = vmul.f32 0.01, %v2331_v43 }
 0x442   :  { %v2330_v28 = vadd.f32 %v2256_v4, %v218_v27  ;;  %vm2336_vm7 = vcmp.gt.f32.partialorder %v2332_v58, 0.0  ;;  %v2340_v3 = vmul.f32 0.01, %v2332_v58 }
 0x443   :  { %vm2333_vm3 = vcmp.gt.f32.partialorder %v2329_v60, 0.0  ;;  %v2337_v42 = vmul.f32 0.01, %v2329_v60  ;;  %v2343_v35 = vsel %vm2335_vm15, %v2331_v43, %v2339_v46 }
 0x444   :  { %vm2334_vm0 = vcmp.gt.f32.partialorder %v2330_v28, 0.0  ;;  %v2338_v8 = vmul.f32 0.01, %v2330_v28  ;;  %2347 = vst [vmem:[#allocation4 + $0x10] sm:$0xff] %v2343_v35  ;;  %v2344_v19 = vsel %vm2336_vm7, %v2332_v58, %v2340_v3 }
 0x445   :  { %v2341_v15 = vsel %vm2333_vm3, %v2329_v60, %v2337_v42  ;;  %2348 = vst [vmem:[#allocation4 + $0x18] sm:$0xff] %v2344_v19 }
 0x446   :  { %2345 = vst [vmem:[#allocation4] sm:$0xff] %v2341_v15  ;;  %v2342_v30 = vsel %vm2334_vm0, %v2330_v28, %v2338_v8 }
 0x447   :  { %2346 = vst [vmem:[#allocation4 + $0x8] sm:$0xff] %v2342_v30 }
 0x448   :  { %2633 = shalt.err (!%p2630_p4)
}
 0x449   :  { %s2634_s29 = scalar_lea.hbm %s4977_s11, 512 }
 0x44a   :  { %p2635_p5 = scmp.ne.s32.totalorder %s4977_s11, %s2634_s29  ;;  %p2638_p6 = scmp.lt.u32.totalorder %s2634_s29, %s4977_s11 }
 0x44c   :  { %p2640_p7 = pnand %p2638_p6, %p2635_p5 }
 0x44e   :  { %2643 = shalt.err (!%p2640_p7)
}
 0x44f   :  { %2358 = dma.vmem_to_hbm [thread:$0]  %s2356_s10, 512, %s4977_s11, [#allocation5]  }
 0x450   :  { %2644 = dma.done.wait [#allocation5], 512  }
 0x451   :  { %2645 = vsyncadd [#allocation5], 4294966784 }
 0x452   :  { %2362 = vsyncpa [#allocation5], 1 }

</bundles_post_ra>
